<compile_context>
chip_gen: v7x
topology: tpu7x:2x2x1
jax: 0.10.0
libtpu: 0.0.40
codegen_flags: <defaults>
</compile_context>

<pallas_src>
import functools

import jax
import jax.numpy as jnp
from jax.experimental import pallas as pl
from jax.experimental.pallas import tpu as pltpu


# ---------------------------------------------------------------------------
# Fused kernel: conv1 + LReLU(0.01) + conv2 + LReLU(0.1) + residual add
# ---------------------------------------------------------------------------
def _fused_resblock_kernel(*refs, stride, tr, wo, cin_p, cout_p,
                           has_downsample):
    if has_downsample:
        (xp_ref, w1_ref, b1_ref, w2_ref, b2_ref, wd_ref, bd_ref,
         o_ref, scr_ref, acc_ref) = refs
    else:
        (xp_ref, w1_ref, b1_ref, w2_ref, b2_ref,
         o_ref, scr_ref, acc_ref) = refs

    s = stride
    r = pl.program_id(1)                 # output-row tile index
    n_rt = pl.num_programs(1)
    tr2 = tr + 2                         # conv1 rows incl. 1-row halo per side

    # ---- conv1 (3x3, stride s): 3 MXU matmuls (K = 3*cin_p), bf16 operands,
    # f32 accumulation into a VMEM scratch accumulator.
    # xp_ref[ph, pw, 0, q, u, :] == x_padded[q*s + ph, u*s + pw, :].
    for ky in range(3):
        # One slab load per (ky, width-phase); both width offsets of a phase
        # are sliced from the same in-register slab (halves load traffic).
        slabs = {}
        for pw in range(s):
            offs = [kx // s for kx in range(3) if kx % s == pw]
            if not offs:
                continue
            lo, hi = min(offs), max(offs)
            slabs[pw] = (xp_ref[ky % s, pw, 0,
                                pl.ds(r * tr + ky // s, tr2),
                                lo:hi + wo, :], lo)
        taps = []
        for kx in range(3):
            slab, lo = slabs[kx % s]
            off = kx // s - lo
            taps.append(slab[:, off:off + wo, :])
        patch = jnp.concatenate(taps, axis=-1)        # (tr2, wo, 3*cin_p) bf16
        contrib = jnp.dot(patch.reshape(tr2 * wo, 3 * cin_p), w1_ref[ky],
                          preferred_element_type=jnp.float32)
        if ky == 0:
            acc_ref[...] = contrib
        else:
            acc_ref[...] += contrib

    out1 = acc_ref[...] + b1_ref[...]
    out1 = jnp.where(out1 >= 0.0, out1, 0.01 * out1)   # LeakyReLU(0.01), f32
    out1 = out1.astype(jnp.bfloat16).reshape(tr2, wo, cout_p)

    # ---- stash conv1 activation (bf16) into VMEM scratch. Only the two
    # zero-padding border columns are zeroed; out-of-image halo rows are
    # zeroed only on the first / last row tile.
    scr_ref[:, 0, :] = jnp.zeros((tr2, cout_p), jnp.bfloat16)
    scr_ref[:, wo + 1, :] = jnp.zeros((tr2, cout_p), jnp.bfloat16)
    scr_ref[:, 1:wo + 1, :] = out1

    @pl.when(r == 0)
    def _():                                           # top halo above image
        scr_ref[0, 1:wo + 1, :] = jnp.zeros((wo, cout_p), jnp.bfloat16)

    @pl.when(r == n_rt - 1)
    def _():                                           # bottom halo below image
        scr_ref[tr + 1, 1:wo + 1, :] = jnp.zeros((wo, cout_p), jnp.bfloat16)

    # ---- conv2 (3x3, stride 1): 3 MXU matmuls (K = 3*cout_p) over shifted
    # in-register windows of the scratch.
    for ky in range(3):
        slab = scr_ref[ky:ky + tr, :, :]               # (tr, wo+2, cout_p) bf16
        patch = jnp.concatenate(
            [slab[:, 0:wo, :], slab[:, 1:wo + 1, :], slab[:, 2:wo + 2, :]],
            axis=-1).reshape(tr * wo, 3 * cout_p)
        contrib = jnp.dot(patch, w2_ref[ky],
                          preferred_element_type=jnp.float32)
        if ky == 0:
            acc_ref[0:tr * wo, :] = contrib
        else:
            acc_ref[0:tr * wo, :] += contrib

    out2 = acc_ref[0:tr * wo, :] + b2_ref[...]
    out2 = jnp.where(out2 >= 0.0, out2, 0.1 * out2)    # LeakyReLU(0.1), f32

    # ---- residual branch (1x1 stride-s conv, or identity when stride == 1).
    if has_downsample:
        # x[g*s, j*s, :] lives at polyphase (ph=1, pw=1, q=g+1, u=j).
        xs = xp_ref[1, 1, 0, pl.ds(r * tr + 1, tr), 0:wo, :]       # bf16
        ident = jnp.dot(xs.reshape(tr * wo, cin_p), wd_ref[...],
                        preferred_element_type=jnp.float32) + bd_ref[...]
    else:
        # identity skip (in_ch == out_ch): x[g, j, :] at (0, 0, q=g+2, u=j+1).
        # TODO(synk): stride==1 identity adds the bf16-rounded input.
        xs = xp_ref[0, 0, 0, pl.ds(r * tr + 2, tr), 1:1 + wo, :]
        ident = xs.reshape(tr * wo, cin_p).astype(jnp.float32)

    o_ref[...] = (out2 + ident).reshape(1, tr, wo, cout_p)


# ---------------------------------------------------------------------------
# Glue: single-pass polyphase repack of the zero-padded input (no 9x im2col)
# ---------------------------------------------------------------------------
def _build_polyphase(x_nhwc, stride, ho, wo):
    """xpoly[ph, pw, n, q, u, c] == x[n, q*s+ph-(s+1), u*s+pw-1, c] (0 if OOB)."""
    n, h, w, c = x_nhwc.shape
    s = stride
    hq = ho + 2 + 2 // s
    wq = wo + 2 // s
    hp, wp = s * hq, s * wq
    xp = jnp.zeros((n, hp, wp, c), x_nhwc.dtype)
    ch = min(h, hp - (s + 1))
    cw = min(w, wp - 1)
    xp = xp.at[:, s + 1:s + 1 + ch, 1:1 + cw, :].set(x_nhwc[:, :ch, :cw, :])
    xp = xp.reshape(n, hq, s, wq, s, c)
    xp = jnp.transpose(xp, (2, 4, 0, 1, 3, 5))         # (s, s, N, Hq, Wq, C)
    return xp, hq, wq


def _round_up(v, m):
    return (v + m - 1) // m * m


def _pick_row_tile(ho, wo, cout_pad, vmem_budget_bytes=8 << 20):
    """Largest divisor of Ho (preferring multiples of 8) whose per-step
    working set (bf16 scratch + f32 accumulator + 2x f32 out block) fits."""
    per_row = ((wo + 2) * cout_pad * 2        # bf16 conv1-activation scratch
               + 3 * wo * cout_pad * 4)       # f32 accumulator + 2x out block
    max_tr = max(1, vmem_budget_bytes // per_row)
    feasible = [d for d in range(1, ho + 1) if ho % d == 0 and d <= max_tr]
    if not feasible:
        feasible = [1]
    aligned = [d for d in feasible if d % 8 == 0]
    return max(aligned) if aligned else max(feasible)


# ---------------------------------------------------------------------------
# Module forward
# ---------------------------------------------------------------------------
def residual_block_with_stride(x_nchw, params, stride=2):
    """Forward pass of ResidualBlockWithStride. x: (N, Cin, H, W) float32."""
    x = jnp.transpose(x_nchw, (0, 2, 3, 1)).astype(jnp.float32)   # NHWC
    n, h, w, cin = x.shape
    cout = params["w1"].shape[0]
    s = stride
    ho = (h - 1) // s + 1          # conv3x3, pad=1, stride s
    wo = (w - 1) // s + 1
    has_downsample = s != 1
    if not has_downsample:
        assert cin == cout, "stride==1 identity skip requires in_ch == out_ch"

    cin_p = _round_up(cin, 128)    # lane-dense channel padding
    cout_p = _round_up(cout, 128)

    # Channel-pad + bf16 cast once, then one polyphase repack pass.
    xc = jnp.pad(x, ((0, 0), (0, 0), (0, 0), (0, cin_p - cin)))
    xpoly, hq, wq = _build_polyphase(xc.astype(jnp.bfloat16), s, ho, wo)

    def pack3x3(w_oihw, kin, kin_p):
        # OIHW -> (3, 3*kin_p, cout_p) bf16; K index = kx*kin_p + cin.
        wk = jnp.transpose(w_oihw, (2, 3, 1, 0))                 # (ky,kx,I,O)
        wk = jnp.pad(wk, ((0, 0), (0, 0), (0, kin_p - kin), (0, cout_p - cout)))
        return wk.reshape(3, 3 * kin_p, cout_p).astype(jnp.bfloat16)

    def pad_bias(b):
        return jnp.pad(b.astype(jnp.float32),
                       (0, cout_p - cout)).reshape(1, cout_p)

    w1 = pack3x3(params["w1"], cin, cin_p)
    w2 = pack3x3(params["w2"], cout, cout_p)
    b1, b2 = pad_bias(params["b1"]), pad_bias(params["b2"])

    tr = _pick_row_tile(ho, wo, cout_p)        # output rows per grid step
    grid = (n, ho // tr)

    def const_spec(shape):
        return pl.BlockSpec(shape, lambda ni, ri: (0,) * len(shape))

    in_specs = [
        # Whole polyphase image of batch `ni`; constant over `ri`, so it is
        # DMA'd once per batch and stays VMEM-resident across row tiles.
        pl.BlockSpec((s, s, 1, hq, wq, cin_p),
                     lambda ni, ri: (0, 0, ni, 0, 0, 0)),
        const_spec((3, 3 * cin_p, cout_p)),
        const_spec((1, cout_p)),
        const_spec((3, 3 * cout_p, cout_p)),
        const_spec((1, cout_p)),
    ]
    args = [xpoly, w1, b1, w2, b2]
    if has_downsample:
        wd = jnp.transpose(params["wd"][:, :, 0, 0], (1, 0))
        wd = jnp.pad(wd, ((0, cin_p - cin),
                          (0, cout_p - cout))).astype(jnp.bfloat16)
        in_specs += [const_spec((cin_p, cout_p)), const_spec((1, cout_p))]
        args += [wd, pad_bias(params["bd"])]

    out_specs = pl.BlockSpec((1, tr, wo, cout_p), lambda ni, ri: (ni, ri, 0, 0))

    nbytes = lambda a: int(a.size) * a.dtype.itemsize
    m_total = n * ho * wo
    flops = 2 * m_total * cout_p * (9 * cin_p + 9 * cout_p
                                    + (cin_p if has_downsample else 0))
    bytes_accessed = sum(nbytes(a) for a in args) + m_total * cout_p * 4
    vmem_est = (2 * (nbytes(xpoly) // n)                     # xpoly, 2 buffers
                + 2 * sum(nbytes(a) for a in args[1:])       # weights/biases
                + 2 * tr * wo * cout_p * 4                   # out block x2
                + (tr + 2) * (wo + 2) * cout_p * 2           # bf16 scratch
                + (tr + 2) * wo * cout_p * 4)                # f32 accumulator
    vmem_limit = int(min(max(2 * vmem_est, 32 << 20), 64 << 20))

    kernel = functools.partial(
        _fused_resblock_kernel, stride=s, tr=tr, wo=wo,
        cin_p=cin_p, cout_p=cout_p, has_downsample=has_downsample)

    out = pl.pallas_call(
        kernel,
        out_shape=jax.ShapeDtypeStruct((n, ho, wo, cout_p), jnp.float32),
        grid=grid,
        in_specs=in_specs,
        out_specs=out_specs,
        scratch_shapes=[
            pltpu.VMEM((tr + 2, wo + 2, cout_p), jnp.bfloat16),  # conv1 act
            pltpu.VMEM(((tr + 2) * wo, cout_p), jnp.float32),    # f32 accum
        ],
        compiler_params=pltpu.CompilerParams(
            dimension_semantics=("parallel", "parallel"),
            vmem_limit_bytes=vmem_limit),
        cost_estimate=pl.CostEstimate(flops=flops, transcendentals=0,
                                      bytes_accessed=bytes_accessed),
    )(*args)

    out = out[..., :cout]                       # drop channel padding
    return jnp.transpose(out, (0, 3, 1, 2))     # back to NCHW


# ---------------------------------------------------------------------------
# Pure-JAX reference (lax.conv, same bf16 operand / f32 accumulation points)
# ---------------------------------------------------------------------------
def _ref_forward(x_nchw, params, stride=2):
    def conv(x, w_oihw, b, s, pad):
        w_hwio = jnp.transpose(w_oihw, (2, 3, 1, 0)).astype(jnp.bfloat16)
        y = jax.lax.conv_general_dilated(
            x.astype(jnp.bfloat16), w_hwio, (s, s), [(pad, pad), (pad, pad)],
            dimension_numbers=("NHWC", "HWIO", "NHWC"),
            preferred_element_type=jnp.float32)
        return y + b.reshape(1, 1, 1, -1).astype(jnp.float32)

    x = jnp.transpose(x_nchw, (0, 2, 3, 1)).astype(jnp.float32)
    out = conv(x, params["w1"], params["b1"], stride, 1)
    out = jnp.where(out >= 0, out, 0.01 * out)
    out = conv(out, params["w2"], params["b2"], 1, 1)
    out = jnp.where(out >= 0, out, 0.1 * out)
    if stride != 1:
        ident = conv(x, params["wd"], params["bd"], stride, 0)
    else:
        ident = x.astype(jnp.bfloat16).astype(jnp.float32)
    out = out + ident
    return jnp.transpose(out, (0, 3, 1, 2))


# ---------------------------------------------------------------------------
# Main
# ---------------------------------------------------------------------------
if __name__ == "__main__":
    N, IN_CH, OUT_CH, H, W, STRIDE = 2, 4, 8, 16, 16, 2

    key = jax.random.PRNGKey(0)
    k = jax.random.split(key, 7)
    params = {
        "w1": 0.1 * jax.random.normal(k[0], (OUT_CH, IN_CH, 3, 3), jnp.float32),
        "b1": 0.1 * jax.random.normal(k[1], (OUT_CH,), jnp.float32),
        "w2": 0.1 * jax.random.normal(k[2], (OUT_CH, OUT_CH, 3, 3), jnp.float32),
        "b2": 0.1 * jax.random.normal(k[3], (OUT_CH,), jnp.float32),
        "wd": 0.1 * jax.random.normal(k[4], (OUT_CH, IN_CH, 1, 1), jnp.float32),
        "bd": 0.1 * jax.random.normal(k[5], (OUT_CH,), jnp.float32),
    }
    x = jax.random.normal(k[6], (N, IN_CH, H, W), jnp.float32)

    fwd = jax.jit(functools.partial(residual_block_with_stride, stride=STRIDE))
    out = jax.block_until_ready(fwd(x, params))

    ref = _ref_forward(x, params, stride=STRIDE)
    assert out.shape == (N, OUT_CH, H // STRIDE, W // STRIDE), out.shape
    assert jnp.allclose(out, ref, atol=5e-3, rtol=5e-3), "mismatch vs reference"

    print("KERNEL_OK")
</pallas_src>

<mosaic_0001>
module attributes {stable_mosaic.version = 11 : i64} {
  func.func @_fused_resblock_kernel(%arg0: i32, %arg1: i32, %arg2: memref<2x2x1x11x9x128xbf16, #tpu.memory_space<vmem>>, %arg3: memref<3x384x128xbf16, #tpu.memory_space<vmem>>, %arg4: memref<1x128xf32, #tpu.memory_space<vmem>>, %arg5: memref<3x384x128xbf16, #tpu.memory_space<vmem>>, %arg6: memref<1x128xf32, #tpu.memory_space<vmem>>, %arg7: memref<128x128xbf16, #tpu.memory_space<vmem>>, %arg8: memref<1x128xf32, #tpu.memory_space<vmem>>, %arg9: memref<1x8x8x128xf32, #tpu.memory_space<vmem>>, %arg10: memref<10x10x128xbf16, #tpu.memory_space<vmem>>, %arg11: memref<80x128xf32, #tpu.memory_space<vmem>>) attributes {dimension_semantics = [#tpu.dimension_semantics<parallel>, #tpu.dimension_semantics<parallel>], iteration_bounds = array<i64: 2, 1>, scalar_prefetch = 0 : i64, scratch_operands = 2 : i64, tpu.core_type = #tpu.core_type<tc>, window_params = [{transform_indices = @transform_0, window_bounds = array<i64: 2, 2, 1, 11, 9, 128>}, {pipeline_mode = #tpu.pipeline_mode<synchronous>, transform_indices = @transform_1, window_bounds = array<i64: 3, 384, 128>}, {pipeline_mode = #tpu.pipeline_mode<synchronous>, transform_indices = @transform_2, window_bounds = array<i64: 1, 128>}, {pipeline_mode = #tpu.pipeline_mode<synchronous>, transform_indices = @transform_3, window_bounds = array<i64: 3, 384, 128>}, {pipeline_mode = #tpu.pipeline_mode<synchronous>, transform_indices = @transform_4, window_bounds = array<i64: 1, 128>}, {pipeline_mode = #tpu.pipeline_mode<synchronous>, transform_indices = @transform_5, window_bounds = array<i64: 128, 128>}, {pipeline_mode = #tpu.pipeline_mode<synchronous>, transform_indices = @transform_6, window_bounds = array<i64: 1, 128>}, {transform_indices = @transform_7, window_bounds = array<i64: 1, 8, 8, 128>}]} {
    %c8_i32 = arith.constant 8 : i32
    %0 = arith.muli %arg1, %c8_i32 : i32
    %c0_i32 = arith.constant 0 : i32
    %1 = arith.addi %0, %c0_i32 : i32
    %c0 = arith.constant 0 : index
    %c0_0 = arith.constant 0 : index
    %c0_1 = arith.constant 0 : index
    %2 = arith.index_cast %1 : i32 to index
    %c0_2 = arith.constant 0 : index
    %c0_3 = arith.constant 0 : index
    %3 = vector.load %arg2[%c0, %c0_0, %c0_1, %2, %c0_2, %c0_3] : memref<2x2x1x11x9x128xbf16, #tpu.memory_space<vmem>>, vector<1x1x1x10x9x128xbf16>
    %4 = vector.shape_cast %3 : vector<1x1x1x10x9x128xbf16> to vector<10x9x128xbf16>
    %c8_i32_4 = arith.constant 8 : i32
    %5 = arith.muli %arg1, %c8_i32_4 : i32
    %c0_i32_5 = arith.constant 0 : i32
    %6 = arith.addi %5, %c0_i32_5 : i32
    %c0_6 = arith.constant 0 : index
    %c1 = arith.constant 1 : index
    %c0_7 = arith.constant 0 : index
    %7 = arith.index_cast %6 : i32 to index
    %c0_8 = arith.constant 0 : index
    %c0_9 = arith.constant 0 : index
    %8 = vector.load %arg2[%c0_6, %c1, %c0_7, %7, %c0_8, %c0_9] : memref<2x2x1x11x9x128xbf16, #tpu.memory_space<vmem>>, vector<1x1x1x10x8x128xbf16>
    %9 = vector.shape_cast %8 : vector<1x1x1x10x8x128xbf16> to vector<10x8x128xbf16>
    %10 = vector.extract_strided_slice %4 {offsets = [0, 0, 0], sizes = [10, 8, 128], strides = [1, 1, 1]} : vector<10x9x128xbf16> to vector<10x8x128xbf16>
    %11 = vector.extract_strided_slice %4 {offsets = [0, 1, 0], sizes = [10, 8, 128], strides = [1, 1, 1]} : vector<10x9x128xbf16> to vector<10x8x128xbf16>
    %12 = tpu.concatenate %10, %9, %11 in 2 : vector<10x8x128xbf16>, vector<10x8x128xbf16>, vector<10x8x128xbf16> -> vector<10x8x384xbf16>
    %13 = vector.shape_cast %12 : vector<10x8x384xbf16> to vector<80x384xbf16>
    %c0_10 = arith.constant 0 : index
    %c0_11 = arith.constant 0 : index
    %c0_12 = arith.constant 0 : index
    %14 = vector.load %arg3[%c0_10, %c0_11, %c0_12] : memref<3x384x128xbf16, #tpu.memory_space<vmem>>, vector<1x384x128xbf16>
    %15 = vector.shape_cast %14 : vector<1x384x128xbf16> to vector<384x128xbf16>
    %cst = arith.constant dense<0.000000e+00> : vector<80x128xf32>
    %16 = tpu.matmul %13, %15, %cst {dimension_numbers = #tpu.dot_dimension_numbers<[1], [0], [0], [1], [0, 0, 1, 1], [], []>} : vector<80x384xbf16>, vector<384x128xbf16>, vector<80x128xf32> -> vector<80x128xf32>
    %c0_13 = arith.constant 0 : index
    %c0_14 = arith.constant 0 : index
    %17 = vector.load %arg11[%c0_13, %c0_14] : memref<80x128xf32, #tpu.memory_space<vmem>>, vector<80x128xf32>
    tpu.vector_store %arg11[%c0_13, %c0_14], %16 {strides = array<i32>} : memref<80x128xf32, #tpu.memory_space<vmem>>, vector<80x128xf32>,
    %c8_i32_15 = arith.constant 8 : i32
    %18 = arith.muli %arg1, %c8_i32_15 : i32
    %c0_i32_16 = arith.constant 0 : i32
    %19 = arith.addi %18, %c0_i32_16 : i32
    %c1_17 = arith.constant 1 : index
    %c0_18 = arith.constant 0 : index
    %c0_19 = arith.constant 0 : index
    %20 = arith.index_cast %19 : i32 to index
    %c0_20 = arith.constant 0 : index
    %c0_21 = arith.constant 0 : index
    %21 = vector.load %arg2[%c1_17, %c0_18, %c0_19, %20, %c0_20, %c0_21] : memref<2x2x1x11x9x128xbf16, #tpu.memory_space<vmem>>, vector<1x1x1x10x9x128xbf16>
    %22 = vector.shape_cast %21 : vector<1x1x1x10x9x128xbf16> to vector<10x9x128xbf16>
    %c8_i32_22 = arith.constant 8 : i32
    %23 = arith.muli %arg1, %c8_i32_22 : i32
    %c0_i32_23 = arith.constant 0 : i32
    %24 = arith.addi %23, %c0_i32_23 : i32
    %c1_24 = arith.constant 1 : index
    %c1_25 = arith.constant 1 : index
    %c0_26 = arith.constant 0 : index
    %25 = arith.index_cast %24 : i32 to index
    %c0_27 = arith.constant 0 : index
    %c0_28 = arith.constant 0 : index
    %26 = vector.load %arg2[%c1_24, %c1_25, %c0_26, %25, %c0_27, %c0_28] : memref<2x2x1x11x9x128xbf16, #tpu.memory_space<vmem>>, vector<1x1x1x10x8x128xbf16>
    %27 = vector.shape_cast %26 : vector<1x1x1x10x8x128xbf16> to vector<10x8x128xbf16>
    %28 = vector.extract_strided_slice %22 {offsets = [0, 0, 0], sizes = [10, 8, 128], strides = [1, 1, 1]} : vector<10x9x128xbf16> to vector<10x8x128xbf16>
    %29 = vector.extract_strided_slice %22 {offsets = [0, 1, 0], sizes = [10, 8, 128], strides = [1, 1, 1]} : vector<10x9x128xbf16> to vector<10x8x128xbf16>
    %30 = tpu.concatenate %28, %27, %29 in 2 : vector<10x8x128xbf16>, vector<10x8x128xbf16>, vector<10x8x128xbf16> -> vector<10x8x384xbf16>
    %31 = vector.shape_cast %30 : vector<10x8x384xbf16> to vector<80x384xbf16>
    %c1_29 = arith.constant 1 : index
    %c0_30 = arith.constant 0 : index
    %c0_31 = arith.constant 0 : index
    %32 = vector.load %arg3[%c1_29, %c0_30, %c0_31] : memref<3x384x128xbf16, #tpu.memory_space<vmem>>, vector<1x384x128xbf16>
    %33 = vector.shape_cast %32 : vector<1x384x128xbf16> to vector<384x128xbf16>
    %cst_32 = arith.constant dense<0.000000e+00> : vector<80x128xf32>
    %34 = tpu.matmul %31, %33, %cst_32 {dimension_numbers = #tpu.dot_dimension_numbers<[1], [0], [0], [1], [0, 0, 1, 1], [], []>} : vector<80x384xbf16>, vector<384x128xbf16>, vector<80x128xf32> -> vector<80x128xf32>
    %c0_33 = arith.constant 0 : index
    %c0_34 = arith.constant 0 : index
    %35 = vector.load %arg11[%c0_33, %c0_34] : memref<80x128xf32, #tpu.memory_space<vmem>>, vector<80x128xf32>
    %36 = arith.addf %35, %34 : vector<80x128xf32>
    %c0_35 = arith.constant 0 : index
    %c0_36 = arith.constant 0 : index
    %37 = vector.load %arg11[%c0_35, %c0_36] : memref<80x128xf32, #tpu.memory_space<vmem>>, vector<80x128xf32>
    tpu.vector_store %arg11[%c0_35, %c0_36], %36 {strides = array<i32>} : memref<80x128xf32, #tpu.memory_space<vmem>>, vector<80x128xf32>,
    %c8_i32_37 = arith.constant 8 : i32
    %38 = arith.muli %arg1, %c8_i32_37 : i32
    %c1_i32 = arith.constant 1 : i32
    %39 = arith.addi %38, %c1_i32 : i32
    %c0_38 = arith.constant 0 : index
    %c0_39 = arith.constant 0 : index
    %c0_40 = arith.constant 0 : index
    %40 = arith.index_cast %39 : i32 to index
    %c0_41 = arith.constant 0 : index
    %c0_42 = arith.constant 0 : index
    %41 = vector.load %arg2[%c0_38, %c0_39, %c0_40, %40, %c0_41, %c0_42] : memref<2x2x1x11x9x128xbf16, #tpu.memory_space<vmem>>, vector<1x1x1x10x9x128xbf16>
    %42 = vector.shape_cast %41 : vector<1x1x1x10x9x128xbf16> to vector<10x9x128xbf16>
    %c8_i32_43 = arith.constant 8 : i32
    %43 = arith.muli %arg1, %c8_i32_43 : i32
    %c1_i32_44 = arith.constant 1 : i32
    %44 = arith.addi %43, %c1_i32_44 : i32
    %c0_45 = arith.constant 0 : index
    %c1_46 = arith.constant 1 : index
    %c0_47 = arith.constant 0 : index
    %45 = arith.index_cast %44 : i32 to index
    %c0_48 = arith.constant 0 : index
    %c0_49 = arith.constant 0 : index
    %46 = vector.load %arg2[%c0_45, %c1_46, %c0_47, %45, %c0_48, %c0_49] : memref<2x2x1x11x9x128xbf16, #tpu.memory_space<vmem>>, vector<1x1x1x10x8x128xbf16>
    %47 = vector.shape_cast %46 : vector<1x1x1x10x8x128xbf16> to vector<10x8x128xbf16>
    %48 = vector.extract_strided_slice %42 {offsets = [0, 0, 0], sizes = [10, 8, 128], strides = [1, 1, 1]} : vector<10x9x128xbf16> to vector<10x8x128xbf16>
    %49 = vector.extract_strided_slice %42 {offsets = [0, 1, 0], sizes = [10, 8, 128], strides = [1, 1, 1]} : vector<10x9x128xbf16> to vector<10x8x128xbf16>
    %50 = tpu.concatenate %48, %47, %49 in 2 : vector<10x8x128xbf16>, vector<10x8x128xbf16>, vector<10x8x128xbf16> -> vector<10x8x384xbf16>
    %51 = vector.shape_cast %50 : vector<10x8x384xbf16> to vector<80x384xbf16>
    %c2 = arith.constant 2 : index
    %c0_50 = arith.constant 0 : index
    %c0_51 = arith.constant 0 : index
    %52 = vector.load %arg3[%c2, %c0_50, %c0_51] : memref<3x384x128xbf16, #tpu.memory_space<vmem>>, vector<1x384x128xbf16>
    %53 = vector.shape_cast %52 : vector<1x384x128xbf16> to vector<384x128xbf16>
    %cst_52 = arith.constant dense<0.000000e+00> : vector<80x128xf32>
    %54 = tpu.matmul %51, %53, %cst_52 {dimension_numbers = #tpu.dot_dimension_numbers<[1], [0], [0], [1], [0, 0, 1, 1], [], []>} : vector<80x384xbf16>, vector<384x128xbf16>, vector<80x128xf32> -> vector<80x128xf32>
    %c0_53 = arith.constant 0 : index
    %c0_54 = arith.constant 0 : index
    %55 = vector.load %arg11[%c0_53, %c0_54] : memref<80x128xf32, #tpu.memory_space<vmem>>, vector<80x128xf32>
    %56 = arith.addf %55, %54 : vector<80x128xf32>
    %c0_55 = arith.constant 0 : index
    %c0_56 = arith.constant 0 : index
    %57 = vector.load %arg11[%c0_55, %c0_56] : memref<80x128xf32, #tpu.memory_space<vmem>>, vector<80x128xf32>
    tpu.vector_store %arg11[%c0_55, %c0_56], %56 {strides = array<i32>} : memref<80x128xf32, #tpu.memory_space<vmem>>, vector<80x128xf32>,
    %c0_57 = arith.constant 0 : index
    %c0_58 = arith.constant 0 : index
    %58 = vector.load %arg11[%c0_57, %c0_58] : memref<80x128xf32, #tpu.memory_space<vmem>>, vector<80x128xf32>
    %c0_59 = arith.constant 0 : index
    %c0_60 = arith.constant 0 : index
    %59 = vector.load %arg4[%c0_59, %c0_60] : memref<1x128xf32, #tpu.memory_space<vmem>>, vector<1x128xf32>
    %60 = vector.broadcast %59 : vector<1x128xf32> to vector<80x128xf32>
    %61 = arith.addf %58, %60 : vector<80x128xf32>
    %cst_61 = arith.constant 0.000000e+00 : f32
    %62 = vector.broadcast %cst_61 : f32 to vector<80x128xf32>
    %63 = arith.cmpf oge, %61, %62 : vector<80x128xf32>
    %cst_62 = arith.constant 0.00999999977 : f32
    %64 = vector.broadcast %cst_62 : f32 to vector<80x128xf32>
    %65 = arith.mulf %64, %61 : vector<80x128xf32>
    %66 = arith.select %63, %61, %65 : vector<80x128xi1>, vector<80x128xf32>
    %67 = arith.truncf %66 : vector<80x128xf32> to vector<80x128xbf16>
    %68 = vector.shape_cast %67 : vector<80x128xbf16> to vector<10x8x128xbf16>
    %cst_63 = arith.constant 0.000000e+00 : bf16
    %69 = vector.broadcast %cst_63 : bf16 to vector<10x128xbf16>
    %c0_64 = arith.constant 0 : index
    %c0_65 = arith.constant 0 : index
    %c0_66 = arith.constant 0 : index
    %70 = vector.load %arg10[%c0_64, %c0_65, %c0_66] : memref<10x10x128xbf16, #tpu.memory_space<vmem>>, vector<10x1x128xbf16>
    %71 = vector.shape_cast %70 : vector<10x1x128xbf16> to vector<10x128xbf16>
    %72 = vector.shape_cast %69 : vector<10x128xbf16> to vector<10x1x128xbf16>
    tpu.vector_store %arg10[%c0_64, %c0_65, %c0_66], %72 {strides = array<i32>} : memref<10x10x128xbf16, #tpu.memory_space<vmem>>, vector<10x1x128xbf16>,
    %cst_67 = arith.constant 0.000000e+00 : bf16
    %73 = vector.broadcast %cst_67 : bf16 to vector<10x128xbf16>
    %c0_68 = arith.constant 0 : index
    %c9 = arith.constant 9 : index
    %c0_69 = arith.constant 0 : index
    %74 = vector.load %arg10[%c0_68, %c9, %c0_69] : memref<10x10x128xbf16, #tpu.memory_space<vmem>>, vector<10x1x128xbf16>
    %75 = vector.shape_cast %74 : vector<10x1x128xbf16> to vector<10x128xbf16>
    %76 = vector.shape_cast %73 : vector<10x128xbf16> to vector<10x1x128xbf16>
    tpu.vector_store %arg10[%c0_68, %c9, %c0_69], %76 {strides = array<i32>} : memref<10x10x128xbf16, #tpu.memory_space<vmem>>, vector<10x1x128xbf16>,
    %c0_70 = arith.constant 0 : index
    %c1_71 = arith.constant 1 : index
    %c0_72 = arith.constant 0 : index
    %77 = vector.load %arg10[%c0_70, %c1_71, %c0_72] : memref<10x10x128xbf16, #tpu.memory_space<vmem>>, vector<10x8x128xbf16>
    tpu.vector_store %arg10[%c0_70, %c1_71, %c0_72], %68 {strides = array<i32>} : memref<10x10x128xbf16, #tpu.memory_space<vmem>>, vector<10x8x128xbf16>,
    %c0_i32_73 = arith.constant 0 : i32
    %78 = arith.cmpi eq, %arg1, %c0_i32_73 : i32
    %79 = arith.extui %78 : i1 to i32
    %c0_i32_74 = arith.constant 0 : i32
    %80 = arith.cmpi ne, %79, %c0_i32_74 : i32
    scf.if %80 {
      %cst_130 = arith.constant 0.000000e+00 : bf16
      %141 = vector.broadcast %cst_130 : bf16 to vector<8x128xbf16>
      %c0_131 = arith.constant 0 : index
      %c1_132 = arith.constant 1 : index
      %c0_133 = arith.constant 0 : index
      %142 = vector.load %arg10[%c0_131, %c1_132, %c0_133] : memref<10x10x128xbf16, #tpu.memory_space<vmem>>, vector<1x8x128xbf16>
      %143 = vector.shape_cast %142 : vector<1x8x128xbf16> to vector<8x128xbf16>
      %144 = vector.shape_cast %141 : vector<8x128xbf16> to vector<1x8x128xbf16>
      tpu.vector_store %arg10[%c0_131, %c1_132, %c0_133], %144 {strides = array<i32>} : memref<10x10x128xbf16, #tpu.memory_space<vmem>>, vector<1x8x128xbf16>,
    } else {
    }
    %c0_i32_75 = arith.constant 0 : i32
    %81 = arith.cmpi eq, %arg1, %c0_i32_75 : i32
    %82 = arith.extui %81 : i1 to i32
    %c0_i32_76 = arith.constant 0 : i32
    %83 = arith.cmpi ne, %82, %c0_i32_76 : i32
    scf.if %83 {
      %cst_130 = arith.constant 0.000000e+00 : bf16
      %141 = vector.broadcast %cst_130 : bf16 to vector<8x128xbf16>
      %c9_131 = arith.constant 9 : index
      %c1_132 = arith.constant 1 : index
      %c0_133 = arith.constant 0 : index
      %142 = vector.load %arg10[%c9_131, %c1_132, %c0_133] : memref<10x10x128xbf16, #tpu.memory_space<vmem>>, vector<1x8x128xbf16>
      %143 = vector.shape_cast %142 : vector<1x8x128xbf16> to vector<8x128xbf16>
      %144 = vector.shape_cast %141 : vector<8x128xbf16> to vector<1x8x128xbf16>
      tpu.vector_store %arg10[%c9_131, %c1_132, %c0_133], %144 {strides = array<i32>} : memref<10x10x128xbf16, #tpu.memory_space<vmem>>, vector<1x8x128xbf16>,
    } else {
    }
    %c0_77 = arith.constant 0 : index
    %c0_78 = arith.constant 0 : index
    %c0_79 = arith.constant 0 : index
    %84 = vector.load %arg10[%c0_77, %c0_78, %c0_79] : memref<10x10x128xbf16, #tpu.memory_space<vmem>>, vector<8x10x128xbf16>
    %85 = vector.extract_strided_slice %84 {offsets = [0, 0, 0], sizes = [8, 8, 128], strides = [1, 1, 1]} : vector<8x10x128xbf16> to vector<8x8x128xbf16>
    %86 = vector.extract_strided_slice %84 {offsets = [0, 1, 0], sizes = [8, 8, 128], strides = [1, 1, 1]} : vector<8x10x128xbf16> to vector<8x8x128xbf16>
    %87 = vector.extract_strided_slice %84 {offsets = [0, 2, 0], sizes = [8, 8, 128], strides = [1, 1, 1]} : vector<8x10x128xbf16> to vector<8x8x128xbf16>
    %88 = tpu.concatenate %85, %86, %87 in 2 : vector<8x8x128xbf16>, vector<8x8x128xbf16>, vector<8x8x128xbf16> -> vector<8x8x384xbf16>
    %89 = vector.shape_cast %88 : vector<8x8x384xbf16> to vector<64x384xbf16>
    %c0_80 = arith.constant 0 : index
    %c0_81 = arith.constant 0 : index
    %c0_82 = arith.constant 0 : index
    %90 = vector.load %arg5[%c0_80, %c0_81, %c0_82] : memref<3x384x128xbf16, #tpu.memory_space<vmem>>, vector<1x384x128xbf16>
    %91 = vector.shape_cast %90 : vector<1x384x128xbf16> to vector<384x128xbf16>
    %cst_83 = arith.constant dense<0.000000e+00> : vector<64x128xf32>
    %92 = tpu.matmul %89, %91, %cst_83 {dimension_numbers = #tpu.dot_dimension_numbers<[1], [0], [0], [1], [0, 0, 1, 1], [], []>} : vector<64x384xbf16>, vector<384x128xbf16>, vector<64x128xf32> -> vector<64x128xf32>
    %c0_84 = arith.constant 0 : index
    %c0_85 = arith.constant 0 : index
    %93 = vector.load %arg11[%c0_84, %c0_85] : memref<80x128xf32, #tpu.memory_space<vmem>>, vector<64x128xf32>
    tpu.vector_store %arg11[%c0_84, %c0_85], %92 {strides = array<i32>} : memref<80x128xf32, #tpu.memory_space<vmem>>, vector<64x128xf32>,
    %c1_86 = arith.constant 1 : index
    %c0_87 = arith.constant 0 : index
    %c0_88 = arith.constant 0 : index
    %94 = vector.load %arg10[%c1_86, %c0_87, %c0_88] : memref<10x10x128xbf16, #tpu.memory_space<vmem>>, vector<8x10x128xbf16>
    %95 = vector.extract_strided_slice %94 {offsets = [0, 0, 0], sizes = [8, 8, 128], strides = [1, 1, 1]} : vector<8x10x128xbf16> to vector<8x8x128xbf16>
    %96 = vector.extract_strided_slice %94 {offsets = [0, 1, 0], sizes = [8, 8, 128], strides = [1, 1, 1]} : vector<8x10x128xbf16> to vector<8x8x128xbf16>
    %97 = vector.extract_strided_slice %94 {offsets = [0, 2, 0], sizes = [8, 8, 128], strides = [1, 1, 1]} : vector<8x10x128xbf16> to vector<8x8x128xbf16>
    %98 = tpu.concatenate %95, %96, %97 in 2 : vector<8x8x128xbf16>, vector<8x8x128xbf16>, vector<8x8x128xbf16> -> vector<8x8x384xbf16>
    %99 = vector.shape_cast %98 : vector<8x8x384xbf16> to vector<64x384xbf16>
    %c1_89 = arith.constant 1 : index
    %c0_90 = arith.constant 0 : index
    %c0_91 = arith.constant 0 : index
    %100 = vector.load %arg5[%c1_89, %c0_90, %c0_91] : memref<3x384x128xbf16, #tpu.memory_space<vmem>>, vector<1x384x128xbf16>
    %101 = vector.shape_cast %100 : vector<1x384x128xbf16> to vector<384x128xbf16>
    %cst_92 = arith.constant dense<0.000000e+00> : vector<64x128xf32>
    %102 = tpu.matmul %99, %101, %cst_92 {dimension_numbers = #tpu.dot_dimension_numbers<[1], [0], [0], [1], [0, 0, 1, 1], [], []>} : vector<64x384xbf16>, vector<384x128xbf16>, vector<64x128xf32> -> vector<64x128xf32>
    %c0_93 = arith.constant 0 : index
    %c0_94 = arith.constant 0 : index
    %103 = vector.load %arg11[%c0_93, %c0_94] : memref<80x128xf32, #tpu.memory_space<vmem>>, vector<64x128xf32>
    %104 = arith.addf %103, %102 : vector<64x128xf32>
    %c0_95 = arith.constant 0 : index
    %c0_96 = arith.constant 0 : index
    %105 = vector.load %arg11[%c0_95, %c0_96] : memref<80x128xf32, #tpu.memory_space<vmem>>, vector<64x128xf32>
    tpu.vector_store %arg11[%c0_95, %c0_96], %104 {strides = array<i32>} : memref<80x128xf32, #tpu.memory_space<vmem>>, vector<64x128xf32>,
    %c2_97 = arith.constant 2 : index
    %c0_98 = arith.constant 0 : index
    %c0_99 = arith.constant 0 : index
    %106 = vector.load %arg10[%c2_97, %c0_98, %c0_99] : memref<10x10x128xbf16, #tpu.memory_space<vmem>>, vector<8x10x128xbf16>
    %107 = vector.extract_strided_slice %106 {offsets = [0, 0, 0], sizes = [8, 8, 128], strides = [1, 1, 1]} : vector<8x10x128xbf16> to vector<8x8x128xbf16>
    %108 = vector.extract_strided_slice %106 {offsets = [0, 1, 0], sizes = [8, 8, 128], strides = [1, 1, 1]} : vector<8x10x128xbf16> to vector<8x8x128xbf16>
    %109 = vector.extract_strided_slice %106 {offsets = [0, 2, 0], sizes = [8, 8, 128], strides = [1, 1, 1]} : vector<8x10x128xbf16> to vector<8x8x128xbf16>
    %110 = tpu.concatenate %107, %108, %109 in 2 : vector<8x8x128xbf16>, vector<8x8x128xbf16>, vector<8x8x128xbf16> -> vector<8x8x384xbf16>
    %111 = vector.shape_cast %110 : vector<8x8x384xbf16> to vector<64x384xbf16>
    %c2_100 = arith.constant 2 : index
    %c0_101 = arith.constant 0 : index
    %c0_102 = arith.constant 0 : index
    %112 = vector.load %arg5[%c2_100, %c0_101, %c0_102] : memref<3x384x128xbf16, #tpu.memory_space<vmem>>, vector<1x384x128xbf16>
    %113 = vector.shape_cast %112 : vector<1x384x128xbf16> to vector<384x128xbf16>
    %cst_103 = arith.constant dense<0.000000e+00> : vector<64x128xf32>
    %114 = tpu.matmul %111, %113, %cst_103 {dimension_numbers = #tpu.dot_dimension_numbers<[1], [0], [0], [1], [0, 0, 1, 1], [], []>} : vector<64x384xbf16>, vector<384x128xbf16>, vector<64x128xf32> -> vector<64x128xf32>
    %c0_104 = arith.constant 0 : index
    %c0_105 = arith.constant 0 : index
    %115 = vector.load %arg11[%c0_104, %c0_105] : memref<80x128xf32, #tpu.memory_space<vmem>>, vector<64x128xf32>
    %116 = arith.addf %115, %114 : vector<64x128xf32>
    %c0_106 = arith.constant 0 : index
    %c0_107 = arith.constant 0 : index
    %117 = vector.load %arg11[%c0_106, %c0_107] : memref<80x128xf32, #tpu.memory_space<vmem>>, vector<64x128xf32>
    tpu.vector_store %arg11[%c0_106, %c0_107], %116 {strides = array<i32>} : memref<80x128xf32, #tpu.memory_space<vmem>>, vector<64x128xf32>,
    %c0_108 = arith.constant 0 : index
    %c0_109 = arith.constant 0 : index
    %118 = vector.load %arg11[%c0_108, %c0_109] : memref<80x128xf32, #tpu.memory_space<vmem>>, vector<64x128xf32>
    %c0_110 = arith.constant 0 : index
    %c0_111 = arith.constant 0 : index
    %119 = vector.load %arg6[%c0_110, %c0_111] : memref<1x128xf32, #tpu.memory_space<vmem>>, vector<1x128xf32>
    %120 = vector.broadcast %119 : vector<1x128xf32> to vector<64x128xf32>
    %121 = arith.addf %118, %120 : vector<64x128xf32>
    %cst_112 = arith.constant 0.000000e+00 : f32
    %122 = vector.broadcast %cst_112 : f32 to vector<64x128xf32>
    %123 = arith.cmpf oge, %121, %122 : vector<64x128xf32>
    %cst_113 = arith.constant 1.000000e-01 : f32
    %124 = vector.broadcast %cst_113 : f32 to vector<64x128xf32>
    %125 = arith.mulf %124, %121 : vector<64x128xf32>
    %126 = arith.select %123, %121, %125 : vector<64x128xi1>, vector<64x128xf32>
    %c8_i32_114 = arith.constant 8 : i32
    %127 = arith.muli %arg1, %c8_i32_114 : i32
    %c1_i32_115 = arith.constant 1 : i32
    %128 = arith.addi %127, %c1_i32_115 : i32
    %c1_116 = arith.constant 1 : index
    %c1_117 = arith.constant 1 : index
    %c0_118 = arith.constant 0 : index
    %129 = arith.index_cast %128 : i32 to index
    %c0_119 = arith.constant 0 : index
    %c0_120 = arith.constant 0 : index
    %130 = vector.load %arg2[%c1_116, %c1_117, %c0_118, %129, %c0_119, %c0_120] : memref<2x2x1x11x9x128xbf16, #tpu.memory_space<vmem>>, vector<1x1x1x8x8x128xbf16>
    %131 = vector.shape_cast %130 : vector<1x1x1x8x8x128xbf16> to vector<8x8x128xbf16>
    %132 = vector.shape_cast %131 : vector<8x8x128xbf16> to vector<64x128xbf16>
    %c0_121 = arith.constant 0 : index
    %c0_122 = arith.constant 0 : index
    %133 = vector.load %arg7[%c0_121, %c0_122] : memref<128x128xbf16, #tpu.memory_space<vmem>>, vector<128x128xbf16>
    %cst_123 = arith.constant dense<0.000000e+00> : vector<64x128xf32>
    %134 = tpu.matmul %132, %133, %cst_123 {dimension_numbers = #tpu.dot_dimension_numbers<[1], [0], [0], [1], [0, 0, 1, 1], [], []>} : vector<64x128xbf16>, vector<128x128xbf16>, vector<64x128xf32> -> vector<64x128xf32>
    %c0_124 = arith.constant 0 : index
    %c0_125 = arith.constant 0 : index
    %135 = vector.load %arg8[%c0_124, %c0_125] : memref<1x128xf32, #tpu.memory_space<vmem>>, vector<1x128xf32>
    %136 = vector.broadcast %135 : vector<1x128xf32> to vector<64x128xf32>
    %137 = arith.addf %134, %136 : vector<64x128xf32>
    %138 = arith.addf %126, %137 : vector<64x128xf32>
    %139 = vector.shape_cast %138 : vector<64x128xf32> to vector<1x8x8x128xf32>
    %c0_126 = arith.constant 0 : index
    %c0_127 = arith.constant 0 : index
    %c0_128 = arith.constant 0 : index
    %c0_129 = arith.constant 0 : index
    %140 = vector.load %arg9[%c0_126, %c0_127, %c0_128, %c0_129] : memref<1x8x8x128xf32, #tpu.memory_space<vmem>>, vector<1x8x8x128xf32>
    tpu.vector_store %arg9[%c0_126, %c0_127, %c0_128, %c0_129], %139 {strides = array<i32>} : memref<1x8x8x128xf32, #tpu.memory_space<vmem>>, vector<1x8x8x128xf32>,
    return
  }
  func.func @transform_0(%arg0: i32, %arg1: i32) -> (i32, i32, i32, i32, i32, i32) {
    %c0_i32 = arith.constant 0 : i32
    %c0_i32_0 = arith.constant 0 : i32
    %c0_i32_1 = arith.constant 0 : i32
    %c0_i32_2 = arith.constant 0 : i32
    %c0_i32_3 = arith.constant 0 : i32
    %c0_i32_4 = arith.constant 0 : i32
    return %c0_i32, %c0_i32_0, %arg0, %c0_i32_1, %c0_i32_2, %c0_i32_3 : i32, i32, i32, i32, i32, i32
  }
  func.func @transform_1(%arg0: i32, %arg1: i32) -> (i32, i32, i32) {
    %c0_i32 = arith.constant 0 : i32
    %c0_i32_0 = arith.constant 0 : i32
    %c0_i32_1 = arith.constant 0 : i32
    %c0_i32_2 = arith.constant 0 : i32
    return %c0_i32, %c0_i32_0, %c0_i32_1 : i32, i32, i32
  }
  func.func @transform_2(%arg0: i32, %arg1: i32) -> (i32, i32) {
    %c0_i32 = arith.constant 0 : i32
    %c0_i32_0 = arith.constant 0 : i32
    %c0_i32_1 = arith.constant 0 : i32
    return %c0_i32, %c0_i32_0 : i32, i32
  }
  func.func @transform_3(%arg0: i32, %arg1: i32) -> (i32, i32, i32) {
    %c0_i32 = arith.constant 0 : i32
    %c0_i32_0 = arith.constant 0 : i32
    %c0_i32_1 = arith.constant 0 : i32
    %c0_i32_2 = arith.constant 0 : i32
    return %c0_i32, %c0_i32_0, %c0_i32_1 : i32, i32, i32
  }
  func.func @transform_4(%arg0: i32, %arg1: i32) -> (i32, i32) {
    %c0_i32 = arith.constant 0 : i32
    %c0_i32_0 = arith.constant 0 : i32
    %c0_i32_1 = arith.constant 0 : i32
    return %c0_i32, %c0_i32_0 : i32, i32
  }
  func.func @transform_5(%arg0: i32, %arg1: i32) -> (i32, i32) {
    %c0_i32 = arith.constant 0 : i32
    %c0_i32_0 = arith.constant 0 : i32
    %c0_i32_1 = arith.constant 0 : i32
    return %c0_i32, %c0_i32_0 : i32, i32
  }
  func.func @transform_6(%arg0: i32, %arg1: i32) -> (i32, i32) {
    %c0_i32 = arith.constant 0 : i32
    %c0_i32_0 = arith.constant 0 : i32
    %c0_i32_1 = arith.constant 0 : i32
    return %c0_i32, %c0_i32_0 : i32, i32
  }
  func.func @transform_7(%arg0: i32, %arg1: i32) -> (i32, i32, i32, i32) {
    %c0_i32 = arith.constant 0 : i32
    %c0_i32_0 = arith.constant 0 : i32
    %c0_i32_1 = arith.constant 0 : i32
    return %arg0, %arg1, %c0_i32, %c0_i32_0 : i32, i32, i32, i32
  }
}

</mosaic_0001>

<bundles_post_ra>
// kernel: residual_block_with_stride.1
= control target key start
LH: loop header
LB: loop body
LE: loop exit
PB: predicated region body
PF: predicated region fallthrough
CT: control target
= control target key end

     0   :  { %s6194_s24 = smov 0   ;;  %s6196_s25 = smov 0   ;;  %s7345_s0 = inlined_call_operand.vmem [shape: bf16[2,2,2,11,9,128], index: 0, kind: input, shape index: {}]   ;;  %s7346_s1 = inlined_call_operand.vmem [shape: bf16[3,384,128], index: 1, kind: input, shape index: {}]   ;;  %s7347_s2 = inlined_call_operand.vmem [shape: f32[1,128], index: 2, kind: input, shape index: {}]   ;;  %s7348_s3 = inlined_call_operand.vmem [shape: bf16[3,384,128], index: 3, kind: input, shape index: {}]   ;;  %s7349_s4 = inlined_call_operand.vmem [shape: f32[1,128], index: 4, kind: input, shape index: {}]   ;;  %s7350_s5 = inlined_call_operand.vmem [shape: bf16[128,128], index: 5, kind: input, shape index: {}]   ;;  %s7351_s6 = inlined_call_operand.vmem [shape: f32[1,128], index: 6, kind: input, shape index: {}]   ;;  %s7352_s7 = inlined_call_operand.vmem [shape: f32[2,8,8,128], index: 7, kind: output, shape index: {}]  }
   0x1   :  { %s6198_s26 = smov 0   ;;  %s6200_s27 = smov 0  }
   0x2   :  { %s6202_s28 = smov 0  }
   0x3 LB: > { %s29_s29 = sadd.s32 1, %s6146_s27  ;;  %p43_p1 = scmp.ne.s32.totalorder %s6138_s25, %s6134_s24  ;;  %s6150_s28 = sphi %s6202_s28, %s17_s28   ;;  %s6146_s27 = sphi %s6200_s27, %s7362_s27   ;;  %s6142_s26 = sphi %s6198_s26, %s7361_s26   ;;  %s6138_s25 = sphi %s6196_s25, %s7360_s25   ;;  %s6134_s24 = sphi %s6194_s24, %s7359_s24  }
   0x4   : > { %p31_p0 = scmp.ge.s32.totalorder %s29_s29, 2  ;;  %p44_p2 = scmp.eq.s32.totalorder %s6150_s28, 0 }
   0x5   : > { %s36_s8 = sadd.s32 1, %s6138_s25  ;;  %p4618_p5 = scmp.ge.s32.totalorder %s6150_s28, 2 }
   0x6   : > { %s7364_s29 = smov (%p31_p0, %s29_s29), 0  ;;  %p45_p3 = por %p44_p2, %p43_p1 }
   0x7   : > { %s33_s30 = ssub.s32 %s6146_s27, %s7364_s29  ;;  %241 = sbr.rel (%p4618_p5) target bundleno = 41 (0x29), region = 40 }
   0x8   : > { %p34_p4 = scmp.eq.s32.totalorder %s33_s30, 0 }
   0xa   : > { %s6229_s9 = scalar_select %p34_p4, %s6138_s25, %s36_s8  }
   0xe   : > { %244 = sbr.rel (!%p45_p3) target bundleno = 41 (0x29), region = 44  ;;  %s246_s10 = sand.u32 (%p45_p3), 1, %s6138_s25  }
   0xf   : > { %s5816_s11 = smul.u32 (%p45_p3), 88, %s6146_s27 }
  0x10   : > { %s5815_s12 = smul.u32 (%p45_p3), 352, %s246_s10 }
  0x11   : > { %s6237_s15 = scalar_lea.vmem (%p45_p3), %s7345_s0, %s5816_s11 }
  0x12   : > { %v267_v0 = vld [vmem:[%s6237_s15] sm:$0xff] (%p45_p3)   ;;  %v271_v1 = vld [vmem:[%s6237_s15 + $0x8] sm:$0xff] (%p45_p3)   ;;  %v275_v2 = vld [vmem:[%s6237_s15 + $0x10] sm:$0xff] (%p45_p3)   ;;  %s6242_s16 = scalar_lea.vmem (%p45_p3), [#allocation4], %s5815_s12 }
  0x13   : > { %268 = vst [vmem:[%s6242_s16] sm:$0xff] (%p45_p3), %v267_v0   ;;  %272 = vst [vmem:[%s6242_s16 + $0x8] sm:$0xff] (%p45_p3), %v271_v1   ;;  %v279_v3 = vld [vmem:[%s6237_s15 + $0x18] sm:$0xff] (%p45_p3)   ;;  %v283_v4 = vld [vmem:[%s6237_s15 + $0x20] sm:$0xff] (%p45_p3)  }
  0x14   : > { %276 = vst [vmem:[%s6242_s16 + $0x10] sm:$0xff] (%p45_p3), %v275_v2   ;;  %v287_v5 = vld [vmem:[%s6237_s15 + $0x28] sm:$0xff] (%p45_p3)   ;;  %280 = vst [vmem:[%s6242_s16 + $0x18] sm:$0xff] (%p45_p3), %v279_v3   ;;  %v291_v6 = vld [vmem:[%s6237_s15 + $0x30] sm:$0xff] (%p45_p3)  }
  0x15   : > { %284 = vst [vmem:[%s6242_s16 + $0x20] sm:$0xff] %v283_v4   ;;  %288 = vst [vmem:[%s6242_s16 + $0x28] sm:$0xff] %v287_v5   ;;  %v295_v7 = vld [vmem:[%s6237_s15 + $0x38] sm:$0xff]   ;;  %v299_v8 = vld [vmem:[%s6237_s15 + $0x40] sm:$0xff]  }
  0x16   : > { %292 = vst [vmem:[%s6242_s16 + $0x30] sm:$0xff] %v291_v6   ;;  %296 = vst [vmem:[%s6242_s16 + $0x38] sm:$0xff] %v295_v7   ;;  %v303_v9 = vld [vmem:[%s6237_s15 + $0x48] sm:$0xff]   ;;  %v307_v10 = vld [vmem:[%s6237_s15 + $0x50] sm:$0xff]  }
  0x17   : > { %300 = vst [vmem:[%s6242_s16 + $0x40] sm:$0xff] %v299_v8   ;;  %v311_v11 = vld [vmem:[%s6237_s15 + $0xb0] sm:$0xff]   ;;  %304 = vst [vmem:[%s6242_s16 + $0x48] sm:$0xff] %v303_v9   ;;  %v315_v12 = vld [vmem:[%s6237_s15 + $0xb8] sm:$0xff]  }
  0x18   : > { %308 = vst [vmem:[%s6242_s16 + $0x50] sm:$0xff] %v307_v10   ;;  %312 = vst [vmem:[%s6242_s16 + $0x58] sm:$0xff] %v311_v11   ;;  %v319_v13 = vld [vmem:[%s6237_s15 + $0xc0] sm:$0xff]   ;;  %v323_v14 = vld [vmem:[%s6237_s15 + $0xc8] sm:$0xff]  }
  0x19   : > { %316 = vst [vmem:[%s6242_s16 + $0x60] sm:$0xff] %v315_v12   ;;  %320 = vst [vmem:[%s6242_s16 + $0x68] sm:$0xff] %v319_v13   ;;  %v327_v15 = vld [vmem:[%s6237_s15 + $0xd0] sm:$0xff]   ;;  %v331_v16 = vld [vmem:[%s6237_s15 + $0xd8] sm:$0xff]  }
  0x1a   : > { %324 = vst [vmem:[%s6242_s16 + $0x70] sm:$0xff] %v323_v14   ;;  %v335_v17 = vld [vmem:[%s6237_s15 + $0xe0] sm:$0xff]   ;;  %328 = vst [vmem:[%s6242_s16 + $0x78] sm:$0xff] %v327_v15   ;;  %v339_v18 = vld [vmem:[%s6237_s15 + $0xe8] sm:$0xff]  }
  0x1b   : > { %332 = vst [vmem:[%s6242_s16 + $0x80] sm:$0xff] %v331_v16   ;;  %336 = vst [vmem:[%s6242_s16 + $0x88] sm:$0xff] %v335_v17   ;;  %v343_v19 = vld [vmem:[%s6237_s15 + $0xf0] sm:$0xff]   ;;  %v347_v20 = vld [vmem:[%s6237_s15 + $0xf8] sm:$0xff]  }
  0x1c   : > { %340 = vst [vmem:[%s6242_s16 + $0x90] sm:$0xff] %v339_v18   ;;  %344 = vst [vmem:[%s6242_s16 + $0x98] sm:$0xff] %v343_v19   ;;  %v351_v21 = vld [vmem:[%s6237_s15 + $0x100] sm:$0xff]   ;;  %v359_v23 = vld [vmem:[%s6237_s15 + $0x168] sm:$0xff]  }
  0x1d   : > { %348 = vst [vmem:[%s6242_s16 + $0xa0] sm:$0xff] %v347_v20   ;;  %v355_v22 = vld [vmem:[%s6237_s15 + $0x160] sm:$0xff]   ;;  %352 = vst [vmem:[%s6242_s16 + $0xa8] sm:$0xff] %v351_v21   ;;  %v363_v24 = vld [vmem:[%s6237_s15 + $0x170] sm:$0xff]  }
  0x1e   : > { %356 = vst [vmem:[%s6242_s16 + $0xb0] sm:$0xff] %v355_v22   ;;  %360 = vst [vmem:[%s6242_s16 + $0xb8] sm:$0xff] %v359_v23   ;;  %v367_v25 = vld [vmem:[%s6237_s15 + $0x178] sm:$0xff]   ;;  %v371_v26 = vld [vmem:[%s6237_s15 + $0x180] sm:$0xff]  }
  0x1f   : > { %364 = vst [vmem:[%s6242_s16 + $0xc0] sm:$0xff] %v363_v24   ;;  %368 = vst [vmem:[%s6242_s16 + $0xc8] sm:$0xff] %v367_v25   ;;  %v375_v27 = vld [vmem:[%s6237_s15 + $0x188] sm:$0xff]   ;;  %v379_v28 = vld [vmem:[%s6237_s15 + $0x190] sm:$0xff]  }
  0x20   : > { %372 = vst [vmem:[%s6242_s16 + $0xd0] sm:$0xff] %v371_v26   ;;  %v383_v29 = vld [vmem:[%s6237_s15 + $0x198] sm:$0xff]   ;;  %376 = vst [vmem:[%s6242_s16 + $0xd8] sm:$0xff] %v375_v27   ;;  %v387_v30 = vld [vmem:[%s6237_s15 + $0x1a0] sm:$0xff]  }
  0x21   : > { %380 = vst [vmem:[%s6242_s16 + $0xe0] sm:$0xff] %v379_v28   ;;  %384 = vst [vmem:[%s6242_s16 + $0xe8] sm:$0xff] %v383_v29   ;;  %v391_v31 = vld [vmem:[%s6237_s15 + $0x1a8] sm:$0xff]   ;;  %v395_v32 = vld [vmem:[%s6237_s15 + $0x1b0] sm:$0xff]  }
  0x22   : > { %388 = vst [vmem:[%s6242_s16 + $0xf0] sm:$0xff] %v387_v30   ;;  %392 = vst [vmem:[%s6242_s16 + $0xf8] sm:$0xff] %v391_v31   ;;  %v399_v33 = vld [vmem:[%s6237_s15 + $0x210] sm:$0xff]   ;;  %v403_v34 = vld [vmem:[%s6237_s15 + $0x218] sm:$0xff]  }
  0x23   : > { %396 = vst [vmem:[%s6242_s16 + $0x100] sm:$0xff] %v395_v32   ;;  %v407_v35 = vld [vmem:[%s6237_s15 + $0x220] sm:$0xff]   ;;  %400 = vst [vmem:[%s6242_s16 + $0x108] sm:$0xff] %v399_v33   ;;  %v411_v36 = vld [vmem:[%s6237_s15 + $0x228] sm:$0xff]  }
  0x24   : > { %404 = vst [vmem:[%s6242_s16 + $0x110] sm:$0xff] %v403_v34   ;;  %408 = vst [vmem:[%s6242_s16 + $0x118] sm:$0xff] %v407_v35   ;;  %v415_v37 = vld [vmem:[%s6237_s15 + $0x230] sm:$0xff]   ;;  %v419_v38 = vld [vmem:[%s6237_s15 + $0x238] sm:$0xff]  }
  0x25   : > { %412 = vst [vmem:[%s6242_s16 + $0x120] sm:$0xff] %v411_v36   ;;  %416 = vst [vmem:[%s6242_s16 + $0x128] sm:$0xff] %v415_v37   ;;  %v423_v39 = vld [vmem:[%s6237_s15 + $0x240] sm:$0xff]   ;;  %v427_v40 = vld [vmem:[%s6237_s15 + $0x248] sm:$0xff]  }
  0x26   : > { %420 = vst [vmem:[%s6242_s16 + $0x130] sm:$0xff] %v419_v38   ;;  %v431_v41 = vld [vmem:[%s6237_s15 + $0x250] sm:$0xff]   ;;  %424 = vst [vmem:[%s6242_s16 + $0x138] sm:$0xff] %v423_v39   ;;  %v435_v42 = vld [vmem:[%s6237_s15 + $0x258] sm:$0xff]  }
  0x27   : > { %428 = vst [vmem:[%s6242_s16 + $0x140] sm:$0xff] %v427_v40   ;;  %432 = vst [vmem:[%s6242_s16 + $0x148] sm:$0xff] %v431_v41   ;;  %v439_v43 = vld [vmem:[%s6237_s15 + $0x260] sm:$0xff]  }
  0x28   : > { %436 = vst [vmem:[%s6242_s16 + $0x150] sm:$0xff] %v435_v42   ;;  %440 = vst [vmem:[%s6242_s16 + $0x158] sm:$0xff] %v439_v43  }
  0x29 PF: > { %p4620_p6 = scmp.ge.s32.totalorder %s6150_s28, 1  ;;  %p640_p7 = scmp.lt.s32.totalorder %s6150_s28, 3 }
  0x2b   : > { %p641_p8 = pnand %p4620_p6, %p640_p7 }
  0x2c   : > { %v5860_v44 = vld [vmem:[%s7346_s1 + $0x40] sm:$0xff] (!%p641_p8)   ;;  %v6152_v46 = vmov (!%p641_p8), 0.0   ;;  %v5863_v48 = vld [vmem:[%s7346_s1 + $0x48] sm:$0xff] (!%p641_p8)   ;;  %vm6153_vm0 = vmmov (!%p641_p8), 0   ;;  %v5866_v51 = vld [vmem:[%s7346_s1 + $0x50] sm:$0xff] (!%p641_p8)   ;;  %s647_s15 = sand.u32 (!%p641_p8), 1, %s6134_s24  }
  0x2d   : > { %644 = sbr.rel (%p641_p8) target bundleno = 744 (0x2e8), region = 85  ;;  %v5861_v45 = vld [vmem:[%s7346_s1] sm:$0xff] (!%p641_p8)   ;;  %5555 = vmatprep.subr.bf16.mxu1 (!%p641_p8), %v6152_v46  ;;  %5210 = vmatprep.subr.bf16.mxu0 (!%p641_p8), %v5860_v44  ;;  %v5864_v49 = vld [vmem:[%s7346_s1 + $0x8] sm:$0xff] (!%p641_p8)   ;;  %v5867_v52 = vld [vmem:[%s7346_s1 + $0x10] sm:$0xff] (!%p641_p8)   ;;  %vm2516_vm1 = vcmask (!%p641_p8), 1040384   ;;  %vm2681_vm8 = vcmask (!%p641_p8), 1043456  }
  0x2e   : > { %v5862_v47 = vld [vmem:[%s7346_s1 + $0x80] sm:$0xff] (!%p641_p8)   ;;  %5211 = vmatpush3.bf16.msra.mxu0 (!%p641_p8), %v5861_v45  ;;  %5571 = vmatprep.mubr.msk.bf16.mxu1 (!%p641_p8), %vm6153_vm0, %v6152_v46  ;;  %v5865_v50 = vld [vmem:[%s7346_s1 + $0x88] sm:$0xff] (!%p641_p8)   ;;  %v5868_v53 = vld [vmem:[%s7346_s1 + $0x90] sm:$0xff] (!%p641_p8)   ;;  %s5817_s20 = smul.u32 (!%p641_p8), 352, %s647_s15  ;;  %vm2517_vm2 = vsmask.f32 (!%p641_p8), 256 }
  0x2f   : > { %5556 = vmatpush3.bf16.msra.mxu1 (!%p641_p8), %v5862_v47  ;;  %5212 = vmatprep.subr.bf16.mxu0 (!%p641_p8), %v5863_v48  ;;  %v5869_v54 = vld [vmem:[%s7346_s1 + $0x58] sm:$0xff] (!%p641_p8)   ;;  %v5872_v57 = vld [vmem:[%s7346_s1 + $0x60] sm:$0xff] (!%p641_p8)   ;;  %v5875_v60 = vld [vmem:[%s7346_s1 + $0x68] sm:$0xff] (!%p641_p8)   ;;  %vm2549_vm4 = vsmask.f32 (!%p641_p8), 7938  ;;  %p683_p9 = scmp.lt.s32.totalorder (!%p641_p8), %s6142_s26, 1 }
  0x30   : > { %5557 = vmatprep.subr.bf16.mxu1 (!%p641_p8), %v6152_v46  ;;  %v5870_v55 = vld [vmem:[%s7346_s1 + $0x18] sm:$0xff] (!%p641_p8)   ;;  %v5873_v58 = vld [vmem:[%s7346_s1 + $0x20] sm:$0xff] (!%p641_p8)   ;;  %v5876_v61 = vld [vmem:[%s7346_s1 + $0x28] sm:$0xff] (!%p641_p8)   ;;  %s6406_s14 = scalar_lea.vmem (!%p641_p8), [#allocation4], %s5817_s20 }
  0x31   : > { %v5871_v56 = vld [vmem:[%s7346_s1 + $0x98] sm:$0xff] (!%p641_p8)   ;;  %v5874_v59 = vld [vmem:[%s7346_s1 + $0xa0] sm:$0xff] (!%p641_p8)   ;;  %v5877_v62 = vld [vmem:[%s7346_s1 + $0xa8] sm:$0xff] (!%p641_p8)  }
  0x32   : > { %5213 = vmatpush3.bf16.msra.mxu0 (!%p641_p8), %v5864_v49  ;;  %v5878_v63 = vld [vmem:[%s7346_s1 + $0x70] sm:$0xff] (!%p641_p8)   ;;  %v5881_v2 = vld [vmem:[%s7346_s1 + $0x78] sm:$0xff] (!%p641_p8)   ;;  %v5888_v13 = vld [vmem:[%s7346_s1 + $0x100] sm:$0xff] (!%p641_p8)  }
  0x33   : > { %5558 = vmatpush3.bf16.msra.mxu1 (!%p641_p8), %v5865_v50  ;;  %5214 = vmatprep.subr.bf16.mxu0 (!%p641_p8), %v5866_v51  ;;  %v5879_v0 = vld [vmem:[%s7346_s1 + $0x30] sm:$0xff] (!%p641_p8)   ;;  %v699_v6 = vld [vmem:[%s6406_s14 + $0x8] sm:$0xf] (!%p641_p8)  ;;  %v700_v7 = vld [vmem:[%s6406_s14 + $0xc] sm:$0x1] (!%p641_p8) }
  0x34   : > { %5559 = vmatprep.subr.bf16.mxu1 %v6152_v46  ;;  %v5880_v1 = vld [vmem:[%s7346_s1 + $0xb0] sm:$0xff]   ;;  %v5882_v9 = vld [vmem:[%s7346_s1 + $0x38] sm:$0xff]   ;;  %v4634_v10 = vcombine.low %v699_v6, %v700_v7  ;;  %v5889_v19 = vld [vmem:[%s7346_s1 + $0xc0] sm:$0xff]   ;;  %s7366_s26 = smov (!%p683_p9, %s6142_s26), 1 }
  0x35   : > { %v5884_v3 = vld [vmem:[%s6406_s14 + $0x58] ss:$8 sps:$4 sm:$0xff]   ;;  %v698_v5 = vld [vmem:[%s6406_s14 + $0x4] sm:$0x1]  ;;  %v5883_v11 = vld [vmem:[%s7346_s1 + $0xb8] sm:$0xff]   ;;  %s5199_s23 = sshll.u32 %s7366_s26, 6 }
  0x36   : > { %5215 = vmatpush3.bf16.msra.mxu0 %v5867_v52  ;;  %v697_v4 = vld [vmem:[%s6406_s14] sm:$0xf]  ;;  %1134 = vmatprep.mubr.bf16.mxu0 %v5884_v3  ;;  %v790_v15 = vshll.u32 %v4634_v10, 16  ;;  %v788_v16 = vshrl.u32 %v4634_v10, 16  ;;  %v5891_v21 = vld [vmem:[%s7346_s1 + $0x108] sm:$0xff]   ;;  %v5890_v23 = vld [vmem:[%s7346_s1 + $0x140] sm:$0xff]   ;;  %s7315_s10 = scalar_lea.vmem %s7352_s7, %s5199_s23 }
  0x37   : > { %5560 = vmatpush3.bf16.msra.mxu1 %v5868_v53  ;;  %5216 = vmatprep.subr.bf16.mxu0 %v5869_v54  ;;  %v4633_v8 = vcombine.low %v697_v4, %v698_v5  ;;  %v4643_v17 = vcombine.low %v697_v4, %v699_v6  ;;  %v5893_v24 = vld [vmem:[%s6406_s14 + $0x68] ss:$8 sps:$4 sm:$0xff]   ;;  %v702_v27 = vld [vmem:[%s6406_s14 + $0x14] sm:$0x1]  ;;  %v703_v28 = vld [vmem:[%s6406_s14 + $0x18] sm:$0xf] }
  0x38   : > { %5561 = vmatprep.subr.bf16.mxu1 %v6152_v46  ;;  %v792_v20 = vrot.slane %v790_v15, 1  ;;  %v701_v25 = vld [vmem:[%s6406_s14 + $0x10] sm:$0xf]  ;;  %v704_v29 = vld [vmem:[%s6406_s14 + $0x1c] sm:$0x1]  ;;  %v5898_v34 = vld [vmem:[%s7346_s1 + $0x110] sm:$0xff]  }
  0x39   : > { %v783_v12 = vshll.u32 %v4633_v8, 16  ;;  %v781_v14 = vshrl.u32 %v4633_v8, 16  ;;  %v5892_v30 = vld [vmem:[%s7346_s1 + $0xc8] sm:$0xff]   ;;  %v4635_v31 = vcombine.low %v701_v25, %v702_v27  ;;  %v4636_v32 = vcombine.low %v703_v28, %v704_v29  ;;  %v5899_v43 = vld [vmem:[%s7346_s1 + $0xd0] sm:$0xff]   ;;  %v5902_v44 = vld [vmem:[%s7346_s1 + $0x118] sm:$0xff]  }
  0x3a   : > { %5217 = vmatpush3.bf16.msra.mxu0 %v5870_v55  ;;  %v793_v26 = vor.u32 %v792_v20, %v788_v16  ;;  %v5897_v39 = vld [vmem:[%s7346_s1 + $0x148] sm:$0xff]   ;;  %v4646_v40 = vcombine.low %v701_v25, %v703_v28  ;;  %v705_v49 = vld [vmem:[%s6406_s14 + $0x20] sm:$0xf]  ;;  %v706_v50 = vld [vmem:[%s6406_s14 + $0x24] sm:$0x1] }
  0x3b   : > { %5562 = vmatpush3.bf16.msra.mxu1 %v5871_v56  ;;  %5218 = vmatprep.subr.bf16.mxu0 %v5872_v57  ;;  %v785_v18 = vrot.slane %v783_v12, 1  ;;  %v797_v35 = vshll.u32 %v4635_v31, 16  ;;  %v804_v36 = vshll.u32 %v4636_v32, 16  ;;  %v795_v37 = vshrl.u32 %v4635_v31, 16  ;;  %v5901_v45 = vld [vmem:[%s6406_s14 + $0x78] ss:$8 sps:$4 sm:$0xff]   ;;  %vm6695_vm3 = vmand %vm2516_vm1, %vm2517_vm2 }
  0x3c   : > { %5563 = vmatprep.subr.bf16.mxu1 %v6152_v46  ;;  %v802_v38 = vshrl.u32 %v4636_v32, 16  ;;  %v707_v51 = vld [vmem:[%s6406_s14 + $0x28] sm:$0xf]  ;;  %v708_v52 = vld [vmem:[%s6406_s14 + $0x2c] sm:$0x1]  ;;  %v5900_v54 = vld [vmem:[%s7346_s1 + $0x150] sm:$0xff]   ;;  %v4637_v55 = vcombine.low %v705_v49, %v706_v50 }
  0x3d   : > { %v786_v22 = vor.u32 %v785_v18, %v781_v14  ;;  %v799_v41 = vrot.slane %v797_v35, 1  ;;  %v806_v42 = vrot.slane %v804_v36, 1  ;;  %v4638_v56 = vcombine.low %v707_v51, %v708_v52  ;;  %v5906_v57 = vld [vmem:[%s7346_s1 + $0xd8] sm:$0xff]   ;;  %v5909_v3 = vld [vmem:[%s7346_s1 + $0xe0] sm:$0xff]   ;;  %v5915_v15 = vld [vmem:[%s7346_s1 + $0x128] sm:$0xff]  }
  0x3e   : > { %5219 = vmatpush3.bf16.msra.mxu0 %v5873_v58  ;;  %v811_v58 = vshll.u32 %v4637_v55, 16  ;;  %v5910_v4 = vld [vmem:[%s6406_s14 + $0x88] ss:$8 sps:$4 sm:$0xff]   ;;  %v710_v8 = vld [vmem:[%s6406_s14 + $0x34] sm:$0x1]  ;;  %v5916_v20 = vld [vmem:[%s7346_s1 + $0xe8] sm:$0xff]  }
  0x3f   : > { %5564 = vmatpush3.bf16.msra.mxu1 %v5874_v59  ;;  %5220 = vmatprep.subr.bf16.mxu0 %v5875_v60  ;;  %v4645_v33 = vcombine.low %v786_v22, %v793_v26  ;;  %v800_v47 = vor.u32 %v799_v41, %v795_v37  ;;  %v807_v48 = vor.u32 %v806_v42, %v802_v38  ;;  %v818_v59 = vshll.u32 %v4638_v56, 16  ;;  %v709_v7 = vld [vmem:[%s6406_s14 + $0x30] sm:$0xf]  ;;  %v5920_v26 = vld [vmem:[%s7346_s1 + $0xf0] sm:$0xff]   ;;  %v715_v32 = vld [vmem:[%s6406_s14 + $0x48] sm:$0xf] }
  0x40   : > { %5565 = vmatprep.subr.bf16.mxu1 %v6152_v46  ;;  %v809_v60 = vshrl.u32 %v4637_v55, 16  ;;  %v5914_v10 = vld [vmem:[%s7346_s1 + $0x160] sm:$0xff]   ;;  %v4639_v12 = vcombine.low %v709_v7, %v710_v8  ;;  %v5919_v28 = vld [vmem:[%s6406_s14 + $0x98] ss:$8 sps:$4 sm:$0xff]   ;;  %v714_v31 = vld [vmem:[%s6406_s14 + $0x44] sm:$0x1] }
  0x41   : > { %v4648_v53 = vcombine.low %v800_v47, %v807_v48  ;;  %v5924_v37 = vld [vmem:[%s7346_s1 + $0x170] sm:$0xff]   ;;  %v5926_v41 = vld [vmem:[%s7346_s1 + $0xf8] sm:$0xff]   ;;  %v4682_v52 = vld [vmem:[%s6406_s14 + $0xb0] sm:$0xf] }
  0x42   : > { %5221 = vmatpush3.bf16.msra.mxu0 %v5876_v61  ;;  %v816_v61 = vshrl.u32 %v4638_v56, 16  ;;  %v825_v16 = vshll.u32 %v4639_v12, 16  ;;  %v4684_v55 = vld [vmem:[%s6406_s14 + $0xb8] sm:$0xf]  ;;  %v4685_v56 = vld [vmem:[%s6406_s14 + $0xbc] sm:$0x1]  ;;  %vm6705_vm5 = vmand %vm2516_vm1, %vm2549_vm4 }
  0x43   : > { %5566 = vmatpush3.bf16.msra.mxu1 %v5877_v62  ;;  %5222 = vmatprep.subr.bf16.mxu0 %v5878_v63  ;;  %v5908_v62 = vld [vmem:[%s7346_s1 + $0x120] sm:$0xff]   ;;  %v4649_v63 = vcombine.low %v705_v49, %v707_v51  ;;  %v4687_v8 = vld [vmem:[%s6406_s14 + $0xc4] sm:$0x1]  ;;  %vm6888_vm9 = vmand %vm2681_vm8, %vm2549_vm4 }
  0x44   : > { %5567 = vmatprep.subr.bf16.mxu1 %v6152_v46  ;;  %v827_v22 = vrot.slane %v825_v16, 1  ;;  %v5932_v49 = vld [vmem:[%s7346_s1 + $0x1c0] sm:$0xff]  }
  0x45   : > { %v5928_v51 = vld [vmem:[%s6406_s14 + $0x108] ss:$8 sps:$4 sm:$0xff]  }
  0x46   : > { %5223 = vmatpush3.bf16.msra.mxu0 %v5879_v0  ;;  %v813_v0 = vrot.slane %v811_v58, 1  ;;  %v4713_v58 = vcombine.low %v4684_v55, %v4685_v56  ;;  %v4696_v56 = vld [vmem:[%s6406_s14 + $0xe8] sm:$0xf] }
  0x47   : > { %5568 = vmatpush3.bf16.msra.mxu1 %v5880_v1  ;;  %5224 = vmatprep.subr.bf16.mxu0 %v5881_v2  ;;  %v820_v1 = vrot.slane %v818_v59, 1  ;;  %v5907_v2 = vld [vmem:[%s7346_s1 + $0x158] sm:$0xff]  }
  0x48   : > { %5569 = vmatprep.subr.bf16.mxu1 %v6152_v46  ;;  %v814_v5 = vor.u32 %v813_v0, %v809_v60 }
  0x49   : > { %v821_v6 = vor.u32 %v820_v1, %v816_v61 }
  0x4a   : > { %5225 = vmatpush3.bf16.msra.mxu0 %v5882_v9  ;;  %v711_v9 = vld [vmem:[%s6406_s14 + $0x38] sm:$0xf] }
  0x4b   : > { %5570 = vmatpush3.bf16.msra.mxu1 %v5883_v11  ;;  %5269 = vmatprep.subr.bf16.mxu0 %v5888_v13  ;;  %v712_v11 = vld [vmem:[%s6406_s14 + $0x3c] sm:$0x1]  ;;  %v4651_v13 = vcombine.low %v814_v5, %v821_v6  ;;  %v5937_v5 = vld [vmem:[%s6406_s14 + $0x118] ss:$8 sps:$4 sm:$0xff]  }
  0x4c   : > { %5591 = vmatprep.subr.bf16.mxu1 %v6152_v46  ;;  %v4640_v14 = vcombine.low %v711_v9, %v712_v11  ;;  %v4686_v6 = vld [vmem:[%s6406_s14 + $0xc0] sm:$0xf]  ;;  %v5935_v11 = vld [vmem:[%s7346_s1 + $0x1c8] sm:$0xff]  }
  0x4d   : > { %1135 = vmatmul.mubr.bf16.vlgmr.msra.gmra.mrb[0].mxu0 %v4643_v17  ;;  %v823_v17 = vshrl.u32 %v4639_v12, 16  ;;  %v4714_v12 = vcombine.low %v4686_v6, %v4687_v8 }
  0x4e   : > { %5270 = vmatpush3.bf16.msra.mxu0 %v5889_v19  ;;  %1142 = vmatprep.mubr.bf16.mxu0 %v5893_v24  ;;  %v832_v18 = vshll.u32 %v4640_v14, 16  ;;  %v830_v19 = vshrl.u32 %v4640_v14, 16  ;;  %v4652_v24 = vcombine.low %v709_v7, %v711_v9  ;;  %v4688_v9 = vld [vmem:[%s6406_s14 + $0xc8] sm:$0xf] }
  0x4f   : > { %5271 = vmatprep.subr.bf16.mxu0 %v5891_v21  ;;  %5572 = vmatmul.mubr.bf16.vlgmr.msra.gmra.mrb[0].mxu1 %v4645_v33  ;;  %v5917_v21 = vld [vmem:[%s7346_s1 + $0x168] sm:$0xff]   ;;  %v828_v27 = vor.u32 %v827_v22, %v823_v17  ;;  %v716_v33 = vld [vmem:[%s6406_s14 + $0x4c] sm:$0x1]  ;;  %v1361_v16 = vshll.u32 %v4714_v12, 16 }
  0x50   : > { %5592 = vmatpush3.bf16.msra.mxu1 %v5890_v23  ;;  %5575 = vmatprep.mubr.msk.bf16.mxu1 %vm6153_vm0, %v6152_v46  ;;  %v5918_v23 = vld [vmem:[%s7346_s1 + $0x130] sm:$0xff]   ;;  %v834_v25 = vrot.slane %v832_v18, 1  ;;  %v4642_v36 = vcombine.low %v715_v32, %v716_v33  ;;  %v1359_v18 = vshrl.u32 %v4714_v12, 16  ;;  %v4693_v33 = vld [vmem:[%s6406_s14 + $0xdc] sm:$0x1] }
  0x51   : > { %5593 = vmatprep.subr.bf16.mxu1 %v6152_v46 }
  0x52   : > { %5272 = vmatpush3.bf16.msra.mxu0 %v5892_v30  ;;  %v835_v29 = vor.u32 %v834_v25, %v830_v19  ;;  %v713_v30 = vld [vmem:[%s6406_s14 + $0x40] sm:$0xf]  ;;  %v846_v42 = vshll.u32 %v4642_v36, 16 }
  0x53   : > { %5273 = vmatprep.subr.bf16.mxu0 %v5898_v34  ;;  %v4641_v34 = vcombine.low %v713_v30, %v714_v31  ;;  %v4655_v47 = vcombine.low %v713_v30, %v715_v32  ;;  %v5943_v25 = vld [vmem:[%s7346_s1 + $0x190] sm:$0xff]   ;;  %v4690_v30 = vld [vmem:[%s6406_s14 + $0xd0] sm:$0xf]  ;;  %v4691_v31 = vld [vmem:[%s6406_s14 + $0xd4] sm:$0x1] }
  0x54   : > { %5594 = vmatpush3.bf16.msra.mxu1 %v5897_v39  ;;  %v4654_v35 = vcombine.low %v828_v27, %v835_v29  ;;  %v848_v48 = vrot.slane %v846_v42, 1  ;;  %v5946_v29 = vld [vmem:[%s7346_s1 + $0x1d8] sm:$0xff]   ;;  %v4692_v32 = vld [vmem:[%s6406_s14 + $0xd8] sm:$0xf] }
  0x55   : > { %1143 = vmatmul.mubr.bf16.gmra.mrb[4].mxu0 %v4646_v40  ;;  %5595 = vmatprep.subr.bf16.mxu1 %v6152_v46  ;;  %v839_v38 = vshll.u32 %v4641_v34, 16  ;;  %v837_v39 = vshrl.u32 %v4641_v34, 16  ;;  %v5925_v40 = vld [vmem:[%s7346_s1 + $0x138] sm:$0xff]  }
  0x56   : > { %5274 = vmatpush3.bf16.msra.mxu0 %v5899_v43  ;;  %1150 = vmatprep.mubr.bf16.mxu0 %v5901_v45  ;;  %v844_v43 = vshrl.u32 %v4642_v36, 16  ;;  %v5927_v45 = vld [vmem:[%s7346_s1 + $0x178] sm:$0xff]   ;;  %v4717_v36 = vcombine.low %v4692_v32, %v4693_v33 }
  0x57   : > { %5275 = vmatprep.subr.bf16.mxu0 %v5902_v44  ;;  %5576 = vmatmul.mubr.bf16.gmra.mrb[4].mxu1 %v4648_v53  ;;  %v841_v44 = vrot.slane %v839_v38, 1  ;;  %v4683_v53 = vld [vmem:[%s6406_s14 + $0xb4] sm:$0x1]  ;;  %v5945_v34 = vld [vmem:[%s6406_s14 + $0x128] ss:$8 sps:$4 sm:$0xff]   ;;  %v5944_v38 = vld [vmem:[%s7346_s1 + $0x210] sm:$0xff]  }
  0x58   : > { %5596 = vmatpush3.bf16.msra.mxu1 %v5900_v54  ;;  %5579 = vmatprep.mubr.msk.bf16.mxu1 %vm6153_vm0, %v6152_v46  ;;  %v849_v54 = vor.u32 %v848_v48, %v844_v43  ;;  %v1380_v42 = vshrl.u32 %v4717_v36, 16  ;;  %v5950_v43 = vld [vmem:[%s7346_s1 + $0x198] sm:$0xff]   ;;  %v5952_v48 = vld [vmem:[%s7346_s1 + $0x1e0] sm:$0xff]  }
  0x59   : > { %5597 = vmatprep.subr.bf16.mxu1 %v6152_v46  ;;  %v842_v50 = vor.u32 %v841_v44, %v837_v39 }
  0x5a   : > { %5276 = vmatpush3.bf16.msra.mxu0 %v5906_v57  ;;  %v4712_v57 = vcombine.low %v4682_v52, %v4683_v53 }
  0x5b   : > { %5277 = vmatprep.subr.bf16.mxu0 %v5908_v62  ;;  %v4657_v59 = vcombine.low %v842_v50, %v849_v54  ;;  %v1354_v62 = vshll.u32 %v4713_v58, 16  ;;  %v5954_v50 = vld [vmem:[%s6406_s14 + $0x138] ss:$8 sps:$4 sm:$0xff]  }
  0x5c   : > { %5598 = vmatpush3.bf16.msra.mxu1 %v5907_v2  ;;  %v1347_v60 = vshll.u32 %v4712_v57, 16  ;;  %v1345_v61 = vshrl.u32 %v4712_v57, 16  ;;  %v5933_v2 = vld [vmem:[%s7346_s1 + $0x180] sm:$0xff]   ;;  %v4694_v54 = vld [vmem:[%s6406_s14 + $0xe0] sm:$0xf] }
  0x5d   : > { %1151 = vmatmul.mubr.bf16.gmra.mrb[8].mxu0 %v4649_v63  ;;  %5599 = vmatprep.subr.bf16.mxu1 %v6152_v46  ;;  %v1352_v63 = vshrl.u32 %v4713_v58, 16  ;;  %v1356_v1 = vrot.slane %v1354_v62, 1  ;;  %v4697_v57 = vld [vmem:[%s6406_s14 + $0xec] sm:$0x1] }
  0x5e   : > { %5278 = vmatpush3.bf16.msra.mxu0 %v5909_v3  ;;  %1158 = vmatprep.mubr.bf16.mxu0 %v5910_v4  ;;  %v1349_v0 = vrot.slane %v1347_v60, 1  ;;  %v4770_v3 = vcombine.low %v4682_v52, %v4684_v55  ;;  %v4695_v55 = vld [vmem:[%s6406_s14 + $0xe4] sm:$0x1]  ;;  %v5959_v60 = vld [vmem:[%s7346_s1 + $0x1e8] sm:$0xff]  }
  0x5f   : > { %5279 = vmatprep.subr.bf16.mxu0 %v5915_v15  ;;  %5580 = vmatmul.mubr.bf16.gmra.mrb[8].mxu1 %v4651_v13  ;;  %v1357_v7 = vor.u32 %v1356_v1, %v1352_v63  ;;  %v5934_v15 = vld [vmem:[%s7346_s1 + $0x200] sm:$0xff]   ;;  %v4718_v58 = vcombine.low %v4694_v54, %v4695_v55  ;;  %v6660_v55 = vld [vmem:[%s6406_s14 + $0x28] sm:$0xf] }
  0x60   : > { %5583 = vmatprep.mubr.msk.bf16.mxu1 %vm6153_vm0, %v6152_v46  ;;  %5600 = vmatpush3.bf16.msra.mxu1 %v5914_v10  ;;  %v1350_v4 = vor.u32 %v1349_v0, %v1345_v61  ;;  %v4689_v10 = vld [vmem:[%s6406_s14 + $0xcc] sm:$0x1]  ;;  %v5958_v1 = vld [vmem:[%s7346_s1 + $0x220] sm:$0xff]  }
  0x61   : > { %5601 = vmatprep.subr.bf16.mxu1 %v6152_v46  ;;  %v4715_v13 = vcombine.low %v4688_v9, %v4689_v10  ;;  %v1389_v62 = vshll.u32 %v4718_v58, 16  ;;  %v1387_v63 = vshrl.u32 %v4718_v58, 16  ;;  %v5964_v10 = vld [vmem:[%s7346_s1 + $0x1b0] sm:$0xff]  }
  0x62   : > { %5280 = vmatpush3.bf16.msra.mxu0 %v5916_v20  ;;  %v4772_v14 = vcombine.low %v1350_v4, %v1357_v7  ;;  %v5936_v20 = vld [vmem:[%s7346_s1 + $0x188] sm:$0xff]   ;;  %v5962_v7 = vld [vmem:[%s7346_s1 + $0x1f0] sm:$0xff]  }
  0x63   : > { %5281 = vmatprep.subr.bf16.mxu0 %v5918_v23  ;;  %v1368_v17 = vshll.u32 %v4715_v13, 16  ;;  %v1366_v19 = vshrl.u32 %v4715_v13, 16  ;;  %v5941_v23 = vld [vmem:[%s7346_s1 + $0x208] sm:$0xff]   ;;  %v4698_v13 = vld [vmem:[%s6406_s14 + $0xf0] sm:$0xf] }
  0x64   : > { %5602 = vmatpush3.bf16.msra.mxu1 %v5917_v21  ;;  %v1363_v21 = vrot.slane %v1361_v16, 1  ;;  %v5960_v4 = vld [vmem:[%s7346_s1 + $0x1a8] sm:$0xff]  }
  0x65   : > { %1159 = vmatmul.mubr.bf16.gmra.mrb[12].mxu0 %v4652_v24  ;;  %5603 = vmatprep.subr.bf16.mxu1 %v6152_v46  ;;  %v1370_v22 = vrot.slane %v1368_v17, 1  ;;  %v5942_v24 = vld [vmem:[%s7346_s1 + $0x1d0] sm:$0xff]   ;;  %v4701_v16 = vld [vmem:[%s6406_s14 + $0xfc] sm:$0x1] }
  0x66   : > { %1166 = vmatprep.mubr.bf16.mxu0 %v5919_v28  ;;  %5282 = vmatpush3.bf16.msra.mxu0 %v5920_v26  ;;  %v4773_v26 = vcombine.low %v4686_v6, %v4688_v9  ;;  %v1364_v27 = vor.u32 %v1363_v21, %v1359_v18  ;;  %v5961_v6 = vld [vmem:[%s7346_s1 + $0x228] sm:$0xff]   ;;  %v5963_v9 = vld [vmem:[%s6406_s14 + $0x148] ss:$8 sps:$4 sm:$0xff]  }
  0x67   : > { %5584 = vmatmul.mubr.bf16.gmra.mrb[12].mxu1 %v4654_v35  ;;  %5283 = vmatprep.subr.bf16.mxu0 %v5925_v40  ;;  %v1371_v28 = vor.u32 %v1370_v22, %v1366_v19  ;;  %v4716_v35 = vcombine.low %v4690_v30, %v4691_v31  ;;  %v1382_v40 = vshll.u32 %v4717_v36, 16  ;;  %v5968_v22 = vld [vmem:[%s7346_s1 + $0x230] sm:$0xff]   ;;  %v4809_v31 = vld [vmem:[%s6406_s14 + $0x8] sm:$0xf]  ;;  %v4812_v36 = vld [vmem:[%s6406_s14 + $0x14] sm:$0x1] }
  0x68   : > { %5587 = vmatprep.mubr.msk.bf16.mxu1 %vm6153_vm0, %v6152_v46  ;;  %5604 = vmatpush3.bf16.msra.mxu1 %v5924_v37 }
  0x69   : > { %5605 = vmatprep.subr.bf16.mxu1 %v6152_v46  ;;  %v4775_v37 = vcombine.low %v1364_v27, %v1371_v28  ;;  %v1375_v39 = vshll.u32 %v4716_v35, 16  ;;  %v5970_v27 = vld [vmem:[%s7346_s1 + $0x1b8] sm:$0xff]  }
  0x6a   : > { %5284 = vmatpush3.bf16.msra.mxu0 %v5926_v41  ;;  %v1373_v41 = vshrl.u32 %v4716_v35, 16  ;;  %v4811_v35 = vld [vmem:[%s6406_s14 + $0x10] sm:$0xf] }
  0x6b   : > { %5328 = vmatprep.subr.bf16.mxu0 %v5932_v49  ;;  %v1377_v44 = vrot.slane %v1375_v39, 1  ;;  %v5953_v49 = vld [vmem:[%s7346_s1 + $0x1a0] sm:$0xff]   ;;  %v4840_v39 = vcombine.low %v4811_v35, %v4812_v36 }
  0x6c   : > { %5606 = vmatpush3.bf16.msra.mxu1 %v5927_v45  ;;  %v1384_v45 = vrot.slane %v1382_v40, 1  ;;  %v6650_v40 = vld [vmem:[%s6406_s14 + $0x18] sm:$0xf] }
  0x6d   : > { %1167 = vmatmul.mubr.bf16.gmra.mrb[16].mxu0 %v4655_v47  ;;  %5627 = vmatprep.subr.bf16.mxu1 %v6152_v46  ;;  %v5951_v47 = vld [vmem:[%s7346_s1 + $0x218] sm:$0xff]   ;;  %v1378_v52 = vor.u32 %v1377_v44, %v1373_v41  ;;  %v6654_v44 = vld [vmem:[%s6406_s14 + $0x20] sm:$0xf] }
  0x6e   : > { %1699 = vmatprep.mubr.bf16.mxu0 %v5928_v51  ;;  %v4776_v51 = vcombine.low %v4690_v30, %v4692_v32  ;;  %v1385_v53 = vor.u32 %v1384_v45, %v1380_v42  ;;  %v5971_v30 = vld [vmem:[%s7346_s1 + $0x238] sm:$0xff]  }
  0x6f   : > { %5588 = vmatmul.mubr.bf16.gmra.mrb[16].mxu1 %v4657_v59  ;;  %v4719_v59 = vcombine.low %v4696_v56, %v4697_v57  ;;  %v4810_v32 = vld [vmem:[%s6406_s14 + $0xc] sm:$0x1]  ;;  %v6664_v57 = vld [vmem:[%s6406_s14 + $0x30] sm:$0xf] }
  0x70   : > { %5607 = vmatprep.mubr.msk.bf16.mxu1 %vm6153_vm0, %v6152_v46  ;;  %v4778_v61 = vcombine.low %v1378_v52, %v1385_v53 }
  0x71   : > { %v1396_v0 = vshll.u32 %v4719_v59, 16 }
  0x75   : > { %1700 = vmatmul.mubr.bf16.vlgmr.msra.gmra.mrb[20].mxu0 %v4770_v3  ;;  %v1391_v3 = vrot.slane %v1389_v62, 1 }
  0x76   : > { %5329 = vmatpush3.bf16.msra.mxu0 %v5933_v2  ;;  %1707 = vmatprep.mubr.bf16.mxu0 %v5937_v5  ;;  %v1394_v2 = vshrl.u32 %v4719_v59, 16  ;;  %v1398_v5 = vrot.slane %v1396_v0, 1  ;;  %v5976_v0 = vld [vmem:[%s6406_s14 + $0x70] ss:$8 sps:$4 sm:$0xff]  }
  0x77   : > { %5330 = vmatprep.subr.bf16.mxu0 %v5935_v11  ;;  %5608 = vmatmul.mubr.bf16.vlgmr.msra.gmra.mrb[20].mxu1 %v4772_v14  ;;  %v1392_v8 = vor.u32 %v1391_v3, %v1387_v63  ;;  %v4779_v11 = vcombine.low %v4694_v54, %v4696_v56  ;;  %v4699_v14 = vld [vmem:[%s6406_s14 + $0xf4] sm:$0x1]  ;;  %v4818_v56 = vld [vmem:[%s6406_s14 + $0x2c] sm:$0x1]  ;;  %v4897_v63 = vcombine.low %v4809_v31, %v4811_v35 }
  0x78   : > { %5628 = vmatpush3.bf16.msra.mxu1 %v5934_v15  ;;  %5611 = vmatprep.mubr.msk.bf16.mxu1 %vm6153_vm0, %v6152_v46  ;;  %v1399_v12 = vor.u32 %v1398_v5, %v1394_v2  ;;  %v4700_v15 = vld [vmem:[%s6406_s14 + $0xf8] sm:$0xf]  ;;  %v4720_v17 = vcombine.low %v4698_v13, %v4699_v14  ;;  %v4843_v62 = vcombine.low %v6660_v55, %v4818_v56  ;;  %v4822_v5 = vld [vmem:[%s6406_s14 + $0x3c] sm:$0x1] }
  0x79   : > { %5629 = vmatprep.subr.bf16.mxu1 %v6152_v46  ;;  %v4721_v18 = vcombine.low %v4700_v15, %v4701_v16  ;;  %v4782_v33 = vcombine.low %v4698_v13, %v4700_v15 }
  0x7a   : > { %5331 = vmatpush3.bf16.msra.mxu0 %v5936_v20  ;;  %v4781_v19 = vcombine.low %v1392_v8, %v1399_v12  ;;  %v1403_v20 = vshll.u32 %v4720_v17, 16  ;;  %v1401_v21 = vshrl.u32 %v4720_v17, 16  ;;  %v4823_v8 = vld [vmem:[%s6406_s14 + $0x40] sm:$0xf]  ;;  %v1959_v15 = vshrl.u32 %v4843_v62, 16 }
  0x7b   : > { %5332 = vmatprep.subr.bf16.mxu0 %v5942_v24  ;;  %v1410_v24 = vshll.u32 %v4721_v18, 16 }
  0x7c   : > { %5630 = vmatpush3.bf16.msra.mxu1 %v5941_v23  ;;  %v5969_v23 = vld [vmem:[%s7346_s1 + $0x1f8] sm:$0xff]  }
  0x7d   : > { %1708 = vmatmul.mubr.bf16.gmra.mrb[24].mxu0 %v4773_v26  ;;  %5631 = vmatprep.subr.bf16.mxu1 %v6152_v46  ;;  %v1405_v26 = vrot.slane %v1403_v20, 1  ;;  %v1412_v28 = vrot.slane %v1410_v24, 1  ;;  %v4826_v20 = vld [vmem:[%s6406_s14 + $0x4c] sm:$0x1]  ;;  %v4827_v24 = vld [vmem:[%s6406_s14 + $0x50] sm:$0xf] }
  0x7e   : > { %5333 = vmatpush3.bf16.msra.mxu0 %v5943_v25  ;;  %1715 = vmatprep.mubr.bf16.mxu0 %v5945_v34  ;;  %v1408_v25 = vshrl.u32 %v4721_v18, 16 }
  0x7f   : > { %5334 = vmatprep.subr.bf16.mxu0 %v5946_v29  ;;  %5612 = vmatmul.mubr.bf16.gmra.mrb[24].mxu1 %v4775_v37  ;;  %v1406_v29 = vor.u32 %v1405_v26, %v1401_v21  ;;  %v4839_v37 = vcombine.low %v4809_v31, %v4810_v32  ;;  %v4900_v32 = vcombine.low %v6650_v40, %v6654_v44 }
  0x80   : > { %5632 = vmatpush3.bf16.msra.mxu1 %v5944_v38  ;;  %5615 = vmatprep.mubr.msk.bf16.mxu1 %vm6153_vm0, %v6152_v46  ;;  %v1413_v34 = vor.u32 %v1412_v28, %v1408_v25  ;;  %v5972_v38 = vld [vmem:[%s6406_s14 + $0x60] ss:$8 sps:$4 sm:$0xff]   ;;  %v4828_v25 = vld [vmem:[%s6406_s14 + $0x54] sm:$0x1] }
  0x81   : > { %5633 = vmatprep.subr.bf16.mxu1 %v6152_v46  ;;  %v1933_v41 = vshll.u32 %v4839_v37, 16  ;;  %v1931_v42 = vshrl.u32 %v4839_v37, 16  ;;  %v5980_v28 = vld [vmem:[%s6406_s14 + $0x80] ss:$8 sps:$4 sm:$0xff]   ;;  %v4848_v31 = vcombine.low %v4827_v24, %v4828_v25  ;;  %v2566_v25 = vld [vmem:[#allocation2 + $0x2c] sm:$0x1] }
  0x82   : > { %5335 = vmatpush3.bf16.msra.mxu0 %v5950_v43  ;;  %v4814_v43 = vld [vmem:[%s6406_s14 + $0x1c] sm:$0x1]  ;;  %v4784_v45 = vcombine.low %v1406_v29, %v1413_v34 }
  0x83   : > { %5336 = vmatprep.subr.bf16.mxu0 %v5952_v48  ;;  %v1938_v48 = vshrl.u32 %v4840_v39, 16  ;;  %v1996_v36 = vshll.u32 %v4848_v31, 16 }
  0x84   : > { %5634 = vmatpush3.bf16.msra.mxu1 %v5951_v47  ;;  %v1940_v47 = vshll.u32 %v4840_v39, 16 }
  0x85   : > { %1716 = vmatmul.mubr.bf16.gmra.mrb[28].mxu0 %v4776_v51  ;;  %5635 = vmatprep.subr.bf16.mxu1 %v6152_v46  ;;  %v1935_v51 = vrot.slane %v1933_v41, 1 }
  0x86   : > { %5337 = vmatpush3.bf16.msra.mxu0 %v5953_v49  ;;  %1723 = vmatprep.mubr.bf16.mxu0 %v5954_v50  ;;  %v4816_v49 = vld [vmem:[%s6406_s14 + $0x24] sm:$0x1]  ;;  %v4841_v50 = vcombine.low %v6650_v40, %v4814_v43  ;;  %v1942_v53 = vrot.slane %v1940_v47, 1  ;;  %v5984_v40 = vld [vmem:[%s6406_s14 + $0x90] ss:$8 sps:$4 sm:$0xff]  }
  0x87   : > { %5338 = vmatprep.subr.bf16.mxu0 %v5959_v60  ;;  %5616 = vmatmul.mubr.bf16.gmra.mrb[28].mxu1 %v4778_v61  ;;  %v4842_v52 = vcombine.low %v6654_v44, %v4816_v49  ;;  %v1936_v58 = vor.u32 %v1935_v51, %v1931_v42  ;;  %v4820_v61 = vld [vmem:[%s6406_s14 + $0x34] sm:$0x1]  ;;  %v1998_v42 = vrot.slane %v1996_v36, 1  ;;  %v4903_v44 = vcombine.low %v6660_v55, %v6664_v57  ;;  %v6010_v36 = vld [vmem:[%s7348_s3 + $0xb0] sm:$0xff]  }
  0x88   : > { %5619 = vmatprep.mubr.msk.bf16.mxu1 %vm6153_vm0, %v6152_v46  ;;  %5636 = vmatpush3.bf16.msra.mxu1 %v5958_v1  ;;  %v1947_v54 = vshll.u32 %v4841_v50, 16  ;;  %v1943_v59 = vor.u32 %v1942_v53, %v1938_v48  ;;  %v4844_v1 = vcombine.low %v6664_v57, %v4820_v61  ;;  %v1945_v2 = vshrl.u32 %v4841_v50, 16  ;;  %v5988_v50 = vld [vmem:[%s6406_s14 + $0xa0] ss:$8 sps:$4 sm:$0xff]   ;;  %v2519_v57 = vld [vmem:[#allocation2] sm:$0x1] }
  0x89   : > { %5637 = vmatprep.subr.bf16.mxu1 %v6152_v46  ;;  %v1954_v60 = vshll.u32 %v4842_v52, 16  ;;  %v1952_v12 = vshrl.u32 %v4842_v52, 16  ;;  %v2520_v61 = vsel %vm6695_vm3, 0, %v2519_v57 }
  0x8a   : > { %5339 = vmatpush3.bf16.msra.mxu0 %v5960_v4  ;;  %v1949_v3 = vrot.slane %v1947_v54, 1  ;;  %v4821_v4 = vld [vmem:[%s6406_s14 + $0x38] sm:$0xf]  ;;  %v1966_v17 = vshrl.u32 %v4844_v1, 16  ;;  %2521 = vst [vmem:[#allocation2] sm:$0x1] %v2520_v61 }
  0x8b   : > { %5340 = vmatprep.subr.bf16.mxu0 %v5962_v7  ;;  %v1968_v7 = vshll.u32 %v4844_v1, 16  ;;  %v1956_v13 = vrot.slane %v1954_v60, 1  ;;  %v4906_v51 = vcombine.low %v4821_v4, %v4823_v8  ;;  %v5994_v60 = vld [vmem:[%s7348_s3 + $0x80] sm:$0xff]  }
  0x8c   : > { %5638 = vmatpush3.bf16.msra.mxu1 %v5961_v6  ;;  %v1961_v6 = vshll.u32 %v4843_v62, 16  ;;  %v1950_v21 = vor.u32 %v1949_v3, %v1945_v2  ;;  %v5997_v3 = vld [vmem:[%s7348_s3 + $0x88] sm:$0xff]  }
  0x8d   : > { %1724 = vmatmul.mubr.bf16.gmra.mrb[32].mxu0 %v4779_v11  ;;  %5639 = vmatprep.subr.bf16.mxu1 %v6152_v46  ;;  %v4899_v11 = vcombine.low %v1936_v58, %v1943_v59  ;;  %v2551_v59 = vld [vmem:[#allocation2 + $0x4] sm:$0x1] }
  0x8e   : > { %1731 = vmatprep.mubr.bf16.mxu0 %v5963_v9  ;;  %5341 = vmatpush3.bf16.msra.mxu0 %v5964_v10  ;;  %v4824_v9 = vld [vmem:[%s6406_s14 + $0x44] sm:$0x1]  ;;  %v4845_v10 = vcombine.low %v4821_v4, %v4822_v5  ;;  %v2552_v62 = vsel %vm6705_vm5, 0, %v2551_v59  ;;  %v5992_v4 = vld [vmem:[%s7348_s3 + $0x40] sm:$0xff]   ;;  %v2546_v59 = vld [vmem:[#allocation2 + $0x48] sm:$0x1] }
  0x8f   : > { %5342 = vmatprep.subr.bf16.mxu0 %v5969_v23  ;;  %5620 = vmatmul.mubr.bf16.gmra.mrb[32].mxu1 %v4781_v19  ;;  %v4846_v14 = vcombine.low %v4823_v8, %v4824_v9  ;;  %v4825_v19 = vld [vmem:[%s6406_s14 + $0x48] sm:$0xf]  ;;  %v1970_v23 = vrot.slane %v1968_v7, 1  ;;  %2553 = vst [vmem:[#allocation2 + $0x4] sm:$0x1] %v2552_v62  ;;  %v5993_v5 = vld [vmem:[%s7348_s3] sm:$0xff]  }
  0x90   : > { %5623 = vmatprep.mubr.msk.bf16.mxu1 %vm6153_vm0, %v6152_v46  ;;  %5640 = vmatpush3.bf16.msra.mxu1 %v5968_v22  ;;  %v1975_v16 = vshll.u32 %v4845_v10, 16  ;;  %v1963_v22 = vrot.slane %v1961_v6, 1  ;;  %v4847_v26 = vcombine.low %v4825_v19, %v4826_v20  ;;  %v1973_v29 = vshrl.u32 %v4845_v10, 16  ;;  %v2525_v6 = vld [vmem:[#allocation2 + $0x10] sm:$0x1]  ;;  %v6044_v58 = vld [vmem:[%s7348_s3 + $0xe0] sm:$0xff]  }
  0x91   : > { %5641 = vmatprep.subr.bf16.mxu1 %v6152_v46  ;;  %v1982_v18 = vshll.u32 %v4846_v14, 16  ;;  %v4909_v55 = vcombine.low %v4825_v19, %v4827_v24  ;;  %v2557_v7 = vld [vmem:[#allocation2 + $0x14] sm:$0x1]  ;;  %v2526_v9 = vsel %vm6695_vm3, 0, %v2525_v6  ;;  %v2531_v20 = vld [vmem:[#allocation2 + $0x20] sm:$0x1] }
  0x92   : > { %5343 = vmatpush3.bf16.msra.mxu0 %v5970_v27  ;;  %v1957_v27 = vor.u32 %v1956_v13, %v1952_v12  ;;  %v1989_v34 = vshll.u32 %v4847_v26, 16  ;;  %v1987_v37 = vshrl.u32 %v4847_v26, 16  ;;  %v1964_v43 = vor.u32 %v1963_v22, %v1959_v15  ;;  %v6000_v8 = vld [vmem:[%s7348_s3 + $0x90] sm:$0xff]   ;;  %2527 = vst [vmem:[#allocation2 + $0x10] sm:$0x1] %v2526_v9  ;;  %v6001_v26 = vld [vmem:[%s7348_s3 + $0x58] sm:$0xff]  }
  0x93   : > { %v1984_v35 = vrot.slane %v1982_v18, 1  ;;  %5387 = vmatprep.subr.bf16.mxu0 %v5992_v4  ;;  %v2558_v10 = vsel %vm6705_vm5, 0, %v2557_v7  ;;  %v2528_v12 = vld [vmem:[#allocation2 + $0x18] sm:$0x1]  ;;  %v2560_v13 = vld [vmem:[#allocation2 + $0x1c] sm:$0x1] }
  0x94   : > { %5642 = vmatpush3.bf16.msra.mxu1 %v5971_v30  ;;  %v1980_v30 = vshrl.u32 %v4846_v14, 16  ;;  %v4902_v39 = vcombine.low %v1950_v21, %v1957_v27  ;;  %v1991_v41 = vrot.slane %v1989_v34, 1  ;;  %2559 = vst [vmem:[#allocation2 + $0x14] sm:$0x1] %v2558_v10  ;;  %v2529_v14 = vsel %vm6695_vm3, 0, %v2528_v12  ;;  %v5998_v18 = vld [vmem:[%s7348_s3 + $0x50] sm:$0xff]  }
  0x95   : > { %1732 = vmatmul.mubr.bf16.gmra.mrb[36].mxu0 %v4782_v33  ;;  %v1977_v33 = vrot.slane %v1975_v16, 1  ;;  %5663 = vmatprep.subr.bf16.mxu1 %v5994_v60  ;;  %v2561_v15 = vsel %vm6705_vm5, 0, %v2560_v13  ;;  %2530 = vst [vmem:[#allocation2 + $0x18] sm:$0x1] %v2529_v14  ;;  %v5996_v16 = vld [vmem:[%s7348_s3 + $0x8] sm:$0xff]   ;;  %v5999_v19 = vld [vmem:[%s7348_s3 + $0x10] sm:$0xff]  }
  0x96   : > { %2285 = vmatprep.mubr.bf16.mxu0 %v5972_v38  ;;  %v1994_v38 = vshrl.u32 %v4848_v31, 16  ;;  %v1985_v49 = vor.u32 %v1984_v35, %v1980_v30  ;;  %v1992_v53 = vor.u32 %v1991_v41, %v1987_v37  ;;  %2562 = vst [vmem:[#allocation2 + $0x1c] sm:$0x1] %v2561_v15  ;;  %v2563_v21 = vld [vmem:[#allocation2 + $0x24] sm:$0x1]  ;;  %v2532_v22 = vsel %vm6695_vm3, 0, %v2531_v20 }
  0x97   : > { %5624 = vmatmul.mubr.bf16.gmra.mrb[36].mxu1 %v4784_v45  ;;  %v1971_v45 = vor.u32 %v1970_v23, %v1966_v17  ;;  %v1978_v48 = vor.u32 %v1977_v33, %v1973_v29  ;;  %v6002_v17 = vld [vmem:[%s7348_s3 + $0x98] sm:$0xff]   ;;  %v2564_v23 = vsel %vm6705_vm5, 0, %v2563_v21  ;;  %2533 = vst [vmem:[#allocation2 + $0x20] sm:$0x1] %v2532_v22  ;;  %v2534_v24 = vld [vmem:[#allocation2 + $0x28] sm:$0x1] }
  0x98   : > { %5643 = vmatprep.mubr.msk.bf16.mxu1 %vm6153_vm0, %v6152_v46  ;;  %v1999_v54 = vor.u32 %v1998_v42, %v1994_v38  ;;  %2565 = vst [vmem:[#allocation2 + $0x24] sm:$0x1] %v2564_v23  ;;  %v2535_v27 = vsel %vm6695_vm3, 0, %v2534_v24  ;;  %v6003_v29 = vld [vmem:[%s7348_s3 + $0x18] sm:$0xff]   ;;  %v6004_v30 = vld [vmem:[%s7348_s3 + $0xa0] sm:$0xff]   ;;  %v6007_v31 = vld [vmem:[%s7348_s3 + $0xa8] sm:$0xff]  }
  0x99   : > { %v4905_v47 = vcombine.low %v1964_v43, %v1971_v45  ;;  %v4908_v52 = vcombine.low %v1978_v48, %v1985_v49  ;;  %2536 = vst [vmem:[#allocation2 + $0x28] sm:$0x1] %v2535_v27  ;;  %v6006_v33 = vld [vmem:[%s7348_s3 + $0x20] sm:$0xff]   ;;  %v2537_v34 = vld [vmem:[#allocation2 + $0x30] sm:$0x1]  ;;  %v6008_v42 = vld [vmem:[%s7348_s3 + $0x68] sm:$0xff]  }
  0x9a   : > { %v4911_v56 = vcombine.low %v1992_v53, %v1999_v54  ;;  %v2569_v35 = vld [vmem:[#allocation2 + $0x34] sm:$0x1]  ;;  %v2538_v37 = vsel %vm6695_vm3, 0, %v2537_v34  ;;  %v2572_v41 = vld [vmem:[#allocation2 + $0x3c] sm:$0x1]  ;;  %v6023_v20 = vld [vmem:[%s7348_s3 + $0x100] sm:$0xff]  }
  0x9b   : > { %v2570_v38 = vsel %vm6705_vm5, 0, %v2569_v35  ;;  %2539 = vst [vmem:[#allocation2 + $0x30] sm:$0x1] %v2538_v37  ;;  %v2573_v45 = vsel %vm6705_vm5, 0, %v2572_v41  ;;  %v6012_v48 = vld [vmem:[%s7348_s3 + $0x30] sm:$0xff]   ;;  %v6014_v4 = vld [vmem:[%s7348_s3 + $0x78] sm:$0xff]  }
  0x9c   : > { %2571 = vst [vmem:[#allocation2 + $0x34] sm:$0x1] %v2570_v38  ;;  %2574 = vst [vmem:[#allocation2 + $0x3c] sm:$0x1] %v2573_v45 }
  0x9d   : > { %2286 = vmatmul.mubr.bf16.vlgmr.msra.gmra.mrb[40].mxu0 %v4897_v63  ;;  %v2522_v63 = vld [vmem:[#allocation2 + $0x8] sm:$0x1] }
  0x9e   : > { %2293 = vmatprep.mubr.bf16.mxu0 %v5976_v0  ;;  %v2554_v0 = vld [vmem:[#allocation2 + $0xc] sm:$0x1]  ;;  %v2523_v1 = vsel %vm6695_vm3, 0, %v2522_v63  ;;  %5388 = vmatpush3.bf16.msra.mxu0 %v5993_v5  ;;  %v6018_v5 = vld [vmem:[%s7348_s3 + $0x38] sm:$0xff]  }
  0x9f   : > { %5644 = vmatmul.mubr.bf16.vlgmr.msra.gmra.mrb[40].mxu1 %v4899_v11  ;;  %v2555_v2 = vsel %vm6705_vm5, 0, %v2554_v0  ;;  %2524 = vst [vmem:[#allocation2 + $0x8] sm:$0x1] %v2523_v1  ;;  %v5995_v11 = vld [vmem:[%s7348_s3 + $0x48] sm:$0xff]  }
  0xa0   : > { %5647 = vmatprep.mubr.msk.bf16.mxu1 %vm6153_vm0, %v6152_v46  ;;  %5664 = vmatpush3.bf16.msra.mxu1 %v5994_v60  ;;  %2556 = vst [vmem:[#allocation2 + $0xc] sm:$0x1] %v2555_v2  ;;  %v2578_v60 = vld [vmem:[#allocation2 + $0x4c] sm:$0x1]  ;;  %v2547_v2 = vsel %vm6695_vm3, 0, %v2546_v59 }
  0xa1   : > { %5665 = vmatprep.subr.bf16.mxu1 %v5997_v3  ;;  %5389 = vmatprep.subr.bf16.mxu0 %v5995_v11  ;;  %2548 = vst [vmem:[#allocation2 + $0x48] sm:$0x1] %v2547_v2 }
  0xa2   : > { %5390 = vmatpush3.bf16.msra.mxu0 %v5996_v16 }
  0xa3   : > { %5391 = vmatprep.subr.bf16.mxu0 %v5998_v18 }
  0xa4   : > { %5666 = vmatpush3.bf16.msra.mxu1 %v5997_v3  ;;  %v2579_v3 = vsel %vm6705_vm5, 0, %v2578_v60 }
  0xa5   : > { %2294 = vmatmul.mubr.bf16.gmra.mrb[44].mxu0 %v4900_v32  ;;  %5667 = vmatprep.subr.bf16.mxu1 %v6000_v8  ;;  %v6005_v32 = vld [vmem:[%s7348_s3 + $0x60] sm:$0xff]   ;;  %2580 = vst [vmem:[#allocation2 + $0x4c] sm:$0x1] %v2579_v3 }
  0xa6   : > { %2301 = vmatprep.mubr.bf16.mxu0 %v5980_v28  ;;  %5392 = vmatpush3.bf16.msra.mxu0 %v5999_v19  ;;  %v2567_v28 = vsel %vm6705_vm5, 0, %v2566_v25 }
  0xa7   : > { %5648 = vmatmul.mubr.bf16.gmra.mrb[44].mxu1 %v4902_v39  ;;  %2568 = vst [vmem:[#allocation2 + $0x2c] sm:$0x1] %v2567_v28  ;;  %5393 = vmatprep.subr.bf16.mxu0 %v6001_v26  ;;  %v2540_v39 = vld [vmem:[#allocation2 + $0x38] sm:$0x1] }
  0xa8   : > { %5651 = vmatprep.mubr.msk.bf16.mxu1 %vm6153_vm0, %v6152_v46  ;;  %5668 = vmatpush3.bf16.msra.mxu1 %v6000_v8  ;;  %v2541_v43 = vsel %vm6695_vm3, 0, %v2540_v39 }
  0xa9   : > { %5669 = vmatprep.subr.bf16.mxu1 %v6002_v17  ;;  %2542 = vst [vmem:[#allocation2 + $0x38] sm:$0x1] %v2541_v43 }
  0xaa   : > { %5394 = vmatpush3.bf16.msra.mxu0 %v6003_v29 }
  0xab   : > { %5395 = vmatprep.subr.bf16.mxu0 %v6005_v32 }
  0xac   : > { %5670 = vmatpush3.bf16.msra.mxu1 %v6002_v17 }
  0xad   : > { %2302 = vmatmul.mubr.bf16.gmra.mrb[48].mxu0 %v4903_v44  ;;  %5671 = vmatprep.subr.bf16.mxu1 %v6004_v30  ;;  %v6013_v44 = vld [vmem:[%s7348_s3 + $0xb8] sm:$0xff]  }
  0xae   : > { %2309 = vmatprep.mubr.bf16.mxu0 %v5984_v40  ;;  %5396 = vmatpush3.bf16.msra.mxu0 %v6006_v33  ;;  %v6009_v40 = vld [vmem:[%s7348_s3 + $0x28] sm:$0xff]  }
  0xaf   : > { %5652 = vmatmul.mubr.bf16.gmra.mrb[48].mxu1 %v4905_v47  ;;  %5397 = vmatprep.subr.bf16.mxu0 %v6008_v42  ;;  %v6011_v47 = vld [vmem:[%s7348_s3 + $0x70] sm:$0xff]  }
  0xb0   : > { %5655 = vmatprep.mubr.msk.bf16.mxu1 %vm6153_vm0, %v6152_v46  ;;  %5672 = vmatpush3.bf16.msra.mxu1 %v6004_v30 }
  0xb1   : > { %5673 = vmatprep.subr.bf16.mxu1 %v6007_v31 }
  0xb2   : > { %5398 = vmatpush3.bf16.msra.mxu0 %v6009_v40 }
  0xb3   : > { %5399 = vmatprep.subr.bf16.mxu0 %v6011_v47 }
  0xb4   : > { %5674 = vmatpush3.bf16.msra.mxu1 %v6007_v31 }
  0xb5   : > { %2310 = vmatmul.mubr.bf16.gmra.mrb[52].mxu0 %v4906_v51  ;;  %5675 = vmatprep.subr.bf16.mxu1 %v6010_v36  ;;  %v2575_v51 = vld [vmem:[#allocation2 + $0x44] sm:$0x1] }
  0xb6   : > { %2317 = vmatprep.mubr.bf16.mxu0 %v5988_v50  ;;  %v2543_v50 = vld [vmem:[#allocation2 + $0x40] sm:$0x1]  ;;  %5400 = vmatpush3.bf16.msra.mxu0 %v6012_v48  ;;  %v2576_v57 = vsel %vm6705_vm5, 0, %v2575_v51 }
  0xb7   : > { %5656 = vmatmul.mubr.bf16.gmra.mrb[52].mxu1 %v4908_v52  ;;  %v6805_v52 = vld [vmem:[%s7348_s3 + $0x140] sm:$0xff]   ;;  %v2544_v54 = vsel %vm6695_vm3, 0, %v2543_v50  ;;  %2577 = vst [vmem:[#allocation2 + $0x44] sm:$0x1] %v2576_v57  ;;  %5401 = vmatprep.subr.bf16.mxu0 %v6014_v4 }
  0xb8   : > { %5659 = vmatprep.mubr.msk.bf16.mxu1 %vm6153_vm0, %v6152_v46  ;;  %5676 = vmatpush3.bf16.msra.mxu1 %v6010_v36  ;;  %2545 = vst [vmem:[#allocation2 + $0x40] sm:$0x1] %v2544_v54 }
  0xb9   : > { %5677 = vmatprep.subr.bf16.mxu1 %v6013_v44 }
  0xba   : > { %5402 = vmatpush3.bf16.msra.mxu0 %v6018_v5 }
  0xbb   : > { %5439 = vmatprep.subr.bf16.mxu0 %v6023_v20 }
  0xbc   : > { %5678 = vmatpush3.bf16.msra.mxu1 %v6013_v44 }
  0xbd   : > { %2318 = vmatmul.mubr.bf16.gmra.mrb[56].mxu0 %v4909_v55  ;;  %5687 = vmatprep.subr.bf16.mxu1 %v6805_v52 }
  0xbf   : > { %5660 = vmatmul.mubr.bf16.gmra.mrb[56].mxu1 %v4911_v56 }
 0x120   : > { %v5226_v49 = vpop.f32.mrb[0].mxu0 }
 0x121   : > { %v5227_v53 = vpop.f32.mrb[1].mxu0 }
 0x122   : > { %v5228_v55 = vadd.f32 %v5227_v53, %v5226_v49  ;;  %v5229_v56 = vpop.f32.mrb[2].mxu0  ;;  %v1209_v61 = vpop.f32.mrb[0].mxu1 }
 0x123   : > { %v5230_v62 = vpop.f32.mrb[3].mxu0  ;;  %v5573_v0 = vpop.f32.mrb[1].mxu1 }
 0x124   : > { %v6812_v63 = vadd.f32 %v5228_v55, %v1209_v61  ;;  %v5231_v1 = vadd.f32 %v5230_v62, %v5229_v56  ;;  %v1212_v6 = vpop.f32.mrb[2].mxu1 }
 0x125   : > { %v5574_v8 = vpop.f32.mrb[3].mxu1 }
 0x126   : > { %v6824_v7 = vadd.f32 %v5231_v1, %v1212_v6 }
 0x128   : > { %v5232_v9 = vpop.f32.mrb[4].mxu0 }
 0x129   : > { %v5233_v10 = vpop.f32.mrb[5].mxu0 }
 0x12a   : > { %v5234_v46 = vadd.f32 %v5233_v10, %v5232_v9  ;;  %v5235_v11 = vpop.f32.mrb[6].mxu0  ;;  %v1217_v12 = vpop.f32.mrb[4].mxu1 }
 0x12b   : > { %v5236_v13 = vpop.f32.mrb[7].mxu0  ;;  %v5577_v15 = vpop.f32.mrb[5].mxu1 }
 0x12c   : > { %v6826_v14 = vadd.f32 %v5234_v46, %v1217_v12  ;;  %v5237_v16 = vadd.f32 %v5236_v13, %v5235_v11  ;;  %v1220_v17 = vpop.f32.mrb[6].mxu1 }
 0x12d   : > { %v5578_v19 = vpop.f32.mrb[7].mxu1 }
 0x12e   : > { %v6828_v18 = vadd.f32 %v5237_v16, %v1220_v17 }
 0x130   : > { %v5238_v21 = vpop.f32.mrb[8].mxu0 }
 0x131   : > { %v5239_v22 = vpop.f32.mrb[9].mxu0 }
 0x132   : > { %v5240_v23 = vadd.f32 %v5239_v22, %v5238_v21  ;;  %v5241_v24 = vpop.f32.mrb[10].mxu0  ;;  %v1225_v25 = vpop.f32.mrb[8].mxu1 }
 0x133   : > { %v5242_v26 = vpop.f32.mrb[11].mxu0  ;;  %v5581_v28 = vpop.f32.mrb[9].mxu1 }
 0x134   : > { %v6833_v27 = vadd.f32 %v5240_v23, %v1225_v25  ;;  %v5243_v29 = vadd.f32 %v5242_v26, %v5241_v24  ;;  %v1228_v30 = vpop.f32.mrb[10].mxu1 }
 0x135   : > { %v5582_v32 = vpop.f32.mrb[11].mxu1 }
 0x136   : > { %v6835_v31 = vadd.f32 %v5243_v29, %v1228_v30 }
 0x138   : > { %v5244_v33 = vpop.f32.mrb[12].mxu0 }
 0x139   : > { %v5245_v34 = vpop.f32.mrb[13].mxu0 }
 0x13a   : > { %v5246_v35 = vadd.f32 %v5245_v34, %v5244_v33  ;;  %v5247_v36 = vpop.f32.mrb[14].mxu0  ;;  %v1233_v37 = vpop.f32.mrb[12].mxu1 }
 0x13b   : > { %v5248_v38 = vpop.f32.mrb[15].mxu0  ;;  %v5585_v41 = vpop.f32.mrb[13].mxu1 }
 0x13c   : > { %v6837_v39 = vadd.f32 %v5246_v35, %v1233_v37  ;;  %v5249_v42 = vadd.f32 %v5248_v38, %v5247_v36  ;;  %v1236_v43 = vpop.f32.mrb[14].mxu1 }
 0x13d   : > { %v5586_v40 = vpop.f32.mrb[15].mxu1 }
 0x13e   : > { %v6839_v45 = vadd.f32 %v5249_v42, %v1236_v43 }
 0x140   : > { %v5250_v44 = vpop.f32.mrb[16].mxu0 }
 0x141   : > { %v5251_v47 = vpop.f32.mrb[17].mxu0 }
 0x142   : > { %v5252_v48 = vadd.f32 %v5251_v47, %v5250_v44  ;;  %v5253_v49 = vpop.f32.mrb[18].mxu0  ;;  %v1241_v50 = vpop.f32.mrb[16].mxu1 }
 0x143   : > { %v5254_v51 = vpop.f32.mrb[19].mxu0  ;;  %v5589_v54 = vpop.f32.mrb[17].mxu1 }
 0x144   : > { %v6841_v53 = vadd.f32 %v5252_v48, %v1241_v50  ;;  %v5255_v55 = vadd.f32 %v5254_v51, %v5253_v49  ;;  %v1244_v56 = vpop.f32.mrb[18].mxu1 }
 0x145   : > { %v5590_v59 = vpop.f32.mrb[19].mxu1 }
 0x146   : > { %v6843_v57 = vadd.f32 %v5255_v55, %v1244_v56 }
 0x148   : > { %v5285_v60 = vpop.f32.mrb[20].mxu0 }
 0x149   : > { %v5286_v61 = vpop.f32.mrb[21].mxu0 }
 0x14a   : > { %v5287_v62 = vadd.f32 %v5286_v61, %v5285_v60  ;;  %v5288_v0 = vpop.f32.mrb[22].mxu0  ;;  %v1774_v1 = vpop.f32.mrb[20].mxu1 }
 0x14b   : > { %v5289_v2 = vpop.f32.mrb[23].mxu0  ;;  %v5609_v4 = vpop.f32.mrb[21].mxu1 }
 0x14c   : > { %v1775_v3 = vadd.f32 %v5287_v62, %v1774_v1  ;;  %v5290_v5 = vadd.f32 %v5289_v2, %v5288_v0  ;;  %v1777_v6 = vpop.f32.mrb[22].mxu1 }
 0x14d   : > { %v5610_v10 = vpop.f32.mrb[23].mxu1 }
 0x14e   : > { %v6846_v8 = vadd.f32 %v1775_v3, %v6812_v63  ;;  %v1778_v9 = vadd.f32 %v5290_v5, %v1777_v6 }
 0x150   : > { %v6849_v46 = vadd.f32 %v1778_v9, %v6824_v7  ;;  %v5291_v11 = vpop.f32.mrb[24].mxu0 }
 0x151   : > { %v5292_v12 = vpop.f32.mrb[25].mxu0 }
 0x152   : > { %v5293_v13 = vadd.f32 %v5292_v12, %v5291_v11  ;;  %v5294_v15 = vpop.f32.mrb[26].mxu0  ;;  %v1782_v16 = vpop.f32.mrb[24].mxu1 }
 0x153   : > { %v5295_v17 = vpop.f32.mrb[27].mxu0  ;;  %v5613_v20 = vpop.f32.mrb[25].mxu1 }
 0x154   : > { %v1783_v19 = vadd.f32 %v5293_v13, %v1782_v16  ;;  %v5296_v21 = vadd.f32 %v5295_v17, %v5294_v15  ;;  %v1785_v22 = vpop.f32.mrb[26].mxu1  ;;  %v6878_v20 = vld [vmem:[%s7347_s2] ss:$0 sm:$0xff] }
 0x155   : > { %v5614_v24 = vpop.f32.mrb[27].mxu1 }
 0x156   : > { %v6852_v23 = vadd.f32 %v1783_v19, %v6826_v14  ;;  %v1786_v63 = vadd.f32 %v5296_v21, %v1785_v22 }
 0x158   : > { %v6855_v25 = vadd.f32 %v1786_v63, %v6828_v18  ;;  %v5297_v7 = vpop.f32.mrb[28].mxu0 }
 0x159   : > { %v5298_v26 = vpop.f32.mrb[29].mxu0 }
 0x15a   : > { %v5299_v28 = vadd.f32 %v5298_v26, %v5297_v7  ;;  %v5300_v29 = vpop.f32.mrb[30].mxu0  ;;  %v1790_v30 = vpop.f32.mrb[28].mxu1 }
 0x15b   : > { %v5301_v32 = vpop.f32.mrb[31].mxu0  ;;  %v5617_v34 = vpop.f32.mrb[29].mxu1 }
 0x15c   : > { %v1791_v33 = vadd.f32 %v5299_v28, %v1790_v30  ;;  %v5302_v35 = vadd.f32 %v5301_v32, %v5300_v29  ;;  %v1793_v36 = vpop.f32.mrb[30].mxu1 }
 0x15d   : > { %v5618_v38 = vpop.f32.mrb[31].mxu1 }
 0x15e   : > { %v6858_v37 = vadd.f32 %v1791_v33, %v6833_v27  ;;  %v1794_v14 = vadd.f32 %v5302_v35, %v1793_v36 }
 0x160   : > { %v6861_v41 = vadd.f32 %v1794_v14, %v6835_v31  ;;  %v5303_v18 = vpop.f32.mrb[32].mxu0 }
 0x161   : > { %v5304_v42 = vpop.f32.mrb[33].mxu0 }
 0x162   : > { %v5305_v43 = vadd.f32 %v5304_v42, %v5303_v18  ;;  %v5306_v40 = vpop.f32.mrb[34].mxu0  ;;  %v1798_v44 = vpop.f32.mrb[32].mxu1 }
 0x163   : > { %v5307_v47 = vpop.f32.mrb[35].mxu0  ;;  %v5621_v49 = vpop.f32.mrb[33].mxu1 }
 0x164   : > { %v1799_v48 = vadd.f32 %v5305_v43, %v1798_v44  ;;  %v5308_v50 = vadd.f32 %v5307_v47, %v5306_v40  ;;  %v1801_v51 = vpop.f32.mrb[34].mxu1  ;;  %v2683_v49 = vld [vmem:[#allocation2] sm:$0xf] }
 0x165   : > { %v5622_v55 = vpop.f32.mrb[35].mxu1 }
 0x166   : > { %v6864_v54 = vadd.f32 %v1799_v48, %v6837_v39  ;;  %v1802_v27 = vadd.f32 %v5308_v50, %v1801_v51 }
 0x168   : > { %v6867_v56 = vadd.f32 %v1802_v27, %v6839_v45  ;;  %v5309_v31 = vpop.f32.mrb[36].mxu0 }
 0x169   : > { %v5310_v59 = vpop.f32.mrb[37].mxu0 }
 0x16a   : > { %v5311_v60 = vadd.f32 %v5310_v59, %v5309_v31  ;;  %v5312_v61 = vpop.f32.mrb[38].mxu0  ;;  %v1806_v62 = vpop.f32.mrb[36].mxu1  ;;  %v2686_v31 = vld [vmem:[#allocation2 + $0x4] sm:$0x1] }
 0x16b   : > { %v5313_v0 = vpop.f32.mrb[39].mxu0  ;;  %v5625_v2 = vpop.f32.mrb[37].mxu1 }
 0x16c   : > { %v1807_v1 = vadd.f32 %v5311_v60, %v1806_v62  ;;  %v5314_v3 = vadd.f32 %v5313_v0, %v5312_v61  ;;  %v1809_v4 = vpop.f32.mrb[38].mxu1  ;;  %v2692_v2 = vld [vmem:[#allocation2 + $0xc] sm:$0x1] }
 0x16d   : > { %v5626_v6 = vpop.f32.mrb[39].mxu1 }
 0x16e   : > { %v6870_v5 = vadd.f32 %v1807_v1, %v6841_v53  ;;  %v1810_v39 = vadd.f32 %v5314_v3, %v1809_v4  ;;  %v2689_v1 = vld [vmem:[#allocation2 + $0x8] sm:$0xf] }
 0x170   : > { %v6873_v9 = vadd.f32 %v1810_v39, %v6843_v57  ;;  %v5344_v45 = vpop.f32.mrb[40].mxu0 }
 0x171   : > { %v5345_v10 = vpop.f32.mrb[41].mxu0 }
 0x172   : > { %v5346_v11 = vadd.f32 %v5345_v10, %v5344_v45  ;;  %v5347_v12 = vpop.f32.mrb[42].mxu0  ;;  %v2360_v13 = vpop.f32.mrb[40].mxu1 }
 0x173   : > { %v5348_v15 = vpop.f32.mrb[43].mxu0  ;;  %v5645_v17 = vpop.f32.mrb[41].mxu1 }
 0x174   : > { %v2361_v16 = vadd.f32 %v5346_v11, %v2360_v13  ;;  %v5349_v19 = vadd.f32 %v5348_v15, %v5347_v12  ;;  %v2363_v53 = vpop.f32.mrb[42].mxu1 }
 0x175   : > { %v5646_v57 = vpop.f32.mrb[43].mxu1 }
 0x176   : > { %v2409_v21 = vadd.f32 %v2361_v16, %v6846_v8  ;;  %v2364_v22 = vadd.f32 %v5349_v19, %v2363_v53 }
 0x178   : > { %v2446_v63 = vadd.f32 %v6878_v20, %v2409_v21  ;;  %v2410_v24 = vadd.f32 %v2364_v22, %v6849_v46  ;;  %v5350_v7 = vpop.f32.mrb[44].mxu0 }
 0x179   : > { %v5351_v26 = vpop.f32.mrb[45].mxu0 }
 0x17a   : > { %vm2456_vm6 = vcmp.ge.f32.partialorder %v2446_v63, 0.0  ;;  %v2466_v28 = vmul.f32 0.01, %v2446_v63  ;;  %v2447_v29 = vadd.f32 %v6878_v20, %v2410_v24  ;;  %v5352_v30 = vadd.f32 %v5351_v26, %v5350_v7  ;;  %v5353_v32 = vpop.f32.mrb[46].mxu0  ;;  %v2368_v34 = vpop.f32.mrb[44].mxu1 }
 0x17b   : > { %v5354_v33 = vpop.f32.mrb[47].mxu0  ;;  %v5649_v14 = vpop.f32.mrb[45].mxu1 }
 0x17c   : > { %v2476_v35 = vsel %vm2456_vm6, %v2446_v63, %v2466_v28  ;;  %vm2457_vm7 = vcmp.ge.f32.partialorder %v2447_v29, 0.0  ;;  %v2467_v36 = vmul.f32 0.01, %v2447_v29  ;;  %v5355_v8 = vadd.f32 %v5354_v33, %v5353_v32  ;;  %v2371_v42 = vpop.f32.mrb[46].mxu1  ;;  %v2695_v14 = vld [vmem:[#allocation2 + $0x10] sm:$0xf] }
 0x17d   : > { %v5200_v38 = vpack.c.bf16 %v2476_v35, %v2476_v35  ;;  %v2369_v18 = vadd.f32 %v5352_v30, %v2368_v34  ;;  %v5650_v40 = vpop.f32.mrb[47].mxu1 }
 0x17e   : > { %v2477_v43 = vsel %vm2457_vm7, %v2447_v29, %v2467_v36  ;;  %v2372_v46 = vadd.f32 %v5355_v8, %v2371_v42  ;;  %v2704_v42 = vld [vmem:[#allocation2 + $0x1c] sm:$0x1] }
 0x17f   : > { %v2582_v44 = vshrl.u32 %v5200_v38, 16  ;;  %v5201_v47 = vpack.c.bf16 %v2477_v43, %v2477_v43  ;;  %v2411_v48 = vadd.f32 %v2369_v18, %v6852_v23  ;;  %v2585_v55 = vshll.u32 %v5200_v38, 16  ;;  %v2698_v38 = vld [vmem:[#allocation2 + $0x14] sm:$0x1]  ;;  %v2701_v18 = vld [vmem:[#allocation2 + $0x18] sm:$0xf] }
 0x180   : > { %v2412_v50 = vadd.f32 %v2372_v46, %v6855_v25  ;;  %v5356_v51 = vpop.f32.mrb[48].mxu0 }
 0x181   : > { %v2584_v27 = vrot.slane %v2582_v44, 7  ;;  %v2590_v59 = vshrl.u32 %v5201_v47, 16  ;;  %v2448_v60 = vadd.f32 %v6878_v20, %v2411_v48  ;;  %v5357_v61 = vpop.f32.mrb[49].mxu0  ;;  %v2593_v0 = vshll.u32 %v5201_v47, 16 }
 0x182   : > { %v2449_v23 = vadd.f32 %v6878_v20, %v2412_v50  ;;  %v5358_v3 = vadd.f32 %v5357_v61, %v5356_v51  ;;  %v5359_v25 = vpop.f32.mrb[50].mxu0  ;;  %v2376_v10 = vpop.f32.mrb[48].mxu1 }
 0x183   : > { %v2587_v4 = vor.u32 %v2585_v55, %v2584_v27  ;;  %v2588_v39 = vrot.slane %v2584_v27, 4  ;;  %v2592_v6 = vrot.slane %v2590_v59, 7  ;;  %vm2458_vm10 = vcmp.ge.f32.partialorder %v2448_v60, 0.0  ;;  %v5360_v45 = vpop.f32.mrb[51].mxu0  ;;  %v5653_v15 = vpop.f32.mrb[49].mxu1 }
 0x184   : > { %v2468_v11 = vmul.f32 0.01, %v2448_v60  ;;  %vm2459_vm11 = vcmp.ge.f32.partialorder %v2449_v23, 0.0  ;;  %v2469_v12 = vmul.f32 0.01, %v2449_v23  ;;  %v5361_v13 = vadd.f32 %v5360_v45, %v5359_v25  ;;  %v2379_v21 = vpop.f32.mrb[50].mxu1 }
 0x185   : > { %v2684_v16 = vsel %vm6888_vm9, %v2587_v4, %v2683_v49  ;;  %v2687_v17 = vsel %vm6695_vm3, %v2588_v39, %v2686_v31  ;;  %v2595_v19 = vor.u32 %v2593_v0, %v2592_v6  ;;  %v2596_v53 = vrot.slane %v2592_v6, 4  ;;  %v5654_v7 = vpop.f32.mrb[51].mxu1 }
 0x186   : > { %2685 = vst [vmem:[#allocation2] sm:$0xf] %v2684_v16  ;;  %2688 = vst [vmem:[#allocation2 + $0x4] sm:$0x1] %v2687_v17  ;;  %v2478_v22 = vsel %vm2458_vm10, %v2448_v60, %v2468_v11  ;;  %v2479_v57 = vsel %vm2459_vm11, %v2449_v23, %v2469_v12  ;;  %v2377_v63 = vadd.f32 %v5358_v3, %v2376_v10 }
 0x187   : > { %v2380_v24 = vadd.f32 %v5361_v13, %v2379_v21  ;;  %v2690_v26 = vsel %vm6888_vm9, %v2595_v19, %v2689_v1  ;;  %v2693_v28 = vsel %vm6695_vm3, %v2596_v53, %v2692_v2  ;;  %v5202_v29 = vpack.c.bf16 %v2478_v22, %v2478_v22 }
 0x188   : > { %v5203_v30 = vpack.c.bf16 %v2479_v57, %v2479_v57  ;;  %2691 = vst [vmem:[#allocation2 + $0x8] sm:$0xf] %v2690_v26  ;;  %2694 = vst [vmem:[#allocation2 + $0xc] sm:$0x1] %v2693_v28  ;;  %v2413_v32 = vadd.f32 %v2377_v63, %v6858_v37  ;;  %v5362_v34 = vpop.f32.mrb[52].mxu0 }
 0x189   : > { %v2414_v33 = vadd.f32 %v2380_v24, %v6861_v41  ;;  %v2598_v35 = vshrl.u32 %v5202_v29, 16  ;;  %v5363_v8 = vpop.f32.mrb[53].mxu0  ;;  %v2601_v48 = vshll.u32 %v5202_v29, 16  ;;  %v2707_v28 = vld [vmem:[#allocation2 + $0x20] sm:$0xf] }
 0x18a   : > { %v2606_v36 = vshrl.u32 %v5203_v30, 16  ;;  %v2450_v43 = vadd.f32 %v6878_v20, %v2413_v32  ;;  %v5364_v40 = vadd.f32 %v5363_v8, %v5362_v34  ;;  %v5365_v44 = vpop.f32.mrb[54].mxu0  ;;  %v2609_v37 = vshll.u32 %v5203_v30, 16  ;;  %v2384_v41 = vpop.f32.mrb[52].mxu1  ;;  %v2710_v8 = vld [vmem:[#allocation2 + $0x24] sm:$0x1] }
 0x18b   : > { %v2451_v46 = vadd.f32 %v6878_v20, %v2414_v33  ;;  %v2600_v47 = vrot.slane %v2598_v35, 7  ;;  %v5366_v50 = vpop.f32.mrb[55].mxu0  ;;  %v5657_v25 = vpop.f32.mrb[53].mxu1 }
 0x18c   : > { %v2608_v49 = vrot.slane %v2606_v36, 7  ;;  %vm2460_vm12 = vcmp.ge.f32.partialorder %v2450_v43, 0.0  ;;  %v2470_v51 = vmul.f32 0.01, %v2450_v43  ;;  %v2387_v10 = vpop.f32.mrb[54].mxu1  ;;  %v5367_v16 = vadd.f32 %v5366_v50, %v5365_v44 }
 0x18d   : > { %vm2461_vm13 = vcmp.ge.f32.partialorder %v2451_v46, 0.0  ;;  %v2471_v27 = vmul.f32 0.01, %v2451_v46  ;;  %v2747_v55 = vld [vmem:[#allocation2] sm:$0xf]  ;;  %v2603_v59 = vor.u32 %v2601_v48, %v2600_v47  ;;  %v2604_v60 = vrot.slane %v2600_v47, 4 }
 0x18e   : > { %v2750_v31 = vld [vmem:[#allocation2 + $0x4] sm:$0x1]  ;;  %v2611_v61 = vor.u32 %v2609_v37, %v2608_v49  ;;  %v2612_v0 = vrot.slane %v2608_v49, 4  ;;  %v2748_v1 = vsel %vm6888_vm9, 0, %v2747_v55  ;;  %v2480_v23 = vsel %vm2460_vm12, %v2450_v43, %v2470_v51  ;;  %v5658_v53 = vpop.f32.mrb[55].mxu1 }
 0x18f   : > { %v2751_v2 = vsel %vm6695_vm3, 0, %v2750_v31  ;;  %v2481_v3 = vsel %vm2461_vm13, %v2451_v46, %v2471_v27  ;;  %2749 = vst [vmem:[#allocation2] sm:$0xf] %v2748_v1  ;;  %v2696_v4 = vsel %vm6888_vm9, %v2603_v59, %v2695_v14  ;;  %v2699_v39 = vsel %vm6695_vm3, %v2604_v60, %v2698_v38  ;;  %v6917_v11 = vld [vmem:[#allocation2 + $0x8] sm:$0xf] }
 0x190   : > { %2752 = vst [vmem:[#allocation2 + $0x4] sm:$0x1] %v2751_v2  ;;  %v2702_v6 = vsel %vm6888_vm9, %v2611_v61, %v2701_v18  ;;  %v2705_v45 = vsel %vm6695_vm3, %v2612_v0, %v2704_v42  ;;  %v2763_v12 = vld [vmem:[#allocation2 + $0xc] sm:$0x1]  ;;  %2697 = vst [vmem:[#allocation2 + $0x10] sm:$0xf] %v2696_v4  ;;  %v5204_v13 = vpack.c.bf16 %v2480_v23, %v2480_v23 }
 0x191   : > { %2700 = vst [vmem:[#allocation2 + $0x14] sm:$0x1] %v2699_v39  ;;  %2703 = vst [vmem:[#allocation2 + $0x18] sm:$0xf] %v2702_v6  ;;  %v5205_v15 = vpack.c.bf16 %v2481_v3, %v2481_v3  ;;  %v2385_v17 = vadd.f32 %v5364_v40, %v2384_v41  ;;  %v5368_v19 = vpop.f32.mrb[56].mxu0  ;;  %v6920_v22 = vcombine.low %v6917_v11, %v2763_v12 }
 0x192   : > { %2706 = vst [vmem:[#allocation2 + $0x1c] sm:$0x1] %v2705_v45  ;;  %v5369_v21 = vpop.f32.mrb[57].mxu0  ;;  %v2614_v57 = vshrl.u32 %v5204_v13, 16  ;;  %v2617_v63 = vshll.u32 %v5204_v13, 16  ;;  %v2388_v30 = vadd.f32 %v5367_v16, %v2387_v10  ;;  %v2392_v34 = vpop.f32.mrb[56].mxu1 }
 0x193   : > { %v2622_v24 = vshrl.u32 %v5205_v15, 16  ;;  %v2625_v7 = vshll.u32 %v5205_v15, 16  ;;  %v5371_v26 = vpop.f32.mrb[58].mxu0  ;;  %v2415_v29 = vadd.f32 %v2385_v17, %v6864_v54  ;;  %v5370_v32 = vadd.f32 %v5369_v21, %v5368_v19  ;;  %v5661_v18 = vpop.f32.mrb[57].mxu1  ;;  %v2713_v43 = vld [vmem:[#allocation2 + $0x28] sm:$0xf] }
 0x194   : > { %v5372_v33 = vpop.f32.mrb[59].mxu0  ;;  %v2873_v35 = vrot.slane %v6920_v22, 1  ;;  %v2616_v36 = vrot.slane %v2614_v57, 7  ;;  %v2824_v42 = vshrl.u32 %v6920_v22, 16  ;;  %v2716_v46 = vld [vmem:[#allocation2 + $0x2c] sm:$0x1]  ;;  %v2416_v44 = vadd.f32 %v2388_v30, %v6867_v56 }
 0x195   : > { %v2624_v14 = vrot.slane %v2622_v24, 7  ;;  %v5373_v38 = vadd.f32 %v5372_v33, %v5371_v26  ;;  %v2452_v40 = vadd.f32 %v6878_v20, %v2415_v29  ;;  %v2393_v54 = vadd.f32 %v5370_v32, %v2392_v34  ;;  %v2395_v47 = vpop.f32.mrb[58].mxu1  ;;  %v2722_v33 = vld [vmem:[#allocation2 + $0x34] sm:$0x1]  ;;  %v2725_v34 = vld [vmem:[#allocation2 + $0x38] sm:$0xf] }
 0x196   : > { %v2826_v48 = vshll.u32 %v6920_v22, 16  ;;  %v2619_v49 = vor.u32 %v2617_v63, %v2616_v36  ;;  %v2620_v37 = vrot.slane %v2616_v36, 4  ;;  %v6928_v51 = vld [vmem:[#allocation2] sm:$0xf]  ;;  %v2453_v31 = vadd.f32 %v6878_v20, %v2416_v44  ;;  %v5662_v56 = vpop.f32.mrb[59].mxu1  ;;  %v6021_v44 = vld [vmem:[%s7348_s3 + $0x148] sm:$0xff]  }
 0x197   : > { %v2627_v50 = vor.u32 %v2625_v7, %v2624_v14  ;;  %v2628_v41 = vrot.slane %v2624_v14, 4  ;;  %v2761_v27 = vld [vmem:[#allocation2 + $0x4] sm:$0x1]  ;;  %vm2462_vm14 = vcmp.ge.f32.partialorder %v2452_v40, 0.0  ;;  %v2472_v55 = vmul.f32 0.01, %v2452_v40 }
 0x198   : > { %v2417_v59 = vadd.f32 %v2393_v54, %v6870_v5  ;;  %v6932_v60 = vld [vmem:[#allocation2 + $0x10] sm:$0xf]  ;;  %v2708_v61 = vsel %vm6888_vm9, %v2619_v49, %v2707_v28  ;;  %v2711_v0 = vsel %vm6695_vm3, %v2620_v37, %v2710_v8  ;;  %v2765_v23 = vld [vmem:[#allocation2 + $0x14] sm:$0x1]  ;;  %v6942_v3 = vld [vmem:[#allocation2 + $0x18] sm:$0xf]  ;;  %v2396_v45 = vadd.f32 %v5373_v38, %v2395_v47 }
 0x199   : > { %v2714_v1 = vsel %vm6888_vm9, %v2627_v50, %v2713_v43  ;;  %v2717_v2 = vsel %vm6695_vm3, %v2628_v41, %v2716_v46  ;;  %v2767_v25 = vld [vmem:[#allocation2 + $0x1c] sm:$0x1]  ;;  %2709 = vst [vmem:[#allocation2 + $0x20] sm:$0xf] %v2708_v61  ;;  %2712 = vst [vmem:[#allocation2 + $0x24] sm:$0x1] %v2711_v0  ;;  %v2482_v5 = vsel %vm2462_vm14, %v2452_v40, %v2472_v55 }
 0x19a   : > { %2715 = vst [vmem:[#allocation2 + $0x28] sm:$0xf] %v2714_v1  ;;  %2718 = vst [vmem:[#allocation2 + $0x2c] sm:$0x1] %v2717_v2  ;;  %vm2463_vm15 = vcmp.ge.f32.partialorder %v2453_v31, 0.0  ;;  %v2454_v39 = vadd.f32 %v6878_v20, %v2417_v59  ;;  %v5206_v6 = vpack.c.bf16 %v2482_v5, %v2482_v5  ;;  %v4947_v10 = vcombine.low %v6928_v51, %v2761_v27  ;;  %v6025_v2 = vld [vmem:[%s7348_s3 + $0x150] sm:$0xff]  }
 0x19b   : > { %v2473_v4 = vmul.f32 0.01, %v2453_v31  ;;  %v6948_v12 = vcombine.low %v6932_v60, %v2765_v23  ;;  %v6951_v16 = vcombine.low %v6942_v3, %v2767_v25  ;;  %v2418_v21 = vadd.f32 %v2396_v45, %v6873_v9  ;;  %v2719_v28 = vld [vmem:[#allocation2 + $0x30] sm:$0xf]  ;;  %v2728_v46 = vld [vmem:[#allocation2 + $0x3c] sm:$0x1] }
 0x19c   : > { %vm2464_vm0 = vcmp.ge.f32.partialorder %v2454_v39, 0.0  ;;  %v2474_v15 = vmul.f32 0.01, %v2454_v39  ;;  %v2630_v17 = vshrl.u32 %v5206_v6, 16  ;;  %v2633_v19 = vshll.u32 %v5206_v6, 16 }
 0x19d   : > { %v2483_v13 = vsel %vm2463_vm15, %v2453_v31, %v2473_v4  ;;  %v2872_v63 = vrot.slane %v4947_v10, 1  ;;  %v2874_v24 = vrot.slane %v6948_v12, 1  ;;  %v2875_v7 = vrot.slane %v6951_v16, 1  ;;  %v2731_v61 = vld [vmem:[#allocation2 + $0x40] sm:$0xf] }
 0x19e   : > { %v5207_v53 = vpack.c.bf16 %v2483_v13, %v2483_v13  ;;  %v2484_v57 = vsel %vm2464_vm0, %v2454_v39, %v2474_v15  ;;  %v2632_v26 = vrot.slane %v2630_v17, 7  ;;  %v2455_v36 = vadd.f32 %v6878_v20, %v2418_v21  ;;  %v2734_v0 = vld [vmem:[#allocation2 + $0x44] sm:$0x1] }
 0x19f   : > { %v5208_v32 = vpack.c.bf16 %v2484_v57, %v2484_v57  ;;  %v4957_v8 = vcombine.low %v2872_v63, %v2873_v35  ;;  %v4960_v14 = vcombine.low %v2874_v24, %v2875_v7  ;;  %v2817_v9 = vshrl.u32 %v4947_v10, 16  ;;  %v6028_v7 = vld [vmem:[%s7348_s3 + $0x108] sm:$0xff]  }
 0x1a0   : > { %v2638_v29 = vshrl.u32 %v5207_v53, 16  ;;  %v2641_v30 = vshll.u32 %v5207_v53, 16  ;;  %v2635_v38 = vor.u32 %v2633_v19, %v2632_v26  ;;  %v2636_v18 = vrot.slane %v2632_v26, 4  ;;  %v6978_v5 = vld [vmem:[#allocation2 + $0x20] sm:$0xf]  ;;  %v6030_v26 = vld [vmem:[%s7348_s3 + $0x158] sm:$0xff]  }
 0x1a1   : > { %v2646_v40 = vshrl.u32 %v5208_v32, 16  ;;  %v2649_v54 = vshll.u32 %v5208_v32, 16  ;;  %vm2465_vm1 = vcmp.ge.f32.partialorder %v2455_v36, 0.0  ;;  %v2475_v47 = vmul.f32 0.01, %v2455_v36  ;;  %5679 = vmatprep.mubr.bf16.mxu1 %v4957_v8  ;;  %v6024_v53 = vld [vmem:[%s7348_s3 + $0xc0] sm:$0xff]  }
 0x1a2   : > { %v2640_v43 = vrot.slane %v2638_v29, 7  ;;  %v2819_v49 = vshll.u32 %v4947_v10, 16  ;;  %v2720_v20 = vsel %vm6888_vm9, %v2635_v38, %v2719_v28  ;;  %v2723_v35 = vsel %vm6695_vm3, %v2636_v18, %v2722_v33  ;;  %5680 = vmatmul.mubr.bf16.vlgmr.msra.gmra.mrb[60].mxu1 %v4960_v14  ;;  %v2769_v4 = vld [vmem:[#allocation2 + $0x24] sm:$0x1]  ;;  %v6983_v10 = vld [vmem:[#allocation2 + $0x28] sm:$0xf] }
 0x1a3   : > { %2721 = vst [vmem:[#allocation2 + $0x30] sm:$0xf] %v2720_v20  ;;  %2724 = vst [vmem:[#allocation2 + $0x34] sm:$0x1] %v2723_v35  ;;  %v2648_v41 = vrot.slane %v2646_v40, 7  ;;  %v2485_v27 = vsel %vm2465_vm1, %v2455_v36, %v2475_v47  ;;  %5688 = vmatpush3.bf16.msra.mxu1 %v6805_v52  ;;  %v2828_v31 = vrot.slane %v2826_v48, 1  ;;  %v4955_v6 = vcombine.low %v6928_v51, %v6917_v11 }
 0x1a4   : > { %v2643_v37 = vor.u32 %v2641_v30, %v2640_v43  ;;  %v2644_v50 = vrot.slane %v2640_v43, 4  ;;  %v2821_v55 = vrot.slane %v2819_v49, 1  ;;  %v5209_v1 = vpack.c.bf16 %v2485_v27, %v2485_v27  ;;  %5689 = vmatprep.subr.bf16.mxu1 %v6021_v44  ;;  %v2771_v13 = vld [vmem:[#allocation2 + $0x2c] sm:$0x1]  ;;  %v6992_v11 = vld [vmem:[#allocation2 + $0x10] sm:$0xf] }
 0x1a5   : > { %v2651_v52 = vor.u32 %v2649_v54, %v2648_v41  ;;  %v2652_v23 = vrot.slane %v2648_v41, 4  ;;  %v2829_v48 = vor.u32 %v2828_v31, %v2824_v42  ;;  %v2833_v45 = vshll.u32 %v6948_v12, 16  ;;  %v2737_v42 = vld [vmem:[#allocation2 + $0x48] sm:$0xf]  ;;  %v3254_v51 = vld [vmem:[#allocation2 + $0x14] sm:$0x1] }
 0x1a6   : > { %v2726_v59 = vsel %vm6888_vm9, %v2643_v37, %v2725_v34  ;;  %v2729_v56 = vsel %vm6695_vm3, %v2644_v50, %v2728_v46  ;;  %v2822_v25 = vor.u32 %v2821_v55, %v2817_v9  ;;  %v2654_v39 = vshrl.u32 %v5209_v1, 16  ;;  %v2740_v28 = vld [vmem:[#allocation2 + $0x4c] sm:$0x1]  ;;  %v7005_v33 = vld [vmem:[#allocation2 + $0x8] sm:$0xf]  ;;  %v6032_v49 = vld [vmem:[%s7348_s3 + $0x110] sm:$0xff]  }
 0x1a7   : > { %2727 = vst [vmem:[#allocation2 + $0x38] sm:$0xf] %v2726_v59  ;;  %2730 = vst [vmem:[#allocation2 + $0x3c] sm:$0x1] %v2729_v56  ;;  %v2732_v15 = vsel %vm6888_vm9, %v2651_v52, %v2731_v61  ;;  %v2735_v17 = vsel %vm6695_vm3, %v2652_v23, %v2734_v0  ;;  %v2657_v22 = vshll.u32 %v5209_v1, 16  ;;  %5690 = vmatpush3.bf16.msra.mxu1 %v6021_v44  ;;  %v2835_v57 = vrot.slane %v2833_v45, 1 }
 0x1a8   : > { %v4956_v19 = vcombine.low %v2822_v25, %v2829_v48  ;;  %2733 = vst [vmem:[#allocation2 + $0x40] sm:$0xf] %v2732_v15  ;;  %2736 = vst [vmem:[#allocation2 + $0x44] sm:$0x1] %v2735_v17  ;;  %v2656_v21 = vrot.slane %v2654_v39, 7  ;;  %v2840_v63 = vshll.u32 %v6951_v16, 16  ;;  %5691 = vmatprep.subr.bf16.mxu1 %v6025_v2  ;;  %v4951_v24 = vcombine.low %v6978_v5, %v2769_v4 }
 0x1a9   : > { %v2831_v29 = vshrl.u32 %v6948_v12, 16  ;;  %v2838_v30 = vshrl.u32 %v6951_v16, 16  ;;  %v4952_v32 = vcombine.low %v6983_v10, %v2771_v13  ;;  %v7010_v38 = vcombine.low %v6992_v11, %v3254_v51  ;;  %v6029_v16 = vld [vmem:[%s7348_s3 + $0xc8] sm:$0xff]   ;;  %v6034_v31 = vld [vmem:[%s7348_s3 + $0x160] sm:$0xff]   ;;  %v6033_v52 = vld [vmem:[%s7348_s3 + $0xd0] sm:$0xff]  }
 0x1aa   : > { %3144 = vmatprep.mubr.bf16.mxu0 %v4956_v19  ;;  %v2659_v34 = vor.u32 %v2657_v22, %v2656_v21  ;;  %v2660_v36 = vrot.slane %v2656_v21, 4  ;;  %v2842_v8 = vrot.slane %v2840_v63, 1  ;;  %v7007_v14 = vld [vmem:[#allocation2 + $0x30] sm:$0xf]  ;;  %v2773_v9 = vld [vmem:[#allocation2 + $0x34] sm:$0x1]  ;;  %v4958_v61 = vcombine.low %v6932_v60, %v6942_v3 }
 0x1ab   : > { %3145 = vmatmul.mubr.bf16.vlgmr.msra.gmra.mrb[60].mxu0 %v4955_v6  ;;  %v2836_v18 = vor.u32 %v2835_v57, %v2831_v29  ;;  %v2876_v43 = vrot.slane %v4951_v24, 1  ;;  %v2877_v12 = vrot.slane %v4952_v32, 1  ;;  %5692 = vmatpush3.bf16.msra.mxu1 %v6025_v2  ;;  %v2847_v46 = vshll.u32 %v4951_v24, 16  ;;  %v3252_v40 = vld [vmem:[#allocation2 + $0xc] sm:$0x1]  ;;  %v6037_v48 = vld [vmem:[%s7348_s3 + $0x118] sm:$0xff]  }
 0x1ac   : > { %5440 = vmatpush3.bf16.msra.mxu0 %v6024_v53  ;;  %v2738_v44 = vsel %vm6888_vm9, %v2659_v34, %v2737_v42  ;;  %v2741_v54 = vsel %vm6695_vm3, %v2660_v36, %v2740_v28  ;;  %v2843_v47 = vor.u32 %v2842_v8, %v2838_v30  ;;  %5693 = vmatprep.subr.bf16.mxu1 %v6030_v26  ;;  %v2854_v41 = vshll.u32 %v4952_v32, 16  ;;  %v6041_v15 = vld [vmem:[%s7348_s3 + $0x168] sm:$0xff]   ;;  %v6038_v42 = vld [vmem:[%s7348_s3 + $0xd8] sm:$0xff]   ;;  %v7059_v34 = vld [vmem:[#allocation2 + $0x20] sm:$0xf] }
 0x1ad   : > { %5441 = vmatprep.subr.bf16.mxu0 %v6028_v7  ;;  %2739 = vst [vmem:[#allocation2 + $0x48] sm:$0xf] %v2738_v44  ;;  %2742 = vst [vmem:[#allocation2 + $0x4c] sm:$0x1] %v2741_v54  ;;  %v4963_v37 = vcombine.low %v2876_v43, %v2877_v12  ;;  %v2849_v50 = vrot.slane %v2847_v46, 1  ;;  %v4953_v27 = vcombine.low %v7007_v14, %v2773_v9  ;;  %v2845_v0 = vshrl.u32 %v4951_v24, 16 }
 0x1ae   : > { %v7022_v20 = vld [vmem:[#allocation2 + $0x38] sm:$0xf]  ;;  %v2775_v35 = vld [vmem:[#allocation2 + $0x3c] sm:$0x1]  ;;  %v4959_v55 = vcombine.low %v2836_v18, %v2843_v47  ;;  %v7030_v56 = vcombine.low %v7005_v33, %v3252_v40  ;;  %v2852_v1 = vshrl.u32 %v4952_v32, 16  ;;  %v2856_v2 = vrot.slane %v2854_v41, 1 }
 0x1af   : > { %v4954_v59 = vcombine.low %v7022_v20, %v2775_v35  ;;  %5683 = vmatprep.mubr.bf16.mxu1 %v4963_v37  ;;  %v2878_v23 = vrot.slane %v4953_v27, 1  ;;  %v3364_v4 = vrot.slane %v7010_v38, 1  ;;  %v2861_v39 = vshll.u32 %v4953_v27, 16  ;;  %5694 = vmatpush3.bf16.msra.mxu1 %v6030_v26  ;;  %v6043_v24 = vld [vmem:[%s7348_s3 + $0x120] sm:$0xff]   ;;  %v6045_v32 = vld [vmem:[%s7348_s3 + $0x170] sm:$0xff]   ;;  %v6046_v8 = vld [vmem:[%s7348_s3 + $0x128] sm:$0xff]  }
 0x1b0   : > { %5442 = vmatpush3.bf16.msra.mxu0 %v6029_v16  ;;  %3152 = vmatprep.mubr.bf16.mxu0 %v4959_v55  ;;  %v2850_v60 = vor.u32 %v2849_v50, %v2845_v0  ;;  %v2857_v3 = vor.u32 %v2856_v2, %v2852_v1  ;;  %v3363_v13 = vrot.slane %v7030_v56, 1  ;;  %v2859_v19 = vshrl.u32 %v4953_v27, 16  ;;  %v3258_v36 = vld [vmem:[#allocation2 + $0x24] sm:$0x1]  ;;  %v7068_v18 = vld [vmem:[#allocation2 + $0x18] sm:$0xf] }
 0x1b1   : > { %5443 = vmatprep.subr.bf16.mxu0 %v6032_v49  ;;  %v2879_v25 = vrot.slane %v4954_v59, 1  ;;  %v2868_v6 = vshll.u32 %v4954_v59, 16  ;;  %5695 = vmatprep.subr.bf16.mxu1 %v6034_v31  ;;  %v2863_v17 = vrot.slane %v2861_v39, 1  ;;  %v2866_v53 = vshrl.u32 %v4954_v59, 16  ;;  %v3256_v12 = vld [vmem:[#allocation2 + $0x1c] sm:$0x1] }
 0x1b2   : > { %v4962_v22 = vcombine.low %v2850_v60, %v2857_v3  ;;  %v5049_v63 = vcombine.low %v3363_v13, %v3364_v4  ;;  %v3317_v7 = vshll.u32 %v7010_v38, 16  ;;  %v3310_v9 = vshll.u32 %v7030_v56, 16  ;;  %v7072_v16 = vld [vmem:[#allocation2 + $0x30] sm:$0xf]  ;;  %v3262_v46 = vld [vmem:[#allocation2 + $0x34] sm:$0x1] }
 0x1b3   : > { %3153 = vmatmul.mubr.bf16.gmra.mrb[64].mxu0 %v4958_v61  ;;  %v4966_v45 = vcombine.low %v2878_v23, %v2879_v25  ;;  %v2870_v51 = vrot.slane %v2868_v6, 1  ;;  %5696 = vmatpush3.bf16.msra.mxu1 %v6034_v31  ;;  %v2864_v29 = vor.u32 %v2863_v17, %v2859_v19  ;;  %v4961_v43 = vcombine.low %v6978_v5, %v6983_v10  ;;  %v6048_v54 = vld [vmem:[%s7348_s3 + $0x178] sm:$0xff]   ;;  %v7080_v47 = vld [vmem:[#allocation2 + $0x28] sm:$0xf]  ;;  %v3260_v49 = vld [vmem:[#allocation2 + $0x2c] sm:$0x1] }
 0x1b4   : > { %5444 = vmatpush3.bf16.msra.mxu0 %v6033_v52  ;;  %v2754_v21 = vld [vmem:[#allocation2 + $0x48] sm:$0xf]  ;;  %v2757_v57 = vld [vmem:[#allocation2 + $0x4c] sm:$0x1]  ;;  %3160 = vmatprep.mubr.bf16.mxu0 %v4962_v22  ;;  %v3319_v40 = vrot.slane %v3317_v7, 1  ;;  %v7075_v44 = vcombine.low %v7059_v34, %v3258_v36  ;;  %v3312_v10 = vrot.slane %v3310_v9, 1  ;;  %v4993_v37 = vcombine.low %v7068_v18, %v3256_v12 }
 0x1b5   : > { %5684 = vmatmul.mubr.bf16.gmra.mrb[64].mxu1 %v4966_v45  ;;  %5445 = vmatprep.subr.bf16.mxu0 %v6037_v48  ;;  %v2755_v26 = vsel %vm6888_vm9, 0, %v2754_v21  ;;  %v2758_v28 = vsel %vm6695_vm3, 0, %v2757_v57  ;;  %v2871_v30 = vor.u32 %v2870_v51, %v2866_v53  ;;  %v6047_v5 = vld [vmem:[%s7348_s3 + $0xe8] sm:$0xff]   ;;  %v3315_v35 = vshrl.u32 %v7010_v38, 16  ;;  %v6050_v41 = vld [vmem:[%s7348_s3 + $0x130] sm:$0xff]   ;;  %v6054_v0 = vld [vmem:[%s7348_s3 + $0x200] sm:$0xff]  }
 0x1b6   : > { %2756 = vst [vmem:[#allocation2 + $0x48] sm:$0xf] %v2755_v26  ;;  %2759 = vst [vmem:[#allocation2 + $0x4c] sm:$0x1] %v2758_v28  ;;  %5703 = vmatprep.mubr.bf16.mxu1 %v5049_v63  ;;  %5697 = vmatprep.subr.bf16.mxu1 %v6041_v15  ;;  %v7088_v50 = vcombine.low %v7072_v16, %v3262_v46  ;;  %v3308_v27 = vshrl.u32 %v7030_v56, 16  ;;  %v7095_v31 = vcombine.low %v7080_v47, %v3260_v49  ;;  %v6051_v38 = vld [vmem:[%s7348_s3 + $0xf0] sm:$0xff]  }
 0x1b7   : > { %v4965_v62 = vcombine.low %v2864_v29, %v2871_v30  ;;  %5698 = vmatpush3.bf16.msra.mxu1 %v6041_v15  ;;  %v3320_v55 = vor.u32 %v3319_v40, %v3315_v35  ;;  %v3331_v59 = vshll.u32 %v7075_v44, 16  ;;  %v3366_v61 = vrot.slane %v7075_v44, 1  ;;  %v7106_v52 = vld [vmem:[#allocation2 + $0x40] sm:$0xf]  ;;  %v3266_v23 = vld [vmem:[#allocation2 + $0x44] sm:$0x1] }
 0x1b8   : > { %5446 = vmatpush3.bf16.msra.mxu0 %v6038_v42  ;;  %5699 = vmatprep.subr.bf16.mxu1 %v6045_v32  ;;  %v3313_v1 = vor.u32 %v3312_v10, %v3308_v27  ;;  %v3368_v56 = vrot.slane %v7088_v50, 1  ;;  %v3324_v2 = vshll.u32 %v4993_v37, 16  ;;  %v4964_v25 = vcombine.low %v7007_v14, %v7022_v20  ;;  %v6055_v4 = vld [vmem:[%s7348_s3 + $0x138] sm:$0xff]   ;;  %v6059_v14 = vld [vmem:[%s7348_s3 + $0x208] sm:$0xff]   ;;  %v7124_v22 = vld [vmem:[#allocation2 + $0x10] sm:$0xf] }
 0x1b9   : > { %5447 = vmatprep.subr.bf16.mxu0 %v6043_v24  ;;  %v3365_v48 = vrot.slane %v4993_v37, 1  ;;  %v7113_v39 = vld [vmem:[#allocation2 + $0x18] sm:$0xf]  ;;  %v3762_v60 = vld [vmem:[#allocation2 + $0x1c] sm:$0x1]  ;;  %v3367_v6 = vrot.slane %v7095_v31, 1  ;;  %v7122_v20 = vcombine.low %v7106_v52, %v3266_v23  ;;  %v5047_v9 = vcombine.low %v7005_v33, %v6992_v11 }
 0x1ba   : > { %v5048_v3 = vcombine.low %v3313_v1, %v3320_v55  ;;  %v3333_v45 = vrot.slane %v3331_v59, 1  ;;  %v7116_v13 = vld [vmem:[#allocation2 + $0x38] sm:$0xf]  ;;  %v3264_v15 = vld [vmem:[#allocation2 + $0x3c] sm:$0x1]  ;;  %v3326_v51 = vrot.slane %v3324_v2, 1  ;;  %v7131_v57 = vcombine.low %v7113_v39, %v3762_v60 }
 0x1bb   : > { %3161 = vmatmul.mubr.bf16.gmra.mrb[68].mxu0 %v4961_v43  ;;  %5700 = vmatpush3.bf16.msra.mxu1 %v6045_v32  ;;  %v5052_v17 = vcombine.low %v3365_v48, %v3366_v61  ;;  %v3760_v42 = vld [vmem:[#allocation2 + $0x14] sm:$0x1]  ;;  %v5055_v19 = vcombine.low %v3367_v6, %v3368_v56  ;;  %v6058_v53 = vld [vmem:[%s7348_s3 + $0xf8] sm:$0xff]   ;;  %v3329_v21 = vshrl.u32 %v7075_v44, 16  ;;  %v6061_v63 = vld [vmem:[%s7348_s3 + $0x1c0] sm:$0xff]   ;;  %v7137_v24 = vcombine.low %v7116_v13, %v3264_v15 }
 0x1bc   : > { %3168 = vmatprep.mubr.bf16.mxu0 %v4965_v62  ;;  %5448 = vmatpush3.bf16.msra.mxu0 %v6044_v58  ;;  %v3322_v7 = vshrl.u32 %v4993_v37, 16  ;;  %v7140_v28 = vcombine.low %v7124_v22, %v3760_v42  ;;  %v3345_v29 = vshll.u32 %v7088_v50, 16  ;;  %v3370_v30 = vrot.slane %v7122_v20, 1  ;;  %v6065_v32 = vld [vmem:[%s7348_s3 + $0x210] sm:$0xff]   ;;  %v6062_v62 = vld [vmem:[%s7348_s3 + $0x180] sm:$0xff]   ;;  %v6066_v12 = vld [vmem:[%s7348_s3 + $0x1c8] sm:$0xff]  }
 0x1bd   : > { %5449 = vmatprep.subr.bf16.mxu0 %v6046_v8  ;;  %5701 = vmatprep.subr.bf16.mxu1 %v6048_v54  ;;  %v3334_v26 = vor.u32 %v3333_v45, %v3329_v21  ;;  %v3872_v58 = vrot.slane %v7131_v57, 1  ;;  %v3338_v8 = vshll.u32 %v7095_v31, 16  ;;  %v3369_v43 = vrot.slane %v7137_v24, 1  ;;  %v6070_v49 = vld [vmem:[%s7348_s3 + $0x218] sm:$0xff]   ;;  %v6069_v33 = vld [vmem:[%s7348_s3 + $0x188] sm:$0xff]   ;;  %v6072_v35 = vld [vmem:[%s7348_s3 + $0x1d0] sm:$0xff]  }
 0x1be   : > { %v3327_v36 = vor.u32 %v3326_v51, %v3322_v7  ;;  %v3871_v40 = vrot.slane %v7140_v28, 1  ;;  %v3347_v44 = vrot.slane %v3345_v29, 1  ;;  %v3343_v10 = vshrl.u32 %v7088_v50, 16  ;;  %v6074_v55 = vld [vmem:[%s7348_s3 + $0x220] sm:$0xff]   ;;  %v6073_v59 = vld [vmem:[%s7348_s3 + $0x190] sm:$0xff]   ;;  %v6077_v56 = vld [vmem:[%s7348_s3 + $0x228] sm:$0xff]  }
 0x1bf   : > { %5702 = vmatpush3.bf16.msra.mxu1 %v6048_v54  ;;  %v5058_v54 = vcombine.low %v3369_v43, %v3370_v30  ;;  %v3336_v37 = vshrl.u32 %v7095_v31, 16  ;;  %v3359_v27 = vshll.u32 %v7122_v20, 16  ;;  %v5050_v61 = vcombine.low %v7068_v18, %v7059_v34  ;;  %v6075_v31 = vld [vmem:[%s7348_s3 + $0x1d8] sm:$0xff]   ;;  %v6079_v23 = vld [vmem:[%s7348_s3 + $0x1e0] sm:$0xff]   ;;  %v6081_v60 = vld [vmem:[%s7348_s3 + $0x230] sm:$0xff]  }
 0x1c0   : > { %5450 = vmatpush3.bf16.msra.mxu0 %v6047_v5  ;;  %5711 = vmatprep.subr.bf16.mxu1 %v6054_v0  ;;  %v5051_v46 = vcombine.low %v3327_v36, %v3334_v26  ;;  %v5141_v11 = vcombine.low %v3871_v40, %v3872_v58  ;;  %v3340_v5 = vrot.slane %v3338_v8, 1  ;;  %v6076_v34 = vld [vmem:[%s7348_s3 + $0x198] sm:$0xff]   ;;  %v3357_v2 = vshrl.u32 %v7122_v20, 16  ;;  %v3766_v6 = vld [vmem:[#allocation2 + $0x2c] sm:$0x1]  ;;  %v6080_v15 = vld [vmem:[%s7348_s3 + $0x1a0] sm:$0xff]  }
 0x1c1   : > { %5451 = vmatprep.subr.bf16.mxu0 %v6050_v41  ;;  %v3348_v41 = vor.u32 %v3347_v44, %v3343_v10  ;;  %v3361_v1 = vrot.slane %v3359_v27, 1  ;;  %v7207_v20 = vld [vmem:[#allocation2 + $0x20] sm:$0xf]  ;;  %v5053_v42 = vcombine.low %v7080_v47, %v7072_v16  ;;  %v3770_v51 = vld [vmem:[#allocation2 + $0x3c] sm:$0x1]  ;;  %v6083_v16 = vld [vmem:[%s7348_s3 + $0x1a8] sm:$0xff]  }
 0x1c2   : > { %5704 = vmatmul.mubr.bf16.vlgmr.msra.gmra.mrb[60].mxu1 %v5052_v17  ;;  %v3341_v50 = vor.u32 %v3340_v5, %v3336_v37  ;;  %v6082_v17 = vld [vmem:[%s7348_s3 + $0x1e8] sm:$0xff]   ;;  %v6084_v7 = vld [vmem:[%s7348_s3 + $0x238] sm:$0xff]   ;;  %v7217_v26 = vld [vmem:[#allocation2 + $0x30] sm:$0xf]  ;;  %v3823_v30 = vshrl.u32 %v7131_v57, 16  ;;  %v3816_v58 = vshrl.u32 %v7140_v28, 16 }
 0x1c3   : > { %3169 = vmatmul.mubr.bf16.gmra.mrb[72].mxu0 %v4964_v25  ;;  %5707 = vmatprep.mubr.bf16.mxu1 %v5055_v19  ;;  %v3350_v25 = vshrl.u32 %v7137_v24, 16  ;;  %v3362_v48 = vor.u32 %v3361_v1, %v3357_v2  ;;  %v3764_v19 = vld [vmem:[#allocation2 + $0x24] sm:$0x1]  ;;  %v3768_v29 = vld [vmem:[#allocation2 + $0x34] sm:$0x1]  ;;  %v6091_v5 = vld [vmem:[%s7348_s3 + $0x1f8] sm:$0xff]  }
 0x1c4   : > { %5452 = vmatpush3.bf16.msra.mxu0 %v6051_v38  ;;  %3636 = vmatprep.mubr.bf16.mxu0 %v5048_v3  ;;  %v3352_v38 = vshll.u32 %v7137_v24, 16  ;;  %v7198_v3 = vld [vmem:[#allocation2 + $0x28] sm:$0xf]  ;;  %v3772_v27 = vld [vmem:[#allocation2 + $0x44] sm:$0x1] }
 0x1c5   : > { %5453 = vmatprep.subr.bf16.mxu0 %v6055_v4  ;;  %5712 = vmatpush3.bf16.msra.mxu1 %v6054_v0  ;;  %v5054_v0 = vcombine.low %v3341_v50, %v3348_v41  ;;  %v3825_v4 = vshll.u32 %v7131_v57, 16  ;;  %v5086_v24 = vcombine.low %v7198_v3, %v3766_v6  ;;  %v6087_v57 = vld [vmem:[%s7348_s3 + $0x1b0] sm:$0xff]   ;;  %v7249_v41 = vld [vmem:[#allocation2 + $0x40] sm:$0xf] }
 0x1c6   : > { %5713 = vmatprep.subr.bf16.mxu1 %v6059_v14  ;;  %v3354_v18 = vrot.slane %v3352_v38, 1  ;;  %v6108_v6 = vld [vmem:[%s6406_s14 + $0x130] ss:$8 sps:$4 sm:$0xff]  }
 0x1c7   : > { %v3839_v43 = vshll.u32 %v5086_v24, 16 }
 0x1c8   : > { %5454 = vmatpush3.bf16.msra.mxu0 %v6058_v53  ;;  %v3355_v45 = vor.u32 %v3354_v18, %v3350_v25  ;;  %v7211_v53 = vld [vmem:[#allocation2 + $0x38] sm:$0xf]  ;;  %v6099_v18 = vld [vmem:[%s7350_s5 + $0x10] sm:$0xff]   ;;  %v5139_v25 = vcombine.low %v7124_v22, %v7113_v39 }
 0x1c9   : > { %5491 = vmatprep.subr.bf16.mxu0 %v6061_v63  ;;  %5714 = vmatpush3.bf16.msra.mxu1 %v6059_v14  ;;  %v3818_v14 = vshll.u32 %v7140_v28, 16  ;;  %v3827_v63 = vrot.slane %v3825_v4, 1  ;;  %v7225_v36 = vcombine.low %v7211_v53, %v3770_v51  ;;  %v3841_v37 = vrot.slane %v3839_v43, 1 }
 0x1ca   : > { %5715 = vmatprep.subr.bf16.mxu1 %v6065_v32  ;;  %5708 = vmatmul.mubr.bf16.gmra.mrb[64].mxu1 %v5058_v54  ;;  %v5057_v21 = vcombine.low %v3355_v45, %v3362_v48  ;;  %v7241_v54 = vld [vmem:[#allocation2 + $0x48] sm:$0xf] }
 0x1cb   : > { %3637 = vmatmul.mubr.bf16.vlgmr.msra.gmra.mrb[76].mxu0 %v5047_v9  ;;  %5727 = vmatprep.mubr.bf16.mxu1 %v5141_v11  ;;  %v3820_v47 = vrot.slane %v3818_v14, 1  ;;  %v3828_v8 = vor.u32 %v3827_v63, %v3823_v30  ;;  %v7232_v9 = vcombine.low %v7217_v26, %v3768_v29  ;;  %v3876_v44 = vrot.slane %v7225_v36, 1  ;;  %v6103_v29 = vld [vmem:[%s7350_s5 + $0x28] sm:$0xff]  }
 0x1cc   : > { %3644 = vmatprep.mubr.bf16.mxu0 %v5051_v46  ;;  %5492 = vmatpush3.bf16.msra.mxu0 %v6062_v62  ;;  %v6086_v62 = vld [vmem:[%s7348_s3 + $0x1f0] sm:$0xff]   ;;  %v6090_v46 = vld [vmem:[%s7350_s5] sm:$0xff]   ;;  %v5056_v11 = vcombine.low %v7116_v13, %v7106_v52  ;;  %v6095_v52 = vld [vmem:[%s7350_s5 + $0x8] sm:$0xff]   ;;  %v3851_v14 = vshrl.u32 %v7225_v36, 16  ;;  %v5142_v63 = vcombine.low %v7207_v20, %v7198_v3 }
 0x1cd   : > { %5493 = vmatprep.subr.bf16.mxu0 %v6066_v12  ;;  %5716 = vmatpush3.bf16.msra.mxu1 %v6065_v32  ;;  %v5085_v32 = vcombine.low %v7207_v20, %v3764_v19  ;;  %v3874_v12 = vrot.slane %v5086_v24, 1  ;;  %v3821_v40 = vor.u32 %v3820_v47, %v3816_v58  ;;  %v3844_v39 = vshrl.u32 %v7232_v9, 16  ;;  %v6102_v19 = vld [vmem:[%s7350_s5 + $0x20] sm:$0xff]   ;;  %v6105_v3 = vld [vmem:[%s7350_s5 + $0x30] sm:$0xff]   ;;  %v6106_v58 = vld [vmem:[%s7350_s5 + $0x38] sm:$0xff]  }
 0x1ce   : > { %5717 = vmatprep.subr.bf16.mxu1 %v6070_v49 }
 0x1cf   : > { %v3832_v28 = vshll.u32 %v5085_v32, 16  ;;  %v5140_v10 = vcombine.low %v3821_v40, %v3828_v8  ;;  %v6110_v8 = vld [vmem:[%s6406_s14 + $0x110] ss:$8 sps:$4 sm:$0xff]  }
 0x1d0   : > { %5494 = vmatpush3.bf16.msra.mxu0 %v6069_v33  ;;  %v3873_v33 = vrot.slane %v5085_v32, 1 }
 0x1d1   : > { %5495 = vmatprep.subr.bf16.mxu0 %v6072_v35  ;;  %5718 = vmatpush3.bf16.msra.mxu1 %v6070_v49  ;;  %v3774_v49 = vld [vmem:[#allocation2 + $0x4c] sm:$0x1]  ;;  %v3875_v35 = vrot.slane %v7232_v9, 1  ;;  %v3834_v38 = vrot.slane %v3832_v28, 1 }
 0x1d2   : > { %5719 = vmatprep.subr.bf16.mxu1 %v6074_v55  ;;  %v7255_v13 = vcombine.low %v7241_v54, %v3774_v49 }
 0x1d3   : > { %3645 = vmatmul.mubr.bf16.gmra.mrb[80].mxu0 %v5050_v61  ;;  %v5147_v50 = vcombine.low %v3875_v35, %v3876_v44  ;;  %v3837_v61 = vshrl.u32 %v5086_v24, 16 }
 0x1d4   : > { %3652 = vmatprep.mubr.bf16.mxu0 %v5054_v0  ;;  %5496 = vmatpush3.bf16.msra.mxu0 %v6073_v59  ;;  %v6094_v59 = vld [vmem:[%s7348_s3 + $0x1b8] sm:$0xff]   ;;  %v3830_v0 = vshrl.u32 %v5085_v32, 16  ;;  %v3865_v47 = vshrl.u32 %v7255_v13, 16 }
 0x1d5   : > { %5497 = vmatprep.subr.bf16.mxu0 %v6075_v31  ;;  %5720 = vmatpush3.bf16.msra.mxu1 %v6074_v55  ;;  %v5144_v55 = vcombine.low %v3873_v33, %v3874_v12  ;;  %v5089_v31 = vcombine.low %v7249_v41, %v3772_v27  ;;  %v3842_v1 = vor.u32 %v3841_v37, %v3837_v61 }
 0x1d6   : > { %5721 = vmatprep.subr.bf16.mxu1 %v6077_v56  ;;  %v3835_v2 = vor.u32 %v3834_v38, %v3830_v0 }
 0x1d7   : > { %v3877_v48 = vrot.slane %v5089_v31, 1  ;;  %v3858_v30 = vshrl.u32 %v5089_v31, 16 }
 0x1d8   : > { %5498 = vmatpush3.bf16.msra.mxu0 %v6076_v34  ;;  %v3878_v34 = vrot.slane %v7255_v13, 1  ;;  %v5143_v4 = vcombine.low %v3835_v2, %v3842_v1 }
 0x1d9   : > { %5499 = vmatprep.subr.bf16.mxu0 %v6079_v23  ;;  %5722 = vmatpush3.bf16.msra.mxu1 %v6077_v56  ;;  %v3853_v56 = vshll.u32 %v7225_v36, 16  ;;  %v3846_v23 = vshll.u32 %v7232_v9, 16  ;;  %v5145_v36 = vcombine.low %v7217_v26, %v7211_v53  ;;  %v5148_v53 = vcombine.low %v7249_v41, %v7241_v54  ;;  %v6109_v26 = vld [vmem:[%s6406_s14 + $0x140] ss:$8 sps:$4 sm:$0xff]  }
 0x1da   : > { %5723 = vmatprep.subr.bf16.mxu1 %v6081_v60  ;;  %v5150_v45 = vcombine.low %v3877_v48, %v3878_v34  ;;  %v6111_v9 = vld [vmem:[%s6406_s14 + $0x120] ss:$8 sps:$4 sm:$0xff]  }
 0x1db   : > { %3653 = vmatmul.mubr.bf16.gmra.mrb[84].mxu0 %v5053_v42  ;;  %v3867_v42 = vshll.u32 %v7255_v13, 16 }
 0x1dc   : > { %3660 = vmatprep.mubr.bf16.mxu0 %v5057_v21  ;;  %5500 = vmatpush3.bf16.msra.mxu0 %v6080_v15  ;;  %v6100_v15 = vld [vmem:[%s7350_s5 + $0x18] sm:$0xff]   ;;  %v3860_v21 = vshll.u32 %v5089_v31, 16 }
 0x1dd   : > { %5501 = vmatprep.subr.bf16.mxu0 %v6082_v17  ;;  %5724 = vmatpush3.bf16.msra.mxu1 %v6081_v60  ;;  %v3855_v60 = vrot.slane %v3853_v56, 1  ;;  %v3848_v17 = vrot.slane %v3846_v23, 1 }
 0x1de   : > { %5725 = vmatprep.subr.bf16.mxu1 %v6084_v7 }
 0x1df   : > { %v3856_v22 = vor.u32 %v3855_v60, %v3851_v14  ;;  %v3849_v51 = vor.u32 %v3848_v17, %v3844_v39 }
 0x1e0   : > { %5502 = vmatpush3.bf16.msra.mxu0 %v6083_v16  ;;  %v3862_v16 = vrot.slane %v3860_v21, 1 }
 0x1e1   : > { %5503 = vmatprep.subr.bf16.mxu0 %v6086_v62  ;;  %5726 = vmatpush3.bf16.msra.mxu1 %v6084_v7  ;;  %v5146_v24 = vcombine.low %v3849_v51, %v3856_v22  ;;  %v3869_v7 = vrot.slane %v3867_v42, 1 }
 0x1e2   : > { %5759 = vmatprep.subr.bf16.mxu1 %v6090_v46  ;;  %v3863_v20 = vor.u32 %v3862_v16, %v3858_v30 }
 0x1e3   : > { %3661 = vmatmul.mubr.bf16.gmra.mrb[88].mxu0 %v5056_v11  ;;  %v3870_v32 = vor.u32 %v3869_v7, %v3865_v47 }
 0x1e4   : > { %5504 = vmatpush3.bf16.msra.mxu0 %v6087_v57  ;;  %4144 = vmatprep.mubr.bf16.mxu0 %v5140_v10 }
 0x1e5   : > { %5728 = vmatmul.mubr.bf16.vlgmr.msra.gmra.mrb[60].mxu1 %v5144_v55  ;;  %5505 = vmatprep.subr.bf16.mxu0 %v6091_v5  ;;  %v5149_v62 = vcombine.low %v3863_v20, %v3870_v32 }
 0x1e6   : > { %5731 = vmatprep.mubr.bf16.mxu1 %v5147_v50  ;;  %5767 = vmatpush3.bf16.msra.mxu1 %v6090_v46 }
 0x1e7   : > { %5760 = vmatprep.subr.bf16.mxu1 %v6095_v52 }
 0x1e8   : > { %5506 = vmatpush3.bf16.msra.mxu0 %v6094_v59 }
 0x1e9   : > { %5735 = vmatprep.subr.bf16.mxu0 %v6090_v46 }
 0x1ea   : > { %5768 = vmatpush3.bf16.msra.mxu1 %v6095_v52 }
 0x1eb   : > { %4145 = vmatmul.mubr.bf16.vlgmr.msra.gmra.mrb[92].mxu0 %v5139_v25  ;;  %5761 = vmatprep.subr.bf16.mxu1 %v6099_v18 }
 0x1ec   : > { %4152 = vmatprep.mubr.bf16.mxu0 %v5143_v4  ;;  %5736 = vmatpush3.bf16.msra.mxu0 %v6090_v46 }
 0x1ed   : > { %5732 = vmatmul.mubr.bf16.gmra.mrb[64].mxu1 %v5150_v45  ;;  %5737 = vmatprep.subr.bf16.mxu0 %v6095_v52 }
 0x1ee   : > { %5769 = vmatpush3.bf16.msra.mxu1 %v6099_v18  ;;  %5755 = vmatprep.mubr.bf16.mxu1 %v6108_v6 }
 0x1ef   : > { %5762 = vmatprep.subr.bf16.mxu1 %v6100_v15 }
 0x1f0   : > { %5738 = vmatpush3.bf16.msra.mxu0 %v6095_v52 }
 0x1f1   : > { %5739 = vmatprep.subr.bf16.mxu0 %v6099_v18 }
 0x1f2   : > { %5770 = vmatpush3.bf16.msra.mxu1 %v6100_v15 }
 0x1f3   : > { %4153 = vmatmul.mubr.bf16.gmra.mrb[96].mxu0 %v5142_v63  ;;  %5763 = vmatprep.subr.bf16.mxu1 %v6102_v19 }
 0x1f4   : > { %4160 = vmatprep.mubr.bf16.mxu0 %v5146_v24  ;;  %5740 = vmatpush3.bf16.msra.mxu0 %v6099_v18 }
 0x1f5   : > { %5741 = vmatprep.subr.bf16.mxu0 %v6100_v15 }
 0x1f6   : > { %5771 = vmatpush3.bf16.msra.mxu1 %v6102_v19 }
 0x1f7   : > { %5764 = vmatprep.subr.bf16.mxu1 %v6103_v29 }
 0x1f8   : > { %5742 = vmatpush3.bf16.msra.mxu0 %v6100_v15 }
 0x1f9   : > { %5743 = vmatprep.subr.bf16.mxu0 %v6102_v19 }
 0x1fa   : > { %5772 = vmatpush3.bf16.msra.mxu1 %v6103_v29 }
 0x1fb   : > { %4161 = vmatmul.mubr.bf16.gmra.mrb[100].mxu0 %v5145_v36  ;;  %5765 = vmatprep.subr.bf16.mxu1 %v6105_v3 }
 0x1fc   : > { %4168 = vmatprep.mubr.bf16.mxu0 %v5149_v62  ;;  %5744 = vmatpush3.bf16.msra.mxu0 %v6102_v19 }
 0x1fd   : > { %5745 = vmatprep.subr.bf16.mxu0 %v6103_v29 }
 0x1fe   : > { %5773 = vmatpush3.bf16.msra.mxu1 %v6105_v3 }
 0x1ff   : > { %5766 = vmatprep.subr.bf16.mxu1 %v6106_v58 }
 0x200   : > { %5746 = vmatpush3.bf16.msra.mxu0 %v6103_v29 }
 0x201   : > { %5747 = vmatprep.subr.bf16.mxu0 %v6105_v3 }
 0x202   : > { %5774 = vmatpush3.bf16.msra.mxu1 %v6106_v58 }
 0x203   : > { %4169 = vmatmul.mubr.bf16.gmra.mrb[104].mxu0 %v5148_v53 }
 0x204   : > { %5748 = vmatpush3.bf16.msra.mxu0 %v6105_v3  ;;  %5751 = vmatprep.mubr.bf16.mxu0 %v6110_v8 }
 0x205   : > { %5756 = vmatmul.mubr.bf16.vlgmr.msra.gmra.mrb[68].mxu1 %v6109_v26  ;;  %5749 = vmatprep.subr.bf16.mxu0 %v6106_v58 }
 0x208   : > { %5750 = vmatpush3.bf16.msra.mxu0 %v6106_v58 }
 0x20b   : > { %5752 = vmatmul.mubr.bf16.vlgmr.msra.gmra.mrb[108].mxu0 %v6111_v9 }
 0x27e   : > { %v5403_v43 = vpop.f32.mrb[60].mxu0 }
 0x27f   : > { %v5404_v57 = vpop.f32.mrb[61].mxu0 }
 0x280   : > { %v5405_v12 = vadd.f32 %v5404_v57, %v5403_v43  ;;  %v5406_v46 = vpop.f32.mrb[62].mxu0 }
 0x281   : > { %v5407_v40 = vpop.f32.mrb[63].mxu0 }
 0x282   : > { %v5408_v44 = vadd.f32 %v5407_v40, %v5406_v46 }
 0x286   : > { %v5409_v28 = vpop.f32.mrb[64].mxu0 }
 0x287   : > { %v5410_v49 = vpop.f32.mrb[65].mxu0 }
 0x288   : > { %v5411_v54 = vadd.f32 %v5410_v49, %v5409_v28  ;;  %v5412_v11 = vpop.f32.mrb[66].mxu0 }
 0x289   : > { %v5413_v33 = vpop.f32.mrb[67].mxu0 }
 0x28a   : > { %v5414_v5 = vadd.f32 %v5413_v33, %v5412_v11 }
 0x28e   : > { %v5415_v10 = vpop.f32.mrb[68].mxu0 }
 0x28f   : > { %v5416_v35 = vpop.f32.mrb[69].mxu0 }
 0x290   : > { %v5417_v37 = vadd.f32 %v5416_v35, %v5415_v10  ;;  %v5418_v41 = vpop.f32.mrb[70].mxu0 }
 0x291   : > { %v5419_v27 = vpop.f32.mrb[71].mxu0 }
 0x292   : > { %v5420_v55 = vadd.f32 %v5419_v27, %v5418_v41 }
 0x296   : > { %v5421_v52 = vpop.f32.mrb[72].mxu0 }
 0x297   : > { %v5422_v13 = vpop.f32.mrb[73].mxu0 }
 0x298   : > { %v5423_v50 = vadd.f32 %v5422_v13, %v5421_v52  ;;  %v5424_v59 = vpop.f32.mrb[74].mxu0 }
 0x299   : > { %v5425_v38 = vpop.f32.mrb[75].mxu0 }
 0x29a   : > { %v5426_v61 = vadd.f32 %v5425_v38, %v5424_v59 }
 0x29e   : > { %v5455_v31 = vpop.f32.mrb[76].mxu0 }
 0x29f   : > { %v5456_v0 = vpop.f32.mrb[77].mxu0 }
 0x2a0   : > { %v5457_v1 = vadd.f32 %v5456_v0, %v5455_v31  ;;  %v5458_v56 = vpop.f32.mrb[78].mxu0  ;;  %v5175_v0 = vld [vmem:[%s7349_s4] ss:$0 sm:$0xff] }
 0x2a1   : > { %v5459_v34 = vpop.f32.mrb[79].mxu0 }
 0x2a2   : > { %v5778_v18 = vadd.f32 %v5457_v1, %v5405_v12  ;;  %v5460_v2 = vadd.f32 %v5459_v34, %v5458_v56 }
 0x2a4   : > { %v5784_v23 = vadd.f32 %v5460_v2, %v5408_v44 }
 0x2a6   : > { %v5461_v25 = vpop.f32.mrb[80].mxu0 }
 0x2a7   : > { %v5462_v48 = vpop.f32.mrb[81].mxu0 }
 0x2a8   : > { %v5463_v4 = vadd.f32 %v5462_v48, %v5461_v25  ;;  %v5464_v60 = vpop.f32.mrb[82].mxu0 }
 0x2a9   : > { %v5465_v6 = vpop.f32.mrb[83].mxu0 }
 0x2aa   : > { %v5775_v45 = vadd.f32 %v5463_v4, %v5411_v54  ;;  %v5466_v15 = vadd.f32 %v5465_v6, %v5464_v60  ;;  %v5184_v6 = vld [vmem:[%s7351_s6] ss:$0 sm:$0xff] }
 0x2ac   : > { %v5781_v17 = vadd.f32 %v5466_v15, %v5414_v5 }
 0x2ae   : > { %v5467_v14 = vpop.f32.mrb[84].mxu0 }
 0x2af   : > { %v5468_v39 = vpop.f32.mrb[85].mxu0 }
 0x2b0   : > { %v5469_v22 = vadd.f32 %v5468_v39, %v5467_v14  ;;  %v5470_v42 = vpop.f32.mrb[86].mxu0 }
 0x2b1   : > { %v5471_v19 = vpop.f32.mrb[87].mxu0 }
 0x2b2   : > { %v5790_v51 = vadd.f32 %v5469_v22, %v5417_v37  ;;  %v5472_v21 = vadd.f32 %v5471_v19, %v5470_v42 }
 0x2b4   : > { %v5796_v63 = vadd.f32 %v5472_v21, %v5420_v55 }
 0x2b6   : > { %v5473_v24 = vpop.f32.mrb[88].mxu0 }
 0x2b7   : > { %v5474_v7 = vpop.f32.mrb[89].mxu0 }
 0x2b8   : > { %v5475_v29 = vadd.f32 %v5474_v7, %v5473_v24  ;;  %v5476_v16 = vpop.f32.mrb[90].mxu0  ;;  %v5729_v47 = vpop.f32.mrb[60].mxu1 }
 0x2b9   : > { %v5477_v30 = vpop.f32.mrb[91].mxu0  ;;  %v4211_v32 = vpop.f32.mrb[61].mxu1 }
 0x2ba   : > { %v5787_v3 = vadd.f32 %v5475_v29, %v5423_v50  ;;  %v5478_v20 = vadd.f32 %v5477_v30, %v5476_v16  ;;  %v5730_v36 = vpop.f32.mrb[62].mxu1 }
 0x2bb   : > { %v4214_v62 = vpop.f32.mrb[63].mxu1 }
 0x2bc   : > { %v7298_v58 = vadd.f32 %v5478_v20, %v5426_v61 }
 0x2be   : > { %v5507_v8 = vpop.f32.mrb[92].mxu0 }
 0x2bf   : > { %v5508_v53 = vpop.f32.mrb[93].mxu0 }
 0x2c0   : > { %v5509_v26 = vadd.f32 %v5508_v53, %v5507_v8  ;;  %v5510_v9 = vpop.f32.mrb[94].mxu0  ;;  %v7300_v43 = vpop.f32.mrb[64].mxu1 }
 0x2c1   : > { %v5511_v57 = vpop.f32.mrb[95].mxu0  ;;  %v4227_v12 = vpop.f32.mrb[65].mxu1 }
 0x2c2   : > { %v5779_v46 = vadd.f32 %v5778_v18, %v5509_v26  ;;  %v5512_v40 = vadd.f32 %v5511_v57, %v5510_v9  ;;  %v7302_v44 = vpop.f32.mrb[66].mxu1 }
 0x2c3   : > { %v4230_v28 = vpop.f32.mrb[67].mxu1 }
 0x2c4   : > { %v5780_v49 = vadd.f32 %v5779_v46, %v4211_v32  ;;  %v5785_v54 = vadd.f32 %v5784_v23, %v5512_v40 }
 0x2c6   : > { %v5786_v11 = vadd.f32 %v5785_v54, %v4214_v62  ;;  %v5513_v33 = vpop.f32.mrb[96].mxu0  ;;  %v4281_v2 = vadd.f32 %v5780_v49, %v5175_v0 }
 0x2c7   : > { %v5514_v5 = vpop.f32.mrb[97].mxu0 }
 0x2c8   : > { %v5515_v10 = vadd.f32 %v5514_v5, %v5513_v33  ;;  %v5516_v35 = vpop.f32.mrb[98].mxu0  ;;  %v4282_v22 = vadd.f32 %v5786_v11, %v5175_v0  ;;  %vm4289_vm3 = vcmp.ge.f32.partialorder %v4281_v2, 0.0  ;;  %v4297_v21 = vmul.f32 0.1, %v4281_v2 }
 0x2c9   : > { %v5517_v37 = vpop.f32.mrb[99].mxu0 }
 0x2ca   : > { %v5776_v41 = vadd.f32 %v5775_v45, %v5515_v10  ;;  %v5518_v27 = vadd.f32 %v5517_v37, %v5516_v35  ;;  %v4305_v53 = vsel %vm4289_vm3, %v4281_v2, %v4297_v21  ;;  %vm4290_vm8 = vcmp.ge.f32.partialorder %v4282_v22, 0.0 }
 0x2cc   : > { %v5777_v55 = vadd.f32 %v5776_v41, %v5729_v47  ;;  %v5782_v52 = vadd.f32 %v5781_v17, %v5518_v27 }
 0x2ce   : > { %v5783_v13 = vadd.f32 %v5782_v52, %v5730_v36  ;;  %v5519_v50 = vpop.f32.mrb[100].mxu0  ;;  %v4283_v23 = vadd.f32 %v5777_v55, %v5175_v0 }
 0x2cf   : > { %v5520_v59 = vpop.f32.mrb[101].mxu0 }
 0x2d0   : > { %v5521_v38 = vadd.f32 %v5520_v59, %v5519_v50  ;;  %v5522_v61 = vpop.f32.mrb[102].mxu0  ;;  %v4284_v42 = vadd.f32 %v5783_v13, %v5175_v0  ;;  %vm4291_vm4 = vcmp.ge.f32.partialorder %v4283_v23, 0.0  ;;  %v4299_v32 = vmul.f32 0.1, %v4283_v23 }
 0x2d1   : > { %v5523_v31 = vpop.f32.mrb[103].mxu0 }
 0x2d2   : > { %v5791_v1 = vadd.f32 %v5790_v51, %v5521_v38  ;;  %v5524_v56 = vadd.f32 %v5523_v31, %v5522_v61  ;;  %v4300_v26 = vmul.f32 0.1, %v4284_v42  ;;  %vm4292_vm6 = vcmp.ge.f32.partialorder %v4284_v42, 0.0 }
 0x2d4   : > { %v5792_v34 = vadd.f32 %v5791_v1, %v4227_v12  ;;  %v5797_v18 = vadd.f32 %v5796_v63, %v5524_v56 }
 0x2d6   : > { %v4285_v25 = vadd.f32 %v5792_v34, %v5175_v0  ;;  %v5798_v48 = vadd.f32 %v5797_v18, %v4230_v28  ;;  %v5525_v4 = vpop.f32.mrb[104].mxu0  ;;  %v4307_v28 = vsel %vm4291_vm4, %v4283_v23, %v4299_v32 }
 0x2d7   : > { %v5526_v60 = vpop.f32.mrb[105].mxu0 }
 0x2d8   : > { %v4286_v45 = vadd.f32 %v5798_v48, %v5175_v0  ;;  %v5527_v15 = vadd.f32 %v5526_v60, %v5525_v4  ;;  %v5528_v17 = vpop.f32.mrb[106].mxu0  ;;  %v5757_v14 = vpop.f32.mrb[68].mxu1  ;;  %vm4293_vm2 = vcmp.ge.f32.partialorder %v4285_v25, 0.0  ;;  %v4301_v39 = vmul.f32 0.1, %v4285_v25 }
 0x2d9   : > { %v5529_v19 = vpop.f32.mrb[107].mxu0  ;;  %v4469_v51 = vpop.f32.mrb[69].mxu1  ;;  %v4478_v40 = vadd.f32 %v5757_v14, %v5184_v6 }
 0x2da   : > { %v5788_v63 = vadd.f32 %v5787_v3, %v5527_v15  ;;  %v5530_v24 = vadd.f32 %v5529_v19, %v5528_v17  ;;  %v4470_v7 = vadd.f32 %v5184_v6, %v4469_v51  ;;  %v5758_v29 = vpop.f32.mrb[70].mxu1  ;;  %v4309_v16 = vsel %vm4293_vm2, %v4285_v25, %v4301_v39 }
 0x2db   : > { %vm4294_vm5 = vcmp.ge.f32.partialorder %v4286_v45, 0.0  ;;  %v4302_v47 = vmul.f32 0.1, %v4286_v45  ;;  %v4472_v30 = vpop.f32.mrb[71].mxu1  ;;  %v4481_v13 = vadd.f32 %v5758_v29, %v5184_v6 }
 0x2dc   : > { %v5789_v20 = vadd.f32 %v5788_v63, %v7300_v43  ;;  %v5794_v36 = vadd.f32 %v7298_v58, %v5530_v24  ;;  %v4488_v3 = vadd.f32 %v4470_v7, %v4309_v16  ;;  %v4473_v62 = vadd.f32 %v5184_v6, %v4472_v30 }
 0x2dd   : > { %v4310_v8 = vsel %vm4294_vm5, %v4286_v45, %v4302_v47  ;;  %v4298_v58 = vmul.f32 0.1, %v4282_v22 }
 0x2de   : > { %v4287_v9 = vadd.f32 %v5789_v20, %v5175_v0  ;;  %v5795_v57 = vadd.f32 %v5794_v36, %v7302_v44  ;;  %4496 = vst [vmem:[%s7315_s10 + $0x20] sm:$0xff] %v4488_v3  ;;  %v4489_v12 = vadd.f32 %v4473_v62, %v4310_v8  ;;  %v5753_v46 = vpop.f32.mrb[108].mxu0  ;;  %v4308_v44 = vsel %vm4292_vm6, %v4284_v42, %v4300_v26 }
 0x2df   : > { %v4462_v43 = vadd.f32 %v5753_v46, %v5184_v6  ;;  %v4453_v49 = vpop.f32.mrb[109].mxu0  ;;  %v4306_v61 = vsel %vm4290_vm8, %v4282_v22, %v4298_v58 }
 0x2e0   : > { %v4288_v54 = vadd.f32 %v5795_v57, %v5175_v0  ;;  %vm4295_vm7 = vcmp.ge.f32.partialorder %v4287_v9, 0.0  ;;  %v4303_v11 = vmul.f32 0.1, %v4287_v9  ;;  %4497 = vst [vmem:[%s7315_s10 + $0x28] sm:$0xff] %v4489_v12  ;;  %v4454_v33 = vadd.f32 %v5184_v6, %v4453_v49  ;;  %v5754_v5 = vpop.f32.mrb[110].mxu0 }
 0x2e1   : > { %v4486_v10 = vadd.f32 %v4462_v43, %v4307_v28  ;;  %v4465_v35 = vadd.f32 %v5754_v5, %v5184_v6  ;;  %v4456_v37 = vpop.f32.mrb[111].mxu0 }
 0x2e2   : > { %v4311_v41 = vsel %vm4295_vm7, %v4287_v9, %v4303_v11  ;;  %vm4296_vm9 = vcmp.ge.f32.partialorder %v4288_v54, 0.0  ;;  %v4304_v27 = vmul.f32 0.1, %v4288_v54  ;;  %v4484_v55 = vadd.f32 %v4454_v33, %v4305_v53 }
 0x2e3   : > { %v4490_v52 = vadd.f32 %v4478_v40, %v4311_v41  ;;  %4494 = vst [vmem:[%s7315_s10 + $0x10] sm:$0xff] %v4486_v10  ;;  %v4487_v50 = vadd.f32 %v4465_v35, %v4308_v44  ;;  %v4457_v59 = vadd.f32 %v5184_v6, %v4456_v37 }
 0x2e4   : > { %v4312_v38 = vsel %vm4296_vm9, %v4288_v54, %v4304_v27  ;;  %4492 = vst [vmem:[%s7315_s10] sm:$0xff] %v4484_v55 }
 0x2e5   : > { %4498 = vst [vmem:[%s7315_s10 + $0x30] sm:$0xff] %v4490_v52  ;;  %v4491_v31 = vadd.f32 %v4481_v13, %v4312_v38  ;;  %4495 = vst [vmem:[%s7315_s10 + $0x18] sm:$0xff] %v4487_v50  ;;  %v4485_v0 = vadd.f32 %v4457_v59, %v4306_v61 }
 0x2e7   : > { %4499 = vst [vmem:[%s7315_s10 + $0x38] sm:$0xff] %v4491_v31  ;;  %4493 = vst [vmem:[%s7315_s10 + $0x8] sm:$0xff] %v4485_v0 }
 0x2e8 PF: > { %s17_s28 = sadd.s32 1, %s6150_s28   ;;  %s7359_s24 = smov %s6138_s25 }
 0x2e9   : > { %p14_p10 = scmp.ge.s32.totalorder %s17_s28, 4   ;;  %s7360_s25 = smov %s6229_s9 }
 0x2ea   : > { %s7361_s26 = smov %s6146_s27  ;;  %s7362_s27 = smov %s7364_s29 }
 0x2eb   :  { %16 = sbr.rel (!%p14_p10) target bundleno = 3 (0x3), region = 142 }

</bundles_post_ra>
